<compile_context>
chip_gen: v7x
topology: tpu7x:2x2x1
jax: 0.10.0
libtpu: 0.0.40
codegen_flags: <defaults>
</compile_context>

<pallas_src>
import functools
import math

import jax
import jax.numpy as jnp
from jax import lax
from jax.experimental import pallas as pl
from jax.experimental.pallas import tpu as pltpu


def packed_conv2d_config(in_channels, out_channels, alpha, num_estimators,
                         gamma=1, groups=1, minimum_channels_per_group=64,
                         first=False, last=False):
    """Mirror of PackedConv2d.__init__ channel / group arithmetic."""
    assert alpha is not None and alpha > 0
    assert isinstance(gamma, int) and gamma > 0
    assert isinstance(num_estimators, int) and num_estimators > 0
    extended_in = int(in_channels * (1 if first else alpha))
    extended_out = int(out_channels * (num_estimators if last else alpha))
    actual_groups = 1 if first else gamma * groups * num_estimators
    while ((extended_in % actual_groups != 0
            or extended_in // actual_groups < minimum_channels_per_group)
           and actual_groups // (groups * num_estimators) > 1):
        gamma -= 1
        actual_groups = gamma * groups * num_estimators
    if extended_in % actual_groups:
        extended_in += num_estimators - extended_in % actual_groups
    if extended_out % actual_groups:
        extended_out += num_estimators - extended_out % actual_groups
    # Guard: the library's padding rule does not provably yield divisibility
    # for every (gamma, groups, num_estimators); the Pallas reshape to
    # (G, Cg, ...) would silently mis-partition if it ever is not divisible.
    assert extended_in % actual_groups == 0, "extended_in not divisible by groups"
    assert extended_out % actual_groups == 0, "extended_out not divisible by groups"
    return extended_in, extended_out, actual_groups


def _packed_conv_kernel(x_ref, w_ref, b_ref, o_ref, patch_ref, *,
                        kh, kw, stride, oh, ow, cg_in, k, k_pad, bblk):
    """One grid step = one channel group x one batch tile, full spatial extent.

    x_ref     : (Bblk, 1, Cg_in, Hp, Wp)   streaming dtype (f32 or bf16)
    w_ref     : (1, Cg_out, K_pad)         streaming dtype
    b_ref     : (1, Cg_out, 1)             f32
    o_ref     : (1, Cg_out, Bblk*OH*OW)    output dtype
    patch_ref : (K_pad, Bblk*OH*OW)        f32 VMEM scratch (in-kernel im2col)
    """
    ohw = oh * ow
    # ---- in-kernel im2col: build the (K_pad, Bblk*OHW) patch tile in VMEM ----
    for b in range(bblk):
        col0 = b * ohw
        # One aligned full-tile load per batch element, widened to f32 so the
        # shifted tap slices below stay on the well-supported 32-bit path.
        xb = x_ref[b, 0, :, :, :].astype(jnp.float32)        # (Cg_in, Hp, Wp)
        for i in range(kh):
            for j in range(kw):
                if stride == 1:
                    tap = xb[:, i:i + oh, j:j + ow]
                else:
                    tap = lax.slice(
                        xb, (0, i, j),
                        (cg_in, i + (oh - 1) * stride + 1,
                         j + (ow - 1) * stride + 1),
                        (1, stride, stride))
                row0 = (i * kw + j) * cg_in                  # static offsets
                patch_ref[row0:row0 + cg_in, col0:col0 + ohw] = (
                    tap.reshape(cg_in, ohw))
    if k_pad > k:  # zero the sublane-alignment padding rows
        patch_ref[k:k_pad, :] = jnp.zeros((k_pad - k, bblk * ohw), jnp.float32)

    # ---- one wide MXU matmul per grid step; f32 accumulation & epilogue ----
    acc = jnp.dot(w_ref[0].astype(jnp.float32), patch_ref[...],
                  preferred_element_type=jnp.float32)        # (Cg_out, Bblk*OHW)
    acc = acc + b_ref[0]                                     # f32 bias add
    o_ref[0] = acc.astype(o_ref.dtype)                       # lane-dense store


def _pick_batch_tile(batch, ohw, per_batch_bytes, fixed_bytes, budget_bytes):
    """Largest batch tile dividing `batch` whose output block stays a multiple
    of 128 lanes (unless it is the full batch) and fits the VMEM budget."""
    candidates = [d for d in range(batch, 0, -1)
                  if batch % d == 0 and (d == batch or (d * ohw) % 128 == 0)]
    for d in candidates:
        if fixed_bytes + d * per_batch_bytes <= budget_bytes:
            return d
    return candidates[-1]


def packed_conv2d_forward(x, weight, bias, groups, stride=1, padding=0,
                          compute_dtype=None):
    """Grouped 2D convolution: x NCHW, weight (C_out, C_in/G, KH, KW).

    compute_dtype: optional HBM streaming dtype for x / weight (e.g.
      jnp.bfloat16); accumulation, bias add and the output stay float32.
    """
    # TODO(synk): only symmetric integer padding with padding_mode='zeros' and
    # dilation=1 are implemented (no 'same'/'valid', reflect/replicate/circular).
    batch, c_in, h, w_in = x.shape
    c_out, cg_in, kh, kw = weight.shape
    g = groups
    assert c_in == cg_in * g and c_out % g == 0
    cg_out = c_out // g

    out_dtype = x.dtype
    stream_dtype = jnp.dtype(compute_dtype) if compute_dtype is not None \
        else jnp.dtype(x.dtype)

    oh = (h + 2 * padding - kh) // stride + 1
    ow = (w_in + 2 * padding - kw) // stride + 1
    ohw = oh * ow
    hp, wp = h + 2 * padding, w_in + 2 * padding

    # Contraction axis ordered (kh, kw, ci), padded to the f32 sublane multiple.
    k = kh * kw * cg_in
    k_pad = ((k + 7) // 8) * 8

    # --- wrapper-side layout plumbing (cheap, XLA) ---
    if padding:
        x = jnp.pad(x, ((0, 0), (0, 0), (padding, padding), (padding, padding)))
    xg = x.reshape(batch, g, cg_in, hp, wp).astype(stream_dtype)
    wg = weight.reshape(g, cg_out, cg_in, kh, kw).transpose(0, 1, 3, 4, 2)
    wg = wg.reshape(g, cg_out, k).astype(stream_dtype)
    if k_pad > k:
        wg = jnp.pad(wg, ((0, 0), (0, 0), (0, k_pad - k)))
    if bias is None:
        bias = jnp.zeros((c_out,), jnp.float32)
    bg = bias.astype(jnp.float32).reshape(g, cg_out, 1)

    # --- VMEM working-set budget (v7x has only 64 MiB per TensorCore) ---
    in_b = stream_dtype.itemsize
    out_b = jnp.dtype(out_dtype).itemsize
    fixed = 2 * cg_out * k_pad * in_b + 2 * cg_out * 4        # weights + bias
    per_batch = (2 * cg_in * hp * wp * in_b                   # x double-buffer
                 + 2 * cg_out * ohw * out_b                   # out double-buffer
                 + 4 * k_pad * ohw)                           # f32 im2col scratch
    bblk = _pick_batch_tile(batch, ohw, per_batch, fixed, budget_bytes=40 << 20)
    # TODO(synk): images large enough that a single batch element busts the
    # budget would additionally need an OH-row (halo) tiling axis.

    kernel = functools.partial(
        _packed_conv_kernel, kh=kh, kw=kw, stride=stride, oh=oh, ow=ow,
        cg_in=cg_in, k=k, k_pad=k_pad, bblk=bblk)

    out_p = pl.pallas_call(
        kernel,
        out_shape=jax.ShapeDtypeStruct((g, cg_out, batch * ohw), out_dtype),
        grid_spec=pltpu.PrefetchScalarGridSpec(
            num_scalar_prefetch=0,
            # group slowest / batch fastest: weight + bias block indices stay
            # constant across the inner batch loop -> fetched once per group.
            grid=(g, batch // bblk),
            in_specs=[
                pl.BlockSpec((bblk, 1, cg_in, hp, wp),
                             lambda gi, bi: (bi, gi, 0, 0, 0)),
                pl.BlockSpec((1, cg_out, k_pad), lambda gi, bi: (gi, 0, 0)),
                pl.BlockSpec((1, cg_out, 1), lambda gi, bi: (gi, 0, 0)),
            ],
            out_specs=pl.BlockSpec((1, cg_out, bblk * ohw),
                                   lambda gi, bi: (gi, 0, bi)),
            scratch_shapes=[pltpu.VMEM((k_pad, bblk * ohw), jnp.float32)],
        ),
        compiler_params=pltpu.CompilerParams(
            dimension_semantics=("parallel", "arbitrary"),
            vmem_limit_bytes=48 * 1024 * 1024),
    )(xg, wg, bg)

    # (G, Cg_out, B*OH*OW) -> NCHW  (layout plumbing back to PyTorch order)
    out = out_p.reshape(g, cg_out, batch, oh, ow)
    return jnp.transpose(out, (2, 0, 1, 3, 4)).reshape(batch, c_out, oh, ow)


if __name__ == "__main__":
    # Module config: PackedConv2d(in=8, out=8, kernel_size=3, alpha=2,
    #                num_estimators=2, gamma=1, stride=1, padding=1, bias=True)
    in_channels, out_channels = 8, 8
    alpha, num_estimators, gamma = 2, 2, 1
    kh = kw = 3
    stride, padding = 1, 1

    ext_in, ext_out, actual_groups = packed_conv2d_config(
        in_channels, out_channels, alpha, num_estimators, gamma)
    # ext_in=16, ext_out=16, actual_groups=2
    cg_in = ext_in // actual_groups
    cg_out = ext_out // actual_groups

    key = jax.random.PRNGKey(0)
    kx, kw_, kb = jax.random.split(key, 3)

    batch, hh, ww = 2, 16, 16
    x = jax.random.normal(kx, (batch, ext_in, hh, ww), dtype=jnp.float32)

    # Deterministic param init (Conv2d-style kaiming-uniform bounds).
    fan_in = cg_in * kh * kw
    bound = 1.0 / math.sqrt(fan_in)
    weight = jax.random.uniform(kw_, (ext_out, cg_in, kh, kw),
                                minval=-bound, maxval=bound, dtype=jnp.float32)
    bias = jax.random.uniform(kb, (ext_out,), minval=-bound, maxval=bound,
                              dtype=jnp.float32)

    out = packed_conv2d_forward(x, weight, bias, actual_groups,
                                stride=stride, padding=padding)
    out = jax.block_until_ready(out)

    # Reference: XLA grouped conv (same semantics as nn.Conv2d with groups=G).
    ref = jax.lax.conv_general_dilated(
        x, weight, window_strides=(stride, stride),
        padding=((padding, padding), (padding, padding)),
        dimension_numbers=("NCHW", "OIHW", "NCHW"),
        feature_group_count=actual_groups) + bias.reshape(1, -1, 1, 1)

    assert out.shape == (batch, ext_out, hh, ww)
    assert jnp.allclose(out, ref, rtol=1e-4, atol=1e-4)

    # bf16-streamed variant: halves the dominant x/weight HBM traffic
    # (v5e/v6e roofline win); accumulation and epilogue stay f32.
    out_bf16 = packed_conv2d_forward(x, weight, bias, actual_groups,
                                     stride=stride, padding=padding,
                                     compute_dtype=jnp.bfloat16)
    out_bf16 = jax.block_until_ready(out_bf16)
    assert out_bf16.shape == (batch, ext_out, hh, ww)
    assert jnp.allclose(out_bf16, ref, rtol=5e-2, atol=5e-2)

    print("KERNEL_OK")
</pallas_src>

<mosaic_0001>
module attributes {stable_mosaic.version = 11 : i64} {
  func.func @_packed_conv_kernel(%arg0: i32, %arg1: i32, %arg2: memref<2x1x8x18x18xf32, #tpu.memory_space<vmem>>, %arg3: memref<1x8x72xf32, #tpu.memory_space<vmem>>, %arg4: memref<1x8x1xf32, #tpu.memory_space<vmem>>, %arg5: memref<1x8x512xf32, #tpu.memory_space<vmem>>, %arg6: memref<72x512xf32, #tpu.memory_space<vmem>>) attributes {dimension_semantics = [#tpu.dimension_semantics<parallel>, #tpu.dimension_semantics<arbitrary>], iteration_bounds = array<i64: 2, 1>, scalar_prefetch = 0 : i64, scratch_operands = 1 : i64, tpu.core_type = #tpu.core_type<tc>, window_params = [{transform_indices = @transform_0, window_bounds = array<i64: 2, 1, 8, 18, 18>}, {transform_indices = @transform_1, window_bounds = array<i64: 1, 8, 72>}, {transform_indices = @transform_2, window_bounds = array<i64: 1, 8, 1>}, {transform_indices = @transform_3, window_bounds = array<i64: 1, 8, 512>}]} {
    %c0 = arith.constant 0 : index
    %c0_0 = arith.constant 0 : index
    %c0_1 = arith.constant 0 : index
    %c0_2 = arith.constant 0 : index
    %c0_3 = arith.constant 0 : index
    %0 = vector.load %arg2[%c0, %c0_0, %c0_1, %c0_2, %c0_3] : memref<2x1x8x18x18xf32, #tpu.memory_space<vmem>>, vector<1x1x8x18x18xf32>
    %1 = vector.shape_cast %0 : vector<1x1x8x18x18xf32> to vector<8x18x18xf32>
    %2 = vector.extract_strided_slice %1 {offsets = [0, 0, 0], sizes = [8, 16, 16], strides = [1, 1, 1]} : vector<8x18x18xf32> to vector<8x16x16xf32>
    %3 = vector.shape_cast %2 : vector<8x16x16xf32> to vector<8x256xf32>
    %c0_4 = arith.constant 0 : index
    %c0_5 = arith.constant 0 : index
    %4 = vector.load %arg6[%c0_4, %c0_5] : memref<72x512xf32, #tpu.memory_space<vmem>>, vector<8x256xf32>
    tpu.vector_store %arg6[%c0_4, %c0_5], %3 {strides = array<i32>} : memref<72x512xf32, #tpu.memory_space<vmem>>, vector<8x256xf32>,
    %5 = vector.extract_strided_slice %1 {offsets = [0, 0, 1], sizes = [8, 16, 16], strides = [1, 1, 1]} : vector<8x18x18xf32> to vector<8x16x16xf32>
    %6 = vector.shape_cast %5 : vector<8x16x16xf32> to vector<8x256xf32>
    %c8 = arith.constant 8 : index
    %c0_6 = arith.constant 0 : index
    %7 = vector.load %arg6[%c8, %c0_6] : memref<72x512xf32, #tpu.memory_space<vmem>>, vector<8x256xf32>
    tpu.vector_store %arg6[%c8, %c0_6], %6 {strides = array<i32>} : memref<72x512xf32, #tpu.memory_space<vmem>>, vector<8x256xf32>,
    %8 = vector.extract_strided_slice %1 {offsets = [0, 0, 2], sizes = [8, 16, 16], strides = [1, 1, 1]} : vector<8x18x18xf32> to vector<8x16x16xf32>
    %9 = vector.shape_cast %8 : vector<8x16x16xf32> to vector<8x256xf32>
    %c16 = arith.constant 16 : index
    %c0_7 = arith.constant 0 : index
    %10 = vector.load %arg6[%c16, %c0_7] : memref<72x512xf32, #tpu.memory_space<vmem>>, vector<8x256xf32>
    tpu.vector_store %arg6[%c16, %c0_7], %9 {strides = array<i32>} : memref<72x512xf32, #tpu.memory_space<vmem>>, vector<8x256xf32>,
    %11 = vector.extract_strided_slice %1 {offsets = [0, 1, 0], sizes = [8, 16, 16], strides = [1, 1, 1]} : vector<8x18x18xf32> to vector<8x16x16xf32>
    %12 = vector.shape_cast %11 : vector<8x16x16xf32> to vector<8x256xf32>
    %c24 = arith.constant 24 : index
    %c0_8 = arith.constant 0 : index
    %13 = vector.load %arg6[%c24, %c0_8] : memref<72x512xf32, #tpu.memory_space<vmem>>, vector<8x256xf32>
    tpu.vector_store %arg6[%c24, %c0_8], %12 {strides = array<i32>} : memref<72x512xf32, #tpu.memory_space<vmem>>, vector<8x256xf32>,
    %14 = vector.extract_strided_slice %1 {offsets = [0, 1, 1], sizes = [8, 16, 16], strides = [1, 1, 1]} : vector<8x18x18xf32> to vector<8x16x16xf32>
    %15 = vector.shape_cast %14 : vector<8x16x16xf32> to vector<8x256xf32>
    %c32 = arith.constant 32 : index
    %c0_9 = arith.constant 0 : index
    %16 = vector.load %arg6[%c32, %c0_9] : memref<72x512xf32, #tpu.memory_space<vmem>>, vector<8x256xf32>
    tpu.vector_store %arg6[%c32, %c0_9], %15 {strides = array<i32>} : memref<72x512xf32, #tpu.memory_space<vmem>>, vector<8x256xf32>,
    %17 = vector.extract_strided_slice %1 {offsets = [0, 1, 2], sizes = [8, 16, 16], strides = [1, 1, 1]} : vector<8x18x18xf32> to vector<8x16x16xf32>
    %18 = vector.shape_cast %17 : vector<8x16x16xf32> to vector<8x256xf32>
    %c40 = arith.constant 40 : index
    %c0_10 = arith.constant 0 : index
    %19 = vector.load %arg6[%c40, %c0_10] : memref<72x512xf32, #tpu.memory_space<vmem>>, vector<8x256xf32>
    tpu.vector_store %arg6[%c40, %c0_10], %18 {strides = array<i32>} : memref<72x512xf32, #tpu.memory_space<vmem>>, vector<8x256xf32>,
    %20 = vector.extract_strided_slice %1 {offsets = [0, 2, 0], sizes = [8, 16, 16], strides = [1, 1, 1]} : vector<8x18x18xf32> to vector<8x16x16xf32>
    %21 = vector.shape_cast %20 : vector<8x16x16xf32> to vector<8x256xf32>
    %c48 = arith.constant 48 : index
    %c0_11 = arith.constant 0 : index
    %22 = vector.load %arg6[%c48, %c0_11] : memref<72x512xf32, #tpu.memory_space<vmem>>, vector<8x256xf32>
    tpu.vector_store %arg6[%c48, %c0_11], %21 {strides = array<i32>} : memref<72x512xf32, #tpu.memory_space<vmem>>, vector<8x256xf32>,
    %23 = vector.extract_strided_slice %1 {offsets = [0, 2, 1], sizes = [8, 16, 16], strides = [1, 1, 1]} : vector<8x18x18xf32> to vector<8x16x16xf32>
    %24 = vector.shape_cast %23 : vector<8x16x16xf32> to vector<8x256xf32>
    %c56 = arith.constant 56 : index
    %c0_12 = arith.constant 0 : index
    %25 = vector.load %arg6[%c56, %c0_12] : memref<72x512xf32, #tpu.memory_space<vmem>>, vector<8x256xf32>
    tpu.vector_store %arg6[%c56, %c0_12], %24 {strides = array<i32>} : memref<72x512xf32, #tpu.memory_space<vmem>>, vector<8x256xf32>,
    %26 = vector.extract_strided_slice %1 {offsets = [0, 2, 2], sizes = [8, 16, 16], strides = [1, 1, 1]} : vector<8x18x18xf32> to vector<8x16x16xf32>
    %27 = vector.shape_cast %26 : vector<8x16x16xf32> to vector<8x256xf32>
    %c64 = arith.constant 64 : index
    %c0_13 = arith.constant 0 : index
    %28 = vector.load %arg6[%c64, %c0_13] : memref<72x512xf32, #tpu.memory_space<vmem>>, vector<8x256xf32>
    tpu.vector_store %arg6[%c64, %c0_13], %27 {strides = array<i32>} : memref<72x512xf32, #tpu.memory_space<vmem>>, vector<8x256xf32>,
    %c1 = arith.constant 1 : index
    %c0_14 = arith.constant 0 : index
    %c0_15 = arith.constant 0 : index
    %c0_16 = arith.constant 0 : index
    %c0_17 = arith.constant 0 : index
    %29 = vector.load %arg2[%c1, %c0_14, %c0_15, %c0_16, %c0_17] : memref<2x1x8x18x18xf32, #tpu.memory_space<vmem>>, vector<1x1x8x18x18xf32>
    %30 = vector.shape_cast %29 : vector<1x1x8x18x18xf32> to vector<8x18x18xf32>
    %31 = vector.extract_strided_slice %30 {offsets = [0, 0, 0], sizes = [8, 16, 16], strides = [1, 1, 1]} : vector<8x18x18xf32> to vector<8x16x16xf32>
    %32 = vector.shape_cast %31 : vector<8x16x16xf32> to vector<8x256xf32>
    %c0_18 = arith.constant 0 : index
    %c256 = arith.constant 256 : index
    %33 = vector.load %arg6[%c0_18, %c256] : memref<72x512xf32, #tpu.memory_space<vmem>>, vector<8x256xf32>
    tpu.vector_store %arg6[%c0_18, %c256], %32 {strides = array<i32>} : memref<72x512xf32, #tpu.memory_space<vmem>>, vector<8x256xf32>,
    %34 = vector.extract_strided_slice %30 {offsets = [0, 0, 1], sizes = [8, 16, 16], strides = [1, 1, 1]} : vector<8x18x18xf32> to vector<8x16x16xf32>
    %35 = vector.shape_cast %34 : vector<8x16x16xf32> to vector<8x256xf32>
    %c8_19 = arith.constant 8 : index
    %c256_20 = arith.constant 256 : index
    %36 = vector.load %arg6[%c8_19, %c256_20] : memref<72x512xf32, #tpu.memory_space<vmem>>, vector<8x256xf32>
    tpu.vector_store %arg6[%c8_19, %c256_20], %35 {strides = array<i32>} : memref<72x512xf32, #tpu.memory_space<vmem>>, vector<8x256xf32>,
    %37 = vector.extract_strided_slice %30 {offsets = [0, 0, 2], sizes = [8, 16, 16], strides = [1, 1, 1]} : vector<8x18x18xf32> to vector<8x16x16xf32>
    %38 = vector.shape_cast %37 : vector<8x16x16xf32> to vector<8x256xf32>
    %c16_21 = arith.constant 16 : index
    %c256_22 = arith.constant 256 : index
    %39 = vector.load %arg6[%c16_21, %c256_22] : memref<72x512xf32, #tpu.memory_space<vmem>>, vector<8x256xf32>
    tpu.vector_store %arg6[%c16_21, %c256_22], %38 {strides = array<i32>} : memref<72x512xf32, #tpu.memory_space<vmem>>, vector<8x256xf32>,
    %40 = vector.extract_strided_slice %30 {offsets = [0, 1, 0], sizes = [8, 16, 16], strides = [1, 1, 1]} : vector<8x18x18xf32> to vector<8x16x16xf32>
    %41 = vector.shape_cast %40 : vector<8x16x16xf32> to vector<8x256xf32>
    %c24_23 = arith.constant 24 : index
    %c256_24 = arith.constant 256 : index
    %42 = vector.load %arg6[%c24_23, %c256_24] : memref<72x512xf32, #tpu.memory_space<vmem>>, vector<8x256xf32>
    tpu.vector_store %arg6[%c24_23, %c256_24], %41 {strides = array<i32>} : memref<72x512xf32, #tpu.memory_space<vmem>>, vector<8x256xf32>,
    %43 = vector.extract_strided_slice %30 {offsets = [0, 1, 1], sizes = [8, 16, 16], strides = [1, 1, 1]} : vector<8x18x18xf32> to vector<8x16x16xf32>
    %44 = vector.shape_cast %43 : vector<8x16x16xf32> to vector<8x256xf32>
    %c32_25 = arith.constant 32 : index
    %c256_26 = arith.constant 256 : index
    %45 = vector.load %arg6[%c32_25, %c256_26] : memref<72x512xf32, #tpu.memory_space<vmem>>, vector<8x256xf32>
    tpu.vector_store %arg6[%c32_25, %c256_26], %44 {strides = array<i32>} : memref<72x512xf32, #tpu.memory_space<vmem>>, vector<8x256xf32>,
    %46 = vector.extract_strided_slice %30 {offsets = [0, 1, 2], sizes = [8, 16, 16], strides = [1, 1, 1]} : vector<8x18x18xf32> to vector<8x16x16xf32>
    %47 = vector.shape_cast %46 : vector<8x16x16xf32> to vector<8x256xf32>
    %c40_27 = arith.constant 40 : index
    %c256_28 = arith.constant 256 : index
    %48 = vector.load %arg6[%c40_27, %c256_28] : memref<72x512xf32, #tpu.memory_space<vmem>>, vector<8x256xf32>
    tpu.vector_store %arg6[%c40_27, %c256_28], %47 {strides = array<i32>} : memref<72x512xf32, #tpu.memory_space<vmem>>, vector<8x256xf32>,
    %49 = vector.extract_strided_slice %30 {offsets = [0, 2, 0], sizes = [8, 16, 16], strides = [1, 1, 1]} : vector<8x18x18xf32> to vector<8x16x16xf32>
    %50 = vector.shape_cast %49 : vector<8x16x16xf32> to vector<8x256xf32>
    %c48_29 = arith.constant 48 : index
    %c256_30 = arith.constant 256 : index
    %51 = vector.load %arg6[%c48_29, %c256_30] : memref<72x512xf32, #tpu.memory_space<vmem>>, vector<8x256xf32>
    tpu.vector_store %arg6[%c48_29, %c256_30], %50 {strides = array<i32>} : memref<72x512xf32, #tpu.memory_space<vmem>>, vector<8x256xf32>,
    %52 = vector.extract_strided_slice %30 {offsets = [0, 2, 1], sizes = [8, 16, 16], strides = [1, 1, 1]} : vector<8x18x18xf32> to vector<8x16x16xf32>
    %53 = vector.shape_cast %52 : vector<8x16x16xf32> to vector<8x256xf32>
    %c56_31 = arith.constant 56 : index
    %c256_32 = arith.constant 256 : index
    %54 = vector.load %arg6[%c56_31, %c256_32] : memref<72x512xf32, #tpu.memory_space<vmem>>, vector<8x256xf32>
    tpu.vector_store %arg6[%c56_31, %c256_32], %53 {strides = array<i32>} : memref<72x512xf32, #tpu.memory_space<vmem>>, vector<8x256xf32>,
    %55 = vector.extract_strided_slice %30 {offsets = [0, 2, 2], sizes = [8, 16, 16], strides = [1, 1, 1]} : vector<8x18x18xf32> to vector<8x16x16xf32>
    %56 = vector.shape_cast %55 : vector<8x16x16xf32> to vector<8x256xf32>
    %c64_33 = arith.constant 64 : index
    %c256_34 = arith.constant 256 : index
    %57 = vector.load %arg6[%c64_33, %c256_34] : memref<72x512xf32, #tpu.memory_space<vmem>>, vector<8x256xf32>
    tpu.vector_store %arg6[%c64_33, %c256_34], %56 {strides = array<i32>} : memref<72x512xf32, #tpu.memory_space<vmem>>, vector<8x256xf32>,
    %c0_35 = arith.constant 0 : index
    %c0_36 = arith.constant 0 : index
    %c0_37 = arith.constant 0 : index
    %58 = vector.load %arg3[%c0_35, %c0_36, %c0_37] : memref<1x8x72xf32, #tpu.memory_space<vmem>>, vector<1x8x72xf32>
    %59 = vector.shape_cast %58 : vector<1x8x72xf32> to vector<8x72xf32>
    %c0_38 = arith.constant 0 : index
    %c0_39 = arith.constant 0 : index
    %60 = vector.load %arg6[%c0_38, %c0_39] : memref<72x512xf32, #tpu.memory_space<vmem>>, vector<72x512xf32>
    %cst = arith.constant dense<0.000000e+00> : vector<8x512xf32>
    %61 = tpu.matmul %59, %60, %cst {dimension_numbers = #tpu.dot_dimension_numbers<[1], [0], [0], [1], [0, 0, 1, 1], [], []>} : vector<8x72xf32>, vector<72x512xf32>, vector<8x512xf32> -> vector<8x512xf32>
    %c0_40 = arith.constant 0 : index
    %c0_41 = arith.constant 0 : index
    %c0_42 = arith.constant 0 : index
    %62 = vector.load %arg4[%c0_40, %c0_41, %c0_42] : memref<1x8x1xf32, #tpu.memory_space<vmem>>, vector<1x8x1xf32>
    %63 = vector.shape_cast %62 : vector<1x8x1xf32> to vector<8x1xf32>
    %64 = vector.broadcast %63 : vector<8x1xf32> to vector<8x512xf32>
    %65 = arith.addf %61, %64 : vector<8x512xf32>
    %c0_43 = arith.constant 0 : index
    %c0_44 = arith.constant 0 : index
    %c0_45 = arith.constant 0 : index
    %66 = vector.load %arg5[%c0_43, %c0_44, %c0_45] : memref<1x8x512xf32, #tpu.memory_space<vmem>>, vector<1x8x512xf32>
    %67 = vector.shape_cast %66 : vector<1x8x512xf32> to vector<8x512xf32>
    %68 = vector.shape_cast %65 : vector<8x512xf32> to vector<1x8x512xf32>
    tpu.vector_store %arg5[%c0_43, %c0_44, %c0_45], %68 {strides = array<i32>} : memref<1x8x512xf32, #tpu.memory_space<vmem>>, vector<1x8x512xf32>,
    return
  }
  func.func @transform_0(%arg0: i32, %arg1: i32) -> (i32, i32, i32, i32, i32) {
    %c0_i32 = arith.constant 0 : i32
    %c0_i32_0 = arith.constant 0 : i32
    %c0_i32_1 = arith.constant 0 : i32
    %c0_i32_2 = arith.constant 0 : i32
    return %arg1, %arg0, %c0_i32, %c0_i32_0, %c0_i32_1 : i32, i32, i32, i32, i32
  }
  func.func @transform_1(%arg0: i32, %arg1: i32) -> (i32, i32, i32) {
    %c0_i32 = arith.constant 0 : i32
    %c0_i32_0 = arith.constant 0 : i32
    %c0_i32_1 = arith.constant 0 : i32
    return %arg0, %c0_i32, %c0_i32_0 : i32, i32, i32
  }
  func.func @transform_2(%arg0: i32, %arg1: i32) -> (i32, i32, i32) {
    %c0_i32 = arith.constant 0 : i32
    %c0_i32_0 = arith.constant 0 : i32
    %c0_i32_1 = arith.constant 0 : i32
    return %arg0, %c0_i32, %c0_i32_0 : i32, i32, i32
  }
  func.func @transform_3(%arg0: i32, %arg1: i32) -> (i32, i32, i32) {
    %c0_i32 = arith.constant 0 : i32
    %c0_i32_0 = arith.constant 0 : i32
    return %arg0, %c0_i32, %arg1 : i32, i32, i32
  }
}

</mosaic_0001>

<bundles_post_ra>
// kernel: tpu_custom_call.1
= control target key start
LH: loop header
LB: loop body
LE: loop exit
PB: predicated region body
PF: predicated region fallthrough
CT: control target
= control target key end

     0   :  { %8 = vsyncpa [#allocation5], 0  ;;  %s12641_s0 = inlined_call_operand.vmem [shape: f32[2,2,8,18,18], index: 0, kind: input, shape index: {}]   ;;  %s12642_s1 = inlined_call_operand.vmem [shape: f32[2,8,72], index: 1, kind: input, shape index: {}]   ;;  %s12643_s2 = inlined_call_operand.vmem [shape: f32[2,8,1], index: 2, kind: input, shape index: {}]   ;;  %s12644_s3 = inlined_call_operand.hbm [shape: f32[2,8,512], index: 3, kind: output, shape index: {}]  }
   0x1   :  { %10 = vsyncpa [#allocation5 + $0x1], 0  ;;  %s8740_s12 = smov 0   ;;  %s8742_s13 = smov 0  }
   0x2   :  { %s8744_s14 = smov 0   ;;  %s8746_s15 = smov 0  }
   0x3   :  { %s8748_s16 = smov 0   ;;  %s8750_s17 = smov 0  }
   0x4 LB: > { %s7858_s18 = sadd.s32 4294967295, %s8704_s17   ;;  %s7859_s19 = sadd.s32 4294967294, %s8704_s17   ;;  %s8704_s17 = sphi %s8750_s17, %s16_s17   ;;  %s8700_s16 = sphi %s8748_s16, %s12902_s16   ;;  %s8696_s15 = sphi %s8746_s15, %s12901_s15   ;;  %s8692_s14 = sphi %s8744_s14, %s12900_s14   ;;  %s8688_s13 = sphi %s8742_s13, %s12899_s13   ;;  %s8684_s12 = sphi %s8740_s12, %s12898_s12  }
   0x5   : > { %s28_s20 = sadd.s32 1, %s8700_s16  ;;  %s37_s21 = sadd.s32 1, %s8692_s14 }
   0x6   : > { %p30_p0 = scmp.ge.s32.totalorder %s28_s20, 2  ;;  %p44_p1 = scmp.ne.s32.totalorder %s8692_s14, %s8688_s13 }
   0x7   : > { %p45_p2 = scmp.eq.s32.totalorder %s8704_s17, 0  ;;  %p128_p3 = scmp.eq.s32.totalorder %s7858_s18, 1 }
   0x8   : > { %s12904_s20 = smov (%p30_p0, %s28_s20), 0  ;;  %p133_p6 = scmp.ne.s32.totalorder %s8688_s13, %s8684_s12 }
   0x9   : > { %p46_p4 = por %p45_p2, %p44_p1  ;;  %p8779_p5 = por %p128_p3, %p44_p1 }
   0xa   : > { %s33_s23 = ssub.s32 %s8700_s16, %s12904_s20  ;;  %p134_p8 = scmp.eq.s32.totalorder %s7859_s19, 1 }
   0xb   : > { %p35_p7 = scmp.eq.s32.totalorder %s33_s23, 0  ;;  %p7861_p10 = scmp.ge.s32.totalorder %s8704_s17, 2 }
   0xc   : > { %p8790_p9 = por %p134_p8, %p133_p6 }
   0xd   : > { %s8788_s24 = scalar_select %p35_p7, %s8692_s14, %s37_s21  }
   0xe   : > { %150 = sbr.rel (%p7861_p10) target bundleno = 50 (0x32), region = 16 }
  0x15   : > { %153 = sbr.rel (!%p46_p4) target bundleno = 50 (0x32), region = 20  ;;  %s155_s26 = sand.u32 (%p46_p4), 1, %s8692_s14  }
  0x16   : > { %s7932_s27 = smul.u32 (%p46_p4), 192, %s8700_s16 }
  0x17   : > { %s7931_s28 = smul.u32 (%p46_p4), 384, %s155_s26 }
  0x18   : > { %s8802_s4 = scalar_lea.vmem (%p46_p4), %s12641_s0, %s7932_s27 }
  0x19   : > { %v285_v0 = vld [vmem:[%s8802_s4] sm:$0xff] (%p46_p4)  ;;  %v287_v1 = vld [vmem:[%s8802_s4 + $0x8] sm:$0xff] (%p46_p4)  ;;  %v289_v2 = vld [vmem:[%s8802_s4 + $0x10] sm:$0xff] (%p46_p4)  ;;  %s8807_s5 = scalar_lea.vmem (%p46_p4), [#allocation3], %s7931_s28 }
  0x1a   : > { %286 = vst [vmem:[%s8807_s5] sm:$0xff] (%p46_p4), %v285_v0  ;;  %288 = vst [vmem:[%s8807_s5 + $0x8] sm:$0xff] (%p46_p4), %v287_v1  ;;  %v291_v3 = vld [vmem:[%s8802_s4 + $0x18] sm:$0xff] (%p46_p4)  ;;  %v293_v4 = vld [vmem:[%s8802_s4 + $0x20] sm:$0xff] (%p46_p4) }
  0x1b   : > { %290 = vst [vmem:[%s8807_s5 + $0x10] sm:$0xff] (%p46_p4), %v289_v2  ;;  %v295_v5 = vld [vmem:[%s8802_s4 + $0x28] sm:$0xff] (%p46_p4)  ;;  %292 = vst [vmem:[%s8807_s5 + $0x18] sm:$0xff] (%p46_p4), %v291_v3  ;;  %v297_v6 = vld [vmem:[%s8802_s4 + $0x30] sm:$0xff] (%p46_p4) }
  0x1c   : > { %294 = vst [vmem:[%s8807_s5 + $0x20] sm:$0xff] %v293_v4  ;;  %296 = vst [vmem:[%s8807_s5 + $0x28] sm:$0xff] %v295_v5  ;;  %v299_v7 = vld [vmem:[%s8802_s4 + $0x38] sm:$0xff]  ;;  %v301_v8 = vld [vmem:[%s8802_s4 + $0x40] sm:$0xff] }
  0x1d   : > { %298 = vst [vmem:[%s8807_s5 + $0x30] sm:$0xff] %v297_v6  ;;  %300 = vst [vmem:[%s8807_s5 + $0x38] sm:$0xff] %v299_v7  ;;  %v303_v9 = vld [vmem:[%s8802_s4 + $0x48] sm:$0xff]  ;;  %v305_v10 = vld [vmem:[%s8802_s4 + $0x50] sm:$0xff] }
  0x1e   : > { %302 = vst [vmem:[%s8807_s5 + $0x40] sm:$0xff] %v301_v8  ;;  %v307_v11 = vld [vmem:[%s8802_s4 + $0x58] sm:$0xff]  ;;  %304 = vst [vmem:[%s8807_s5 + $0x48] sm:$0xff] %v303_v9  ;;  %v309_v12 = vld [vmem:[%s8802_s4 + $0x60] sm:$0xff] }
  0x1f   : > { %306 = vst [vmem:[%s8807_s5 + $0x50] sm:$0xff] %v305_v10  ;;  %308 = vst [vmem:[%s8807_s5 + $0x58] sm:$0xff] %v307_v11  ;;  %v311_v13 = vld [vmem:[%s8802_s4 + $0x68] sm:$0xff]  ;;  %v313_v14 = vld [vmem:[%s8802_s4 + $0x70] sm:$0xff] }
  0x20   : > { %310 = vst [vmem:[%s8807_s5 + $0x60] sm:$0xff] %v309_v12  ;;  %312 = vst [vmem:[%s8807_s5 + $0x68] sm:$0xff] %v311_v13  ;;  %v315_v15 = vld [vmem:[%s8802_s4 + $0x78] sm:$0xff]  ;;  %v317_v16 = vld [vmem:[%s8802_s4 + $0x80] sm:$0xff] }
  0x21   : > { %314 = vst [vmem:[%s8807_s5 + $0x70] sm:$0xff] %v313_v14  ;;  %v319_v17 = vld [vmem:[%s8802_s4 + $0x88] sm:$0xff]  ;;  %316 = vst [vmem:[%s8807_s5 + $0x78] sm:$0xff] %v315_v15  ;;  %v321_v18 = vld [vmem:[%s8802_s4 + $0x90] sm:$0xff] }
  0x22   : > { %318 = vst [vmem:[%s8807_s5 + $0x80] sm:$0xff] %v317_v16  ;;  %320 = vst [vmem:[%s8807_s5 + $0x88] sm:$0xff] %v319_v17  ;;  %v323_v19 = vld [vmem:[%s8802_s4 + $0x98] sm:$0xff]  ;;  %v325_v20 = vld [vmem:[%s8802_s4 + $0xa0] sm:$0xff] }
  0x23   : > { %322 = vst [vmem:[%s8807_s5 + $0x90] sm:$0xff] %v321_v18  ;;  %324 = vst [vmem:[%s8807_s5 + $0x98] sm:$0xff] %v323_v19  ;;  %v327_v21 = vld [vmem:[%s8802_s4 + $0xa8] sm:$0xff]  ;;  %v329_v22 = vld [vmem:[%s8802_s4 + $0xb0] sm:$0xff] }
  0x24   : > { %326 = vst [vmem:[%s8807_s5 + $0xa0] sm:$0xff] %v325_v20  ;;  %v331_v23 = vld [vmem:[%s8802_s4 + $0xb8] sm:$0xff]  ;;  %328 = vst [vmem:[%s8807_s5 + $0xa8] sm:$0xff] %v327_v21  ;;  %v333_v24 = vld [vmem:[%s8802_s4 + $0x180] sm:$0xff] }
  0x25   : > { %330 = vst [vmem:[%s8807_s5 + $0xb0] sm:$0xff] %v329_v22  ;;  %332 = vst [vmem:[%s8807_s5 + $0xb8] sm:$0xff] %v331_v23  ;;  %v335_v25 = vld [vmem:[%s8802_s4 + $0x188] sm:$0xff]  ;;  %v337_v26 = vld [vmem:[%s8802_s4 + $0x190] sm:$0xff] }
  0x26   : > { %334 = vst [vmem:[%s8807_s5 + $0xc0] sm:$0xff] %v333_v24  ;;  %336 = vst [vmem:[%s8807_s5 + $0xc8] sm:$0xff] %v335_v25  ;;  %v339_v27 = vld [vmem:[%s8802_s4 + $0x198] sm:$0xff]  ;;  %v341_v28 = vld [vmem:[%s8802_s4 + $0x1a0] sm:$0xff] }
  0x27   : > { %338 = vst [vmem:[%s8807_s5 + $0xd0] sm:$0xff] %v337_v26  ;;  %v343_v29 = vld [vmem:[%s8802_s4 + $0x1a8] sm:$0xff]  ;;  %340 = vst [vmem:[%s8807_s5 + $0xd8] sm:$0xff] %v339_v27  ;;  %v345_v30 = vld [vmem:[%s8802_s4 + $0x1b0] sm:$0xff] }
  0x28   : > { %342 = vst [vmem:[%s8807_s5 + $0xe0] sm:$0xff] %v341_v28  ;;  %344 = vst [vmem:[%s8807_s5 + $0xe8] sm:$0xff] %v343_v29  ;;  %v347_v31 = vld [vmem:[%s8802_s4 + $0x1b8] sm:$0xff]  ;;  %v349_v32 = vld [vmem:[%s8802_s4 + $0x1c0] sm:$0xff] }
  0x29   : > { %346 = vst [vmem:[%s8807_s5 + $0xf0] sm:$0xff] %v345_v30  ;;  %348 = vst [vmem:[%s8807_s5 + $0xf8] sm:$0xff] %v347_v31  ;;  %v351_v33 = vld [vmem:[%s8802_s4 + $0x1c8] sm:$0xff]  ;;  %v353_v34 = vld [vmem:[%s8802_s4 + $0x1d0] sm:$0xff] }
  0x2a   : > { %350 = vst [vmem:[%s8807_s5 + $0x100] sm:$0xff] %v349_v32  ;;  %v355_v35 = vld [vmem:[%s8802_s4 + $0x1d8] sm:$0xff]  ;;  %352 = vst [vmem:[%s8807_s5 + $0x108] sm:$0xff] %v351_v33  ;;  %v357_v36 = vld [vmem:[%s8802_s4 + $0x1e0] sm:$0xff] }
  0x2b   : > { %354 = vst [vmem:[%s8807_s5 + $0x110] sm:$0xff] %v353_v34  ;;  %356 = vst [vmem:[%s8807_s5 + $0x118] sm:$0xff] %v355_v35  ;;  %v359_v37 = vld [vmem:[%s8802_s4 + $0x1e8] sm:$0xff]  ;;  %v361_v38 = vld [vmem:[%s8802_s4 + $0x1f0] sm:$0xff] }
  0x2c   : > { %358 = vst [vmem:[%s8807_s5 + $0x120] sm:$0xff] %v357_v36  ;;  %360 = vst [vmem:[%s8807_s5 + $0x128] sm:$0xff] %v359_v37  ;;  %v363_v39 = vld [vmem:[%s8802_s4 + $0x1f8] sm:$0xff]  ;;  %v365_v40 = vld [vmem:[%s8802_s4 + $0x200] sm:$0xff] }
  0x2d   : > { %362 = vst [vmem:[%s8807_s5 + $0x130] sm:$0xff] %v361_v38  ;;  %v367_v41 = vld [vmem:[%s8802_s4 + $0x208] sm:$0xff]  ;;  %364 = vst [vmem:[%s8807_s5 + $0x138] sm:$0xff] %v363_v39  ;;  %v369_v42 = vld [vmem:[%s8802_s4 + $0x210] sm:$0xff] }
  0x2e   : > { %366 = vst [vmem:[%s8807_s5 + $0x140] sm:$0xff] %v365_v40  ;;  %368 = vst [vmem:[%s8807_s5 + $0x148] sm:$0xff] %v367_v41  ;;  %v371_v43 = vld [vmem:[%s8802_s4 + $0x218] sm:$0xff]  ;;  %v373_v44 = vld [vmem:[%s8802_s4 + $0x220] sm:$0xff] }
  0x2f   : > { %370 = vst [vmem:[%s8807_s5 + $0x150] sm:$0xff] %v369_v42  ;;  %372 = vst [vmem:[%s8807_s5 + $0x158] sm:$0xff] %v371_v43  ;;  %v375_v45 = vld [vmem:[%s8802_s4 + $0x228] sm:$0xff]  ;;  %v377_v46 = vld [vmem:[%s8802_s4 + $0x230] sm:$0xff] }
  0x30   : > { %374 = vst [vmem:[%s8807_s5 + $0x160] sm:$0xff] %v373_v44  ;;  %v379_v47 = vld [vmem:[%s8802_s4 + $0x238] sm:$0xff]  ;;  %376 = vst [vmem:[%s8807_s5 + $0x168] sm:$0xff] %v375_v45 }
  0x31   : > { %378 = vst [vmem:[%s8807_s5 + $0x170] sm:$0xff] %v377_v46  ;;  %380 = vst [vmem:[%s8807_s5 + $0x178] sm:$0xff] %v379_v47 }
  0x32 PF: > { %p7863_p11 = scmp.ge.s32.totalorder %s8704_s17, 1  ;;  %p399_p12 = scmp.lt.s32.totalorder %s8704_s17, 3 }
  0x34   : > { %p400_p13 = pnand %p7863_p11, %p399_p12 }
  0x36   : > { %403 = sbr.rel (%p400_p13) target bundleno = 1836 (0x72c), region = 66 }
  0x3d   : > { %s8905_s6 = sand.u32 1, %s8688_s13   ;;  %v476_v48 = vlaneseq  ;;  %v8706_v49 = vmov 1983009808   ;;  %v8707_v51 = vmov 1934713408   ;;  %s8708_s9 = smov 127  }
  0x3e   : > { %s7933_s7 = smul.u32 384, %s8905_s6  ;;  %v474_v50 = vunpack.c.l.s4 %v8706_v49  ;;  %v538_v52 = vunpack.c.l.s4 %v8707_v51  ;;  %s8709_s10 = smov 48   ;;  %vm1630_vm0 = vcmask 1046528   ;;  %vm799_vm1 = vcmask 130048  }
  0x3f   : > { %v477_v53 = vshrl.u32 %v476_v48, 7  ;;  %s8710_s11 = smov 16   ;;  %s8711_s18 = smov 32   ;;  %vm801_vm2 = vcmask 261120   ;;  %vm803_vm3 = vcmask 392192   ;;  %vm805_vm4 = vcmask 523264  }
  0x40   : > { %v475_v54 = vunpack.c.0.s8 %v474_v50  ;;  %v539_v55 = vunpack.c.0.s8 %v538_v52  ;;  %s8908_s8 = scalar_lea.vmem [#allocation3], %s7933_s7  ;;  %s8712_s19 = smov 64   ;;  %vm807_vm5 = vcmask 654336   ;;  %vm809_vm6 = vcmask 785408  }
  0x41   : > { %v8911_v56 = vld [vmem:[%s8908_s8] sm:$0xff]  ;;  %v8914_v57 = vld [vmem:[%s8908_s8 + $0x8] sm:$0xff]  ;;  %v8917_v58 = vld [vmem:[%s8908_s8 + $0x18] sm:$0xff]  ;;  %s8713_s21 = smov 80   ;;  %s8714_s23 = smov 96   ;;  %vm811_vm7 = vcmask 916480  }
  0x42   : > { %838 = vrot.lane.b32.xlu1 %v8911_v56, %s8708_s9  ;;  %v8922_v59 = vld [vmem:[%s8908_s8 + $0x20] sm:$0xff]  ;;  %v8925_v60 = vld [vmem:[%s8908_s8 + $0x30] sm:$0xff]  ;;  %v8928_v61 = vld [vmem:[%s8908_s8 + $0x38] sm:$0xff]  ;;  %v8930_v62 = vsub.s32 %v475_v54, %v477_v53  ;;  %v8932_v63 = vsub.s32 %v539_v55, %v477_v53  ;;  %s8715_s26 = smov 112   ;;  %s8716_s27 = smov 126   ;;  %vm2815_vm8 = vcmask 1045504  }
  0x43   : > { %v8935_v0 = vld [vmem:[%s8908_s8 + $0x48] sm:$0xff]  ;;  %v8938_v1 = vld [vmem:[%s8908_s8 + $0x50] sm:$0xff]  ;;  %v8941_v2 = vld [vmem:[%s8908_s8 + $0x60] sm:$0xff]  ;;  %v471_v3 = vcombine.low %v8911_v56, %v8925_v60  ;;  %v607_v4 = vcombine.low %v8914_v57, %v8928_v61  ;;  %v472_v5 = vcombine.high %v8911_v56, %v8925_v60  ;;  %v608_v6 = vcombine.high %v8914_v57, %v8928_v61  ;;  %p438_p0 = scmp.lt.s32.totalorder %s8696_s15, 1 }
  0x44   : > { %v8952_v7 = vld [vmem:[%s8908_s8 + $0x68] sm:$0xff]  ;;  %v8955_v8 = vld [vmem:[%s8908_s8 + $0x78] sm:$0xff]  ;;  %v8958_v9 = vld [vmem:[%s8908_s8 + $0x80] sm:$0xff]  ;;  %v487_v10 = vcombine.low %v8917_v58, %v8935_v0  ;;  %v623_v11 = vcombine.low %v8922_v59, %v8938_v1  ;;  %v488_v12 = vcombine.high %v8917_v58, %v8935_v0  ;;  %v624_v13 = vcombine.high %v8922_v59, %v8938_v1 }
  0x45   : > { %v8969_v14 = vld [vmem:[%s8908_s8 + $0x90] sm:$0xff]  ;;  %v8972_v15 = vld [vmem:[%s8908_s8 + $0x98] sm:$0xff]  ;;  %v8975_v16 = vld [vmem:[%s8908_s8 + $0xa8] sm:$0xff]  ;;  %v479_v17 = vrot.slane %v471_v3, %v8930_v62  ;;  %v615_v18 = vrot.slane %v607_v4, %v8930_v62  ;;  %v8980_v19 = vrot.slane %v472_v5, %v8930_v62  ;;  %v8983_v20 = vrot.slane %v608_v6, %v8930_v62  ;;  %s439_s28 = scalar_select %p438_p0, %s8696_s15, 1 }
  0x46   : > { %v8986_v21 = vld [vmem:[%s8908_s8 + $0xb0] sm:$0xff]  ;;  %v495_v22 = vrot.slane %v487_v10, %v8930_v62  ;;  %v503_v23 = vcombine.low %v8941_v2, %v8969_v14  ;;  %v519_v24 = vcombine.low %v8955_v8, %v8975_v16  ;;  %v631_v25 = vrot.slane %v623_v11, %v8930_v62 }
  0x47   : > { %v639_v26 = vcombine.low %v8952_v7, %v8972_v15  ;;  %v655_v27 = vcombine.low %v8958_v9, %v8986_v21  ;;  %v502_v28 = vrot.slane %v488_v12, %v8930_v62  ;;  %v504_v29 = vcombine.high %v8941_v2, %v8969_v14  ;;  %s7865_s29 = sshll.u32 %s439_s28, 3 }
  0x48   : > { %v511_v30 = vrot.slane %v503_v23, %v8930_v62  ;;  %v527_v31 = vrot.slane %v519_v24, %v8930_v62  ;;  %v536_v32 = vcombine.high %v479_v17, %v495_v22  ;;  %v672_v33 = vcombine.high %v615_v18, %v631_v25  ;;  %s441_s5 = scalar_lea.vmem %s12642_s1, %s7865_s29 }
  0x49   : > { %v647_v34 = vrot.slane %v639_v26, %v8930_v62  ;;  %v663_v35 = vrot.slane %v655_v27, %v8930_v62  ;;  %v535_v36 = vcombine.low %v479_v17, %v495_v22  ;;  %v671_v37 = vcombine.low %v615_v18, %v631_v25 }
  0x4a   : > { %v550_v38 = vrot.slane %v536_v32, %v8932_v63  ;;  %v568_v39 = vcombine.high %v511_v30, %v527_v31  ;;  %v686_v40 = vrot.slane %v672_v33, %v8932_v63  ;;  %v567_v41 = vcombine.low %v511_v30, %v527_v31 }
  0x4b   : > { %v704_v42 = vcombine.high %v647_v34, %v663_v35  ;;  %v9008_v43 = vrot.slane %v535_v36, %v8932_v63  ;;  %v9011_v44 = vrot.slane %v671_v37, %v8932_v63  ;;  %v703_v45 = vcombine.low %v647_v34, %v663_v35 }
  0x4c   : > { %v582_v46 = vrot.slane %v568_v39, %v8932_v63  ;;  %v9015_v47 = vrot.slane %v567_v41, %v8932_v63  ;;  %v518_v48 = vrot.slane %v504_v29, %v8930_v62  ;;  %v520_v49 = vcombine.high %v8955_v8, %v8975_v16 }
  0x4d   : > { %v718_v50 = vrot.slane %v704_v42, %v8932_v63  ;;  %v9022_v51 = vrot.slane %v703_v45, %v8932_v63  ;;  %v551_v52 = vcombine.low %v8980_v19, %v502_v28  ;;  %v638_v53 = vrot.slane %v624_v13, %v8930_v62 }
  0x4e   : > { %v602_v54 = vcombine.high %v550_v38, %v582_v46  ;;  %v600_v55 = vcombine.high %v9008_v43, %v9015_v47  ;;  %v534_v4 = vrot.slane %v520_v49, %v8930_v62  ;;  %v640_v13 = vcombine.high %v8952_v7, %v8972_v15 }
  0x4f   : > { %v738_v5 = vcombine.high %v686_v40, %v718_v50  ;;  %v736_v10 = vcombine.high %v9011_v44, %v9022_v51  ;;  %v559_v11 = vrot.slane %v551_v52, %v8932_v63  ;;  %v656_v17 = vcombine.high %v8958_v9, %v8986_v21  ;;  %v449_v52 = vld [vmem:[%s8908_s8 + $0x10] sm:$0x3] }
  0x50   : > { %v583_v12 = vcombine.low %v518_v48, %v534_v4  ;;  %v687_v18 = vcombine.low %v8983_v20, %v638_v53  ;;  %v601_v24 = vcombine.low %v550_v38, %v582_v46  ;;  %v737_v25 = vcombine.low %v686_v40, %v718_v50 }
  0x51   : > { %v8012_v22 = vpack.i.bf16 %v738_v5, %v602_v54  ;;  %v8002_v23 = vpack.i.bf16 %v736_v10, %v600_v55  ;;  %v654_v27 = vrot.slane %v640_v13, %v8930_v62  ;;  %v670_v29 = vrot.slane %v656_v17, %v8930_v62  ;;  %v455_v54 = vld [vmem:[%s8908_s8 + $0x40] sm:$0x3] }
  0x52   : > { %v591_v26 = vrot.slane %v583_v12, %v8932_v63  ;;  %v8007_v30 = vpack.i.bf16 %v737_v25, %v601_v24  ;;  %v552_v31 = vcombine.high %v8980_v19, %v502_v28  ;;  %v584_v32 = vcombine.high %v518_v48, %v534_v4  ;;  %v458_v12 = vld [vmem:[%s8908_s8 + $0x58] sm:$0x3] }
  0x53   : > { %8013 = vrot.lane.b32.xlu1 %v8012_v22, %s8709_s10  ;;  %8003 = vrot.lane.b32.xlu0 %v8002_v23, %s8710_s11  ;;  %v695_v33 = vrot.slane %v687_v18, %v8932_v63  ;;  %v719_v34 = vcombine.low %v654_v27, %v670_v29  ;;  %v688_v35 = vcombine.high %v8983_v20, %v638_v53  ;;  %v1631_v42 = vrot.slane %v8911_v56, 1  ;;  %v452_v53 = vld [vmem:[%s8908_s8 + $0x28] sm:$0x3]  ;;  %v461_v23 = vld [vmem:[%s8908_s8 + $0x70] sm:$0x3] }
  0x54   : > { %v720_v36 = vcombine.high %v654_v27, %v670_v29  ;;  %v603_v37 = vcombine.low %v559_v11, %v591_v26  ;;  %v566_v38 = vrot.slane %v552_v31, %v8932_v63  ;;  %v598_v39 = vrot.slane %v584_v32, %v8932_v63  ;;  %v464_v29 = vld [vmem:[%s8908_s8 + $0x88] sm:$0x3] }
  0x55   : > { %v727_v40 = vrot.slane %v719_v34, %v8932_v63  ;;  %v702_v41 = vrot.slane %v688_v35, %v8932_v63  ;;  %v604_v28 = vcombine.high %v559_v11, %v591_v26  ;;  %v1632_v55 = vrot.slane %v8914_v57, 1 }
  0x56   : > { %v734_v19 = vrot.slane %v720_v36, %v8932_v63  ;;  %v605_v20 = vcombine.low %v566_v38, %v598_v39  ;;  %v606_v45 = vcombine.high %v566_v38, %v598_v39  ;;  %v1634_v17 = vrot.slane %v449_v52, 1  ;;  %v467_v38 = vld [vmem:[%s8908_s8 + $0xa0] sm:$0x3] }
  0x57   : > { %8008 = vrot.lane.b32.xlu0 %v8007_v30, %s8711_s18  ;;  %v739_v46 = vcombine.low %v695_v33, %v727_v40  ;;  %v740_v49 = vcombine.high %v695_v33, %v727_v40  ;;  %v9062_v13 = vsel %vm1630_vm0, %v1631_v42, %v1632_v55  ;;  %v1636_v18 = vrot.slane %v8917_v58, 1 }
  0x58   : > { %v741_v48 = vcombine.low %v702_v41, %v734_v19  ;;  %v742_v50 = vcombine.high %v702_v41, %v734_v19  ;;  %12723 = vst [vmem:[#allocation7_spill] sm:$0xff] %v9062_v13  ;;  %v1637_v22 = vrot.slane %v8922_v59, 1  ;;  %v1639_v24 = vrot.slane %v452_v53, 1 }
  0x59   : > { %v8017_v4 = vpack.i.bf16 %v739_v46, %v603_v37  ;;  %v8022_v10 = vpack.i.bf16 %v740_v49, %v604_v28  ;;  %v1641_v25 = vrot.slane %v8925_v60, 1  ;;  %v1642_v26 = vrot.slane %v8928_v61, 1  ;;  %v470_v28 = vld [vmem:[%s8908_s8 + $0xb8] sm:$0x3] }
  0x5a   : > { %v8027_v5 = vpack.i.bf16 %v741_v48, %v605_v20  ;;  %v8032_v11 = vpack.i.bf16 %v742_v50, %v606_v45  ;;  %v1644_v27 = vrot.slane %v455_v54, 1  ;;  %v9073_v30 = vsel %vm1630_vm0, %v1632_v55, %v1634_v17 }
  0x5b   : > { %8018 = vrot.lane.b32.xlu1 %v8017_v4, %s8712_s19  ;;  %8023 = vrot.lane.b32.xlu0 %v8022_v10, %s8713_s21  ;;  %12724 = vst [vmem:[#allocation8_spill] sm:$0xff] %v9073_v30  ;;  %v9076_v31 = vsel %vm1630_vm0, %v1636_v18, %v1637_v22  ;;  %v1646_v32 = vrot.slane %v8935_v0, 1  ;;  %v1647_v33 = vrot.slane %v8938_v1, 1  ;;  %v9081_v34 = vsel %vm1630_vm0, %v1637_v22, %v1639_v24 }
  0x5c   : > { %12725 = vst [vmem:[#allocation9_spill] sm:$0xff] %v9076_v31  ;;  %12726 = vst [vmem:[#allocation10_spill] sm:$0xff] %v9081_v34  ;;  %v9084_v35 = vsel %vm1630_vm0, %v1641_v25, %v1642_v26  ;;  %v9087_v36 = vsel %vm1630_vm0, %v1642_v26, %v1644_v27  ;;  %v1649_v37 = vrot.slane %v458_v12, 1  ;;  %v1651_v40 = vrot.slane %v8941_v2, 1 }
  0x5d   : > { %12727 = vst [vmem:[#allocation11_spill] sm:$0xff] %v9084_v35  ;;  %12728 = vst [vmem:[#allocation12_spill] sm:$0xff] %v9087_v36  ;;  %v9091_v39 = vsel %vm1630_vm0, %v1646_v32, %v1647_v33  ;;  %v1652_v41 = vrot.slane %v8952_v7, 1  ;;  %v1654_v19 = vrot.slane %v461_v23, 1  ;;  %v1656_v20 = vrot.slane %v8955_v8, 1 }
  0x5e   : > { %v9099_v42 = vsel %vm1630_vm0, %v1647_v33, %v1649_v37  ;;  %v1657_v45 = vrot.slane %v8958_v9, 1  ;;  %v1659_v46 = vrot.slane %v464_v29, 1  ;;  %v1661_v50 = vrot.slane %v8969_v14, 1 }
  0x5f   : > { %8028 = vrot.lane.b32.xlu1 %v8027_v5, %s8714_s23  ;;  %8033 = vrot.lane.b32.xlu0 %v8032_v11, %s8715_s26  ;;  %v9104_v48 = vsel %vm1630_vm0, %v1651_v40, %v1652_v41  ;;  %v9107_v49 = vsel %vm1630_vm0, %v1652_v41, %v1654_v19  ;;  %v1662_v52 = vrot.slane %v8972_v15, 1  ;;  %v1664_v55 = vrot.slane %v467_v38, 1 }
  0x60   : > { %v9112_v53 = vsel %vm1630_vm0, %v1656_v20, %v1657_v45  ;;  %v9115_v54 = vsel %vm1630_vm0, %v1657_v45, %v1659_v46  ;;  %v1666_v4 = vrot.slane %v8975_v16, 1  ;;  %v1667_v10 = vrot.slane %v8986_v21, 1 }
  0x61   : > { %v9119_v5 = vsel %vm1630_vm0, %v1661_v50, %v1662_v52  ;;  %v1669_v11 = vrot.slane %v470_v28, 1  ;;  %v1687_v12 = vcombine.low %v9062_v13, %v9084_v35  ;;  %v9129_v17 = vsel %vm1630_vm0, %v1662_v52, %v1664_v55 }
  0x62   : > { %v1703_v18 = vcombine.low %v9076_v31, %v9091_v39  ;;  %v1719_v22 = vcombine.low %v9104_v48, %v9119_v5  ;;  %v9136_v23 = vsel %vm1630_vm0, %v1666_v4, %v1667_v10  ;;  %v1823_v26 = vcombine.low %v9073_v30, %v9087_v36 }
  0x63   : > { %842 = vrot.lane.b32.xlu1 %v8917_v58, %s8708_s9  ;;  %840 = vrot.lane.b32.xlu0 %v8914_v57, %s8708_s9  ;;  %v9139_v24 = vsel %vm1630_vm0, %v1667_v10, %v1669_v11  ;;  %v9142_v25 = vrot.slane %v1687_v12, %v8930_v62  ;;  %v1735_v32 = vcombine.low %v9112_v53, %v9136_v23  ;;  %vm7588_vm9 = vcmask 588800  }
  0x64   : > { %v9147_v27 = vrot.slane %v1703_v18, %v8930_v62  ;;  %v9150_v29 = vrot.slane %v1719_v22, %v8930_v62  ;;  %v1839_v33 = vcombine.low %v9081_v34, %v9099_v42  ;;  %v9157_v37 = vrot.slane %v1823_v26, %v8930_v62 }
  0x65   : > { %v1855_v38 = vcombine.low %v9107_v49, %v9129_v17  ;;  %v1871_v40 = vcombine.low %v9115_v54, %v9139_v24  ;;  %v1743_v41 = vrot.slane %v1735_v32, %v8930_v62  ;;  %v1872_v22 = vcombine.high %v9115_v54, %v9139_v24 }
  0x66   : > { %v1751_v19 = vcombine.low %v9142_v25, %v9147_v27  ;;  %v1847_v28 = vrot.slane %v1839_v33, %v8930_v62  ;;  %v1752_v26 = vcombine.high %v9142_v25, %v9147_v27 }
  0x67   : > { %846 = vrot.lane.b32.xlu1 %v8925_v60, %s8708_s9  ;;  %844 = vrot.lane.b32.xlu0 %v8922_v59, %s8708_s9  ;;  %v1863_v20 = vrot.slane %v1855_v38, %v8930_v62  ;;  %v1879_v45 = vrot.slane %v1871_v40, %v8930_v62  ;;  %v1783_v46 = vcombine.low %v9150_v29, %v1743_v41 }
  0x68   : > { %v1887_v50 = vcombine.low %v9157_v37, %v1847_v28  ;;  %v9180_v55 = vrot.slane %v1751_v19, %v8932_v63  ;;  %v1784_v32 = vcombine.high %v9150_v29, %v1743_v41  ;;  %v1888_v33 = vcombine.high %v9157_v37, %v1847_v28 }
  0x69   : > { %v1919_v52 = vcombine.low %v1863_v20, %v1879_v45  ;;  %v9183_v4 = vrot.slane %v1783_v46, %v8932_v63  ;;  %v1886_v29 = vrot.slane %v1872_v22, %v8930_v62  ;;  %v1766_v37 = vrot.slane %v1752_v26, %v8932_v63 }
  0x6a   : > { %12729 = vst [vmem:[#allocation13_spill] sm:$0xff] %v9180_v55  ;;  %v9186_v10 = vrot.slane %v1887_v50, %v8932_v63  ;;  %v1798_v41 = vrot.slane %v1784_v32, %v8932_v63  ;;  %v1902_v28 = vrot.slane %v1888_v33, %v8932_v63 }
  0x6b   : > { %850 = vrot.lane.b32.xlu1 %v8935_v0, %s8708_s9  ;;  %848 = vrot.lane.b32.xlu0 %v8928_v61, %s8708_s9  ;;  %12730 = vst [vmem:[#allocation14_spill] sm:$0xff] %v9183_v4  ;;  %v9189_v11 = vrot.slane %v1919_v52, %v8932_v63 }
  0x6d   : > { %12731 = vst [vmem:[#allocation15_spill] sm:$0xff] %v9189_v11 }
  0x6f   : > { %854 = vrot.lane.b32.xlu1 %v8941_v2, %s8708_s9  ;;  %852 = vrot.lane.b32.xlu0 %v8938_v1, %s8708_s9 }
  0x73   : > { %858 = vrot.lane.b32.xlu1 %v8955_v8, %s8708_s9  ;;  %856 = vrot.lane.b32.xlu0 %v8952_v7, %s8708_s9 }
  0x77   : > { %862 = vrot.lane.b32.xlu1 %v8969_v14, %s8708_s9  ;;  %860 = vrot.lane.b32.xlu0 %v8958_v9, %s8708_s9 }
  0x7b   : > { %866 = vrot.lane.b32.xlu1 %v8975_v16, %s8708_s9  ;;  %864 = vrot.lane.b32.xlu0 %v8972_v15, %s8708_s9 }
  0x7f   : > { %1232 = vrot.lane.b32.xlu1 %v8914_v57, %s8716_s27  ;;  %868 = vrot.lane.b32.xlu0 %v8986_v21, %s8708_s9  ;;  %v1688_v57 = vcombine.high %v9062_v13, %v9084_v35 }
  0x81   : > { %v1702_v38 = vrot.slane %v1688_v57, %v8930_v62 }
  0x83   : > { %1236 = vrot.lane.b32.xlu1 %v8922_v59, %s8716_s27  ;;  %1230 = vrot.lane.b32.xlu0 %v8911_v56, %s8716_s27  ;;  %v1704_v59 = vcombine.high %v9076_v31, %v9091_v39  ;;  %v1720_v56 = vcombine.high %v9104_v48, %v9119_v5 }
  0x85   : > { %v1734_v40 = vrot.slane %v1720_v56, %v8930_v62  ;;  %v1817_v56 = vcombine.low %v1766_v37, %v1798_v41 }
  0x87   : > { %1240 = vrot.lane.b32.xlu1 %v8928_v61, %s8716_s27  ;;  %1234 = vrot.lane.b32.xlu0 %v8917_v58, %s8716_s27  ;;  %v1736_v61 = vcombine.high %v9112_v53, %v9136_v23  ;;  %v1824_v58 = vcombine.high %v9073_v30, %v9087_v36 }
  0x89   : > { %v1750_v19 = vrot.slane %v1736_v61, %v8930_v62  ;;  %v1838_v46 = vrot.slane %v1824_v58, %v8930_v62 }
  0x8b   : > { %1244 = vrot.lane.b32.xlu1 %v8938_v1, %s8716_s27  ;;  %1238 = vrot.lane.b32.xlu0 %v8925_v60, %s8716_s27  ;;  %v1840_v60 = vcombine.high %v9081_v34, %v9099_v42  ;;  %v1856_v1 = vcombine.high %v9107_v49, %v9129_v17  ;;  %v1799_v50 = vcombine.low %v1734_v40, %v1750_v19 }
  0x8c   : > { %v1800_v26 = vcombine.high %v1734_v40, %v1750_v19 }
  0x8d   : > { %v1854_v25 = vrot.slane %v1840_v60, %v8930_v62  ;;  %v1870_v27 = vrot.slane %v1856_v1, %v8930_v62  ;;  %v1807_v22 = vrot.slane %v1799_v50, %v8932_v63 }
  0x8e   : > { %v1814_v40 = vrot.slane %v1800_v26, %v8932_v63 }
  0x8f   : > { %1248 = vrot.lane.b32.xlu1 %v8952_v7, %s8716_s27  ;;  %1242 = vrot.lane.b32.xlu0 %v8935_v0, %s8716_s27  ;;  %v1920_v7 = vcombine.high %v1863_v20, %v1879_v45  ;;  %v1718_v0 = vrot.slane %v1704_v59, %v8930_v62  ;;  %v1903_v52 = vcombine.low %v1838_v46, %v1854_v25 }
  0x90   : > { %v1935_v57 = vcombine.low %v1870_v27, %v1886_v29  ;;  %v1818_v59 = vcombine.high %v1766_v37, %v1798_v41  ;;  %v1904_v32 = vcombine.high %v1838_v46, %v1854_v25 }
  0x91   : > { %v1934_v20 = vrot.slane %v1920_v7, %v8932_v63  ;;  %v1767_v45 = vcombine.low %v1702_v38, %v1718_v0  ;;  %v1768_v1 = vcombine.high %v1702_v38, %v1718_v0  ;;  %v1911_v33 = vrot.slane %v1903_v52, %v8932_v63 }
  0x92   : > { %v1943_v7 = vrot.slane %v1935_v57, %v8932_v63  ;;  %v1918_v19 = vrot.slane %v1904_v32, %v8932_v63 }
  0x93   : > { %1252 = vrot.lane.b32.xlu1 %v8958_v9, %s8716_s27  ;;  %1246 = vrot.lane.b32.xlu0 %v8941_v2, %s8716_s27  ;;  %v1816_v9 = vcombine.high %v9180_v55, %v9183_v4  ;;  %v1952_v2 = vcombine.high %v9186_v10, %v9189_v11  ;;  %v1954_v61 = vcombine.high %v1902_v28, %v1934_v20 }
  0x94   : > { %v1953_v58 = vcombine.low %v1902_v28, %v1934_v20  ;;  %v1775_v60 = vrot.slane %v1767_v45, %v8932_v63  ;;  %v1782_v38 = vrot.slane %v1768_v1, %v8932_v63  ;;  %v1955_v25 = vcombine.low %v1911_v33, %v1943_v7 }
  0x95   : > { %v8047_v37 = vpack.i.bf16 %v1954_v61, %v1818_v59 }
  0x96   : > { %v8042_v41 = vpack.i.bf16 %v1953_v58, %v1817_v56  ;;  %v1820_v0 = vcombine.high %v1775_v60, %v1807_v22  ;;  %v1821_v28 = vcombine.low %v1782_v38, %v1814_v40 }
  0x97   : > { %1256 = vrot.lane.b32.xlu1 %v8972_v15, %s8716_s27  ;;  %1250 = vrot.lane.b32.xlu0 %v8955_v8, %s8716_s27  ;;  %v1936_v15 = vcombine.high %v1870_v27, %v1886_v29  ;;  %v8037_v8 = vpack.i.bf16 %v1952_v2, %v1816_v9  ;;  %v1822_v27 = vcombine.high %v1782_v38, %v1814_v40 }
  0x99   : > { %v1950_v46 = vrot.slane %v1936_v15, %v8932_v63 }
  0x9b   : > { %1260 = vrot.lane.b32.xlu1 %v8986_v21, %s8716_s27  ;;  %1254 = vrot.lane.b32.xlu0 %v8969_v14, %s8716_s27  ;;  %v1956_v14 = vcombine.high %v1911_v33, %v1943_v7  ;;  %v1819_v21 = vcombine.low %v1775_v60, %v1807_v22  ;;  %v1958_v29 = vcombine.high %v1918_v19, %v1950_v46 }
  0x9c   : > { %v1957_v9 = vcombine.low %v1918_v19, %v1950_v46 }
  0x9d   : > { %v8057_v20 = vpack.i.bf16 %v1956_v14, %v1820_v0  ;;  %v8052_v45 = vpack.i.bf16 %v1955_v25, %v1819_v21 }
  0x9e   : > { %v8062_v50 = vpack.i.bf16 %v1957_v9, %v1821_v28 }
  0x9f   : > { %1258 = vrot.lane.b32.xlu0 %v8975_v16, %s8716_s27  ;;  %8038 = vrot.lane.b32.xlu1 %v8037_v8, %s8710_s11  ;;  %v8067_v16 = vpack.i.bf16 %v1958_v29, %v1822_v27 }
  0xa3   : > { %8048 = vrot.lane.b32.xlu1 %v8047_v37, %s8709_s10  ;;  %8043 = vrot.lane.b32.xlu0 %v8042_v41, %s8711_s18 }
  0xa7   : > { %8058 = vrot.lane.b32.xlu1 %v8057_v20, %s8713_s21  ;;  %8053 = vrot.lane.b32.xlu0 %v8052_v45, %s8712_s19 }
  0xab   : > { %8068 = vrot.lane.b32.xlu1 %v8067_v16, %s8715_s26  ;;  %8063 = vrot.lane.b32.xlu0 %v8062_v50, %s8714_s23 }
  0xaf   : > { %2033 = vrot.lane.b32.xlu1 %v9073_v30, %s8708_s9  ;;  %2031 = vrot.lane.b32.xlu0 %v9062_v13, %s8708_s9 }
  0xb3   : > { %2037 = vrot.lane.b32.xlu1 %v9081_v34, %s8708_s9  ;;  %2035 = vrot.lane.b32.xlu0 %v9076_v31, %s8708_s9 }
  0xb4   : > { %v839_v2 = vpop.permute.xlu1 %838 }
  0xb7   : > { %2041 = vrot.lane.b32.xlu1 %v9087_v36, %s8708_s9  ;;  %2039 = vrot.lane.b32.xlu0 %v9084_v35, %s8708_s9 }
  0xc5   : > { %v9308_v52 = vpop.permute.xlu0 %8003  ;;  %v9310_v57 = vpop.permute.xlu1 %8013 }
  0xc9   : > { %v9312_v59 = vpop.permute.xlu0 %8008 }
  0xcd   : > { %v9314_v56 = vpop.permute.xlu1 %8018  ;;  %v9316_v61 = vpop.permute.xlu0 %8023 }
  0xd1   : > { %v9318_v58 = vpop.permute.xlu1 %8028  ;;  %v9320_v60 = vpop.permute.xlu0 %8033 }
  0xd5   : > { %v843_v1 = vpop.permute.xlu1 %842  ;;  %v841_v22 = vpop.permute.xlu0 %840 }
  0xd9   : > { %v847_v26 = vpop.permute.xlu1 %846  ;;  %v845_v32 = vpop.permute.xlu0 %844 }
  0xda   : > { %v886_v0 = vcombine.low %v839_v2, %v847_v26  ;;  %v887_v46 = vcombine.high %v839_v2, %v847_v26 }
  0xdc   : > { %v894_v29 = vrot.slane %v886_v0, %v8930_v62  ;;  %v9325_v18 = vrot.slane %v887_v46, %v8930_v62 }
  0xdd   : > { %v851_v15 = vpop.permute.xlu1 %850  ;;  %v849_v8 = vpop.permute.xlu0 %848 }
  0xde   : > { %v902_v38 = vcombine.low %v843_v1, %v851_v15  ;;  %v903_v14 = vcombine.high %v843_v1, %v851_v15  ;;  %v1022_v28 = vcombine.low %v841_v22, %v849_v8  ;;  %v1023_v20 = vcombine.high %v841_v22, %v849_v8 }
  0xe0   : > { %v910_v21 = vrot.slane %v902_v38, %v8930_v62  ;;  %v9328_v3 = vrot.slane %v903_v14, %v8930_v62  ;;  %v1030_v22 = vrot.slane %v1022_v28, %v8930_v62 }
  0xe1   : > { %v855_v33 = vpop.permute.xlu1 %854  ;;  %v853_v7 = vpop.permute.xlu0 %852 }
  0xe2   : > { %v1038_v25 = vcombine.low %v845_v32, %v853_v7  ;;  %v1039_v16 = vcombine.high %v845_v32, %v853_v7  ;;  %v950_v2 = vcombine.low %v894_v29, %v910_v21  ;;  %v1037_v32 = vrot.slane %v1023_v20, %v8930_v62 }
  0xe4   : > { %v1046_v1 = vrot.slane %v1038_v25, %v8930_v62  ;;  %v1053_v46 = vrot.slane %v1039_v16, %v8930_v62 }
  0xe5   : > { %v859_v37 = vpop.permute.xlu1 %858  ;;  %v857_v41 = vpop.permute.xlu0 %856 }
  0xe6   : > { %v1086_v28 = vcombine.low %v1030_v22, %v1046_v1  ;;  %v1087_v6 = vcombine.high %v1030_v22, %v1046_v1  ;;  %v1102_v16 = vcombine.low %v1037_v32, %v1053_v46 }
  0xe9   : > { %v863_v40 = vpop.permute.xlu1 %862  ;;  %v861_v19 = vpop.permute.xlu0 %860 }
  0xea   : > { %v918_v27 = vcombine.low %v855_v33, %v863_v40  ;;  %v919_v26 = vcombine.high %v855_v33, %v863_v40  ;;  %v951_v33 = vcombine.high %v894_v29, %v910_v21 }
  0xec   : > { %v926_v15 = vrot.slane %v918_v27, %v8930_v62  ;;  %v933_v20 = vrot.slane %v919_v26, %v8930_v62  ;;  %v9367_v26 = vrot.slane %v1086_v28, %v8932_v63 }
  0xed   : > { %v867_v45 = vpop.permute.xlu1 %866  ;;  %v865_v9 = vpop.permute.xlu0 %864 }
  0xee   : > { %v934_v50 = vcombine.low %v859_v37, %v867_v45  ;;  %v935_v12 = vcombine.high %v859_v37, %v867_v45  ;;  %v1054_v7 = vcombine.low %v857_v41, %v865_v9  ;;  %v1055_v37 = vcombine.high %v857_v41, %v865_v9 }
  0xf0   : > { %v942_v38 = vrot.slane %v934_v50, %v8930_v62  ;;  %v949_v14 = vrot.slane %v935_v12, %v8930_v62  ;;  %v9340_v50 = vrot.slane %v950_v2, %v8932_v63  ;;  %v1062_v41 = vrot.slane %v1054_v7, %v8930_v62 }
  0xf1   : > { %v9335_v8 = vpop.permute.xlu1 %1232  ;;  %v869_v0 = vpop.permute.xlu0 %868  ;;  %v1069_v9 = vrot.slane %v1055_v37, %v8930_v62  ;;  %v1103_v37 = vcombine.high %v1037_v32, %v1053_v46 }
  0xf2   : > { %v982_v45 = vcombine.low %v926_v15, %v942_v38  ;;  %v983_v25 = vcombine.high %v926_v15, %v942_v38  ;;  %v1070_v40 = vcombine.low %v861_v19, %v869_v0  ;;  %v1071_v27 = vcombine.high %v861_v19, %v869_v0 }
  0xf3   : > { %v998_v2 = vcombine.low %v933_v20, %v949_v14  ;;  %v966_v15 = vcombine.low %v9325_v18, %v9328_v3  ;;  %v999_v32 = vcombine.high %v933_v20, %v949_v14  ;;  %v1117_v13 = vrot.slane %v1103_v37, %v8932_v63 }
  0xf4   : > { %v9344_v36 = vrot.slane %v982_v45, %v8932_v63  ;;  %v1078_v21 = vrot.slane %v1070_v40, %v8930_v62  ;;  %v1085_v19 = vrot.slane %v1071_v27, %v8930_v62  ;;  %v997_v1 = vrot.slane %v983_v25, %v8932_v63 }
  0xf5   : > { %v9348_v12 = vpop.permute.xlu1 %1236  ;;  %v9352_v29 = vpop.permute.xlu0 %1230  ;;  %v965_v45 = vrot.slane %v951_v33, %v8932_v63  ;;  %v1101_v40 = vrot.slane %v1087_v6, %v8932_v63  ;;  %v1006_v33 = vrot.slane %v998_v2, %v8932_v63  ;;  %v1110_v6 = vrot.slane %v1102_v16, %v8932_v63 }
  0xf6   : > { %v1118_v38 = vcombine.low %v1062_v41, %v1078_v21  ;;  %v1119_v22 = vcombine.high %v1062_v41, %v1078_v21  ;;  %v1134_v7 = vcombine.low %v1069_v9, %v1085_v19  ;;  %v1135_v0 = vcombine.high %v1069_v9, %v1085_v19 }
  0xf7   : > { %v1016_v46 = vcombine.low %v965_v45, %v997_v1  ;;  %v1015_v21 = vcombine.high %v9340_v50, %v9344_v36  ;;  %v974_v14 = vrot.slane %v966_v15, %v8932_v63  ;;  %v1017_v4 = vcombine.high %v965_v45, %v997_v1 }
  0xf8   : > { %v1133_v25 = vrot.slane %v1119_v22, %v8932_v63  ;;  %v9370_v35 = vrot.slane %v1118_v38, %v8932_v63  ;;  %v1142_v41 = vrot.slane %v1134_v7, %v8932_v63  ;;  %v967_v38 = vcombine.high %v9325_v18, %v9328_v3 }
  0xf9   : > { %v9361_v27 = vpop.permute.xlu1 %1240  ;;  %v9363_v34 = vpop.permute.xlu0 %1234  ;;  %v1149_v20 = vrot.slane %v1135_v0, %v8932_v63  ;;  %v1018_v28 = vcombine.low %v974_v14, %v1006_v33  ;;  %v1013_v3 = vrot.slane %v999_v32, %v8932_v63 }
  0xfa   : > { %v1152_v9 = vcombine.low %v1101_v40, %v1133_v25  ;;  %v1151_v19 = vcombine.high %v9367_v26, %v9370_v35  ;;  %v1154_v30 = vcombine.low %v1110_v6, %v1142_v41  ;;  %v1153_v31 = vcombine.high %v1101_v40, %v1133_v25 }
  0xfb   : > { %v981_v11 = vrot.slane %v967_v38, %v8932_v63  ;;  %v1019_v40 = vcombine.high %v974_v14, %v1006_v33  ;;  %v1157_v45 = vcombine.high %v1117_v13, %v1149_v20  ;;  %v1415_v33 = vcombine.high %v9335_v8, %v9361_v27 }
  0xfc   : > { %v8077_v16 = vpack.i.bf16 %v1152_v9, %v1016_v46  ;;  %v8072_v7 = vpack.i.bf16 %v1151_v19, %v1015_v21  ;;  %v8087_v55 = vpack.i.bf16 %v1154_v30, %v1018_v28  ;;  %v8082_v0 = vpack.i.bf16 %v1153_v31, %v1017_v4 }
  0xfd   : > { %v1245_v2 = vpop.permute.xlu1 %1244  ;;  %v1239_v22 = vpop.permute.xlu0 %1238  ;;  %v1156_v46 = vcombine.low %v1117_v13, %v1149_v20  ;;  %v1155_v9 = vcombine.high %v1110_v6, %v1142_v41  ;;  %v1020_v37 = vcombine.low %v981_v11, %v1013_v3  ;;  %v1021_v30 = vcombine.high %v981_v11, %v1013_v3 }
  0xfe   : > { %8078 = vrot.lane.b32.xlu0 %v8077_v16, %s8711_s18  ;;  %8073 = vrot.lane.b32.xlu1 %v8072_v7, %s8710_s11  ;;  %v1430_v32 = vcombine.low %v9348_v12, %v1245_v2  ;;  %v1414_v31 = vcombine.low %v9335_v8, %v9361_v27  ;;  %v1431_v6 = vcombine.high %v9348_v12, %v1245_v2 }
  0xff   : > { %v8097_v19 = vpack.i.bf16 %v1156_v46, %v1020_v37  ;;  %v8092_v1 = vpack.i.bf16 %v1155_v9, %v1019_v40  ;;  %v8102_v41 = vpack.i.bf16 %v1157_v45, %v1021_v30  ;;  %v1278_v14 = vcombine.low %v9352_v29, %v1239_v22 }
 0x100   : > { %v1438_v13 = vrot.slane %v1430_v32, %v8930_v62  ;;  %v1422_v11 = vrot.slane %v1414_v31, %v8930_v62  ;;  %v1279_v20 = vcombine.high %v9352_v29, %v1239_v22  ;;  %v9408_v12 = vrot.slane %v1415_v33, %v8930_v62 }
 0x101   : > { %v1249_v18 = vpop.permute.xlu1 %1248  ;;  %v1243_v15 = vpop.permute.xlu0 %1242  ;;  %v9411_v2 = vrot.slane %v1431_v6, %v8930_v62  ;;  %v1286_v22 = vrot.slane %v1278_v14, %v8930_v62 }
 0x102   : > { %8088 = vrot.lane.b32.xlu0 %v8087_v55, %s8712_s19  ;;  %8083 = vrot.lane.b32.xlu1 %v8082_v0, %s8709_s10  ;;  %v1294_v28 = vcombine.low %v9363_v34, %v1243_v15  ;;  %v1295_v3 = vcombine.high %v9363_v34, %v1243_v15  ;;  %v1478_v0 = vcombine.low %v1422_v11, %v1438_v13 }
 0x103   : > { %v1293_v34 = vrot.slane %v1279_v20, %v8930_v62  ;;  %v1479_v30 = vcombine.high %v1422_v11, %v1438_v13 }
 0x104   : > { %v1302_v46 = vrot.slane %v1294_v28, %v8930_v62 }
 0x105   : > { %v1253_v25 = vpop.permute.xlu1 %1252  ;;  %v1247_v21 = vpop.permute.xlu0 %1246 }
 0x106   : > { %8098 = vrot.lane.b32.xlu0 %v8097_v19, %s8714_s23  ;;  %8093 = vrot.lane.b32.xlu1 %v8092_v1, %s8713_s21  ;;  %v1309_v19 = vrot.slane %v1295_v3, %v8930_v62  ;;  %v1343_v33 = vcombine.high %v1286_v22, %v1302_v46 }
 0x108   : > { %v1358_v11 = vcombine.low %v1293_v34, %v1309_v19 }
 0x109   : > { %v1257_v55 = vpop.permute.xlu1 %1256  ;;  %v1251_v4 = vpop.permute.xlu0 %1250 }
 0x10a   : > { %v1446_v38 = vcombine.low %v1249_v18, %v1257_v55  ;;  %8103 = vrot.lane.b32.xlu1 %v8102_v41, %s8715_s26  ;;  %v1447_v9 = vcombine.high %v1249_v18, %v1257_v55  ;;  %v9421_v55 = vrot.slane %v1478_v0, %v8932_v63  ;;  %v1342_v41 = vcombine.low %v1286_v22, %v1302_v46 }
 0x10b   : > { %v1359_v0 = vcombine.high %v1293_v34, %v1309_v19 }
 0x10c   : > { %v1454_v37 = vrot.slane %v1446_v38, %v8930_v62  ;;  %v1461_v6 = vrot.slane %v1447_v9, %v8930_v62  ;;  %v1357_v9 = vrot.slane %v1343_v33, %v8932_v63  ;;  %v9440_v22 = vrot.slane %v1342_v41, %v8932_v63 }
 0x10d   : > { %v1261_v16 = vpop.permute.xlu1 %1260  ;;  %v1255_v7 = vpop.permute.xlu0 %1254  ;;  %v1495_v41 = vcombine.high %v9408_v12, %v9411_v2 }
 0x10e   : > { %v1462_v8 = vcombine.low %v1253_v25, %v1261_v16  ;;  %v1463_v27 = vcombine.high %v1253_v25, %v1261_v16  ;;  %v1310_v15 = vcombine.low %v1247_v21, %v1255_v7  ;;  %v1311_v40 = vcombine.high %v1247_v21, %v1255_v7 }
 0x10f   : > { %v1494_v7 = vcombine.low %v9408_v12, %v9411_v2  ;;  %v1509_v12 = vrot.slane %v1495_v41, %v8932_v63 }
 0x110   : > { %v1470_v29 = vrot.slane %v1462_v8, %v8930_v62  ;;  %v1477_v1 = vrot.slane %v1463_v27, %v8930_v62  ;;  %v1318_v21 = vrot.slane %v1310_v15, %v8930_v62  ;;  %v1325_v38 = vrot.slane %v1311_v40, %v8930_v62 }
 0x111   : > { %v1259_v25 = vpop.permute.xlu0 %1258 }
 0x112   : > { %v1510_v45 = vcombine.low %v1454_v37, %v1470_v29  ;;  %v1511_v32 = vcombine.high %v1454_v37, %v1470_v29  ;;  %v1326_v31 = vcombine.low %v1251_v4, %v1259_v25  ;;  %v1327_v18 = vcombine.high %v1251_v4, %v1259_v25 }
 0x113   : > { %v1526_v4 = vcombine.low %v1461_v6, %v1477_v1  ;;  %v1493_v37 = vrot.slane %v1479_v30, %v8932_v63  ;;  %v1527_v25 = vcombine.high %v1461_v6, %v1477_v1  ;;  %v1502_v1 = vrot.slane %v1494_v7, %v8932_v63 }
 0x114   : > { %v9425_v28 = vrot.slane %v1510_v45, %v8932_v63  ;;  %v1334_v14 = vrot.slane %v1326_v31, %v8930_v62  ;;  %v1341_v13 = vrot.slane %v1327_v18, %v8930_v62  ;;  %v1525_v20 = vrot.slane %v1511_v32, %v8932_v63 }
 0x115   : > { %v1366_v32 = vrot.slane %v1358_v11, %v8932_v63  ;;  %v1534_v34 = vrot.slane %v1526_v4, %v8932_v63 }
 0x116   : > { %v1542_v16 = vcombine.low %v9421_v55, %v9425_v28  ;;  %v1374_v3 = vcombine.low %v1318_v21, %v1334_v14  ;;  %v1375_v8 = vcombine.high %v1318_v21, %v1334_v14  ;;  %v1390_v27 = vcombine.low %v1325_v38, %v1341_v13 }
 0x117   : > { %v1391_v46 = vcombine.high %v1325_v38, %v1341_v13  ;;  %v1544_v45 = vcombine.low %v1493_v37, %v1525_v20  ;;  %v1543_v31 = vcombine.high %v9421_v55, %v9425_v28  ;;  %v1373_v13 = vrot.slane %v1359_v0, %v8932_v63 }
 0x118   : > { %v1389_v29 = vrot.slane %v1375_v8, %v8932_v63  ;;  %v9443_v15 = vrot.slane %v1374_v3, %v8932_v63  ;;  %v1398_v40 = vrot.slane %v1390_v27, %v8932_v63  ;;  %v1546_v11 = vcombine.low %v1502_v1, %v1534_v34 }
 0x119   : > { %v1405_v33 = vrot.slane %v1391_v46, %v8932_v63  ;;  %v1545_v4 = vcombine.high %v1493_v37, %v1525_v20  ;;  %v1541_v3 = vrot.slane %v1527_v25, %v8932_v63  ;;  %v1547_v0 = vcombine.high %v1502_v1, %v1534_v34 }
 0x11a   : > { %v1408_v19 = vcombine.low %v1357_v9, %v1389_v29  ;;  %v1407_v30 = vcombine.high %v9440_v22, %v9443_v15  ;;  %v1406_v18 = vcombine.low %v9440_v22, %v9443_v15  ;;  %v1410_v38 = vcombine.low %v1366_v32, %v1398_v40 }
 0x11b   : > { %v1409_v14 = vcombine.high %v1357_v9, %v1389_v29  ;;  %v1412_v8 = vcombine.low %v1373_v13, %v1405_v33  ;;  %v1411_v27 = vcombine.high %v1366_v32, %v1398_v40  ;;  %v1548_v46 = vcombine.low %v1509_v12, %v1541_v3  ;;  %v9488_v40 = vpop.permute.xlu1 %8038  ;;  %v9492_v32 = vpop.permute.xlu0 %8043 }
 0x11c   : > { %v8112_v6 = vpack.i.bf16 %v1544_v45, %v1408_v19  ;;  %v8107_v21 = vpack.i.bf16 %v1543_v31, %v1407_v30  ;;  %v8122_v2 = vpack.i.bf16 %v1546_v11, %v1410_v38  ;;  %v1413_v45 = vcombine.high %v1373_v13, %v1405_v33 }
 0x11d   : > { %v8117_v7 = vpack.i.bf16 %v1545_v4, %v1409_v14  ;;  %v8132_v9 = vpack.i.bf16 %v1548_v46, %v1412_v8  ;;  %v8127_v29 = vpack.i.bf16 %v1547_v0, %v1411_v27  ;;  %v1549_v20 = vcombine.high %v1509_v12, %v1541_v3 }
 0x11e   : > { %8113 = vrot.lane.b32.xlu1 %v8112_v6, %s8711_s18  ;;  %8108 = vrot.lane.b32.xlu0 %v8107_v21, %s8710_s11  ;;  %v8006_v14 = vunpack.i.h.bf16 %v9308_v52  ;;  %v8005_v13 = vunpack.i.l.bf16 %v9308_v52  ;;  %v8011_v11 = vunpack.i.h.bf16 %v9312_v59  ;;  %v8010_v4 = vunpack.i.l.bf16 %v9312_v59 }
 0x11f   : > { %v8137_v37 = vpack.i.bf16 %v1549_v20, %v1413_v45  ;;  %v9490_v25 = vpop.permute.xlu1 %8048  ;;  %v9496_v19 = vpop.permute.xlu0 %8053  ;;  %v8016_v3 = vunpack.i.h.bf16 %v9310_v57  ;;  %v8015_v12 = vunpack.i.l.bf16 %v9310_v57  ;;  %v12733_v8 = vcombine.low %v9008_v43, %v9015_v47 }
 0x120   : > { %v8021_v57 = vunpack.i.h.bf16 %v9314_v56  ;;  %v12734_v20 = vcombine.low %v9340_v50, %v9344_v36 }
 0x121   : > { %v800_v52 = vsel %vm799_vm1, %v12733_v8, %v8005_v13 }
 0x122   : > { %8123 = vrot.lane.b32.xlu1 %v8122_v2, %s8712_s19  ;;  %8118 = vrot.lane.b32.xlu0 %v8117_v7, %s8709_s10  ;;  %v12732_v2 = vcombine.low %v9011_v44, %v9022_v51  ;;  %v802_v27 = vsel %vm801_vm2, %v800_v52, %v8010_v4  ;;  %v8020_v44 = vunpack.i.l.bf16 %v9314_v56  ;;  %v8026_v56 = vunpack.i.h.bf16 %v9316_v61 }
 0x123   : > { %v9494_v34 = vpop.permute.xlu1 %8058  ;;  %v9500_v31 = vpop.permute.xlu0 %8063  ;;  %v804_v51 = vsel %vm803_vm3, %v802_v27, %v8015_v12  ;;  %v8025_v12 = vunpack.i.l.bf16 %v9316_v61 }
 0x124   : > { %v813_v7 = vsel %vm799_vm1, %v12732_v2, %v8006_v14  ;;  %v12735_v14 = vcombine.low %v9367_v26, %v9370_v35  ;;  %v806_v36 = vsel %vm805_vm4, %v804_v51, %v8020_v44 }
 0x125   : > { %v814_v59 = vsel %vm801_vm2, %v813_v7, %v8011_v11 }
 0x126   : > { %8133 = vrot.lane.b32.xlu1 %v8132_v9, %s8714_s23  ;;  %8128 = vrot.lane.b32.xlu0 %v8127_v29, %s8713_s21  ;;  %v815_v47 = vsel %vm803_vm3, %v814_v59, %v8016_v3 }
 0x127   : > { %v9498_v30 = vpop.permute.xlu1 %8068  ;;  %v9504_v1 = vpop.permute.xlu0 %2031  ;;  %v816_v3 = vsel %vm805_vm4, %v815_v47, %v8021_v57 }
 0x128   : > { %v817_v61 = vsel %vm807_vm5, %v816_v3, %v8026_v56 }
 0x12a   : > { %2045 = vrot.lane.b32.xlu1 %v9099_v42, %s8708_s9  ;;  %8138 = vrot.lane.b32.xlu0 %v8137_v37, %s8715_s26 }
 0x12b   : > { %v9502_v41 = vpop.permute.xlu1 %2033  ;;  %v9508_v6 = vpop.permute.xlu0 %2035 }
 0x12e   : > { %2049 = vrot.lane.b32.xlu1 %v9107_v49, %s8708_s9  ;;  %2043 = vrot.lane.b32.xlu0 %v9091_v39, %s8708_s9 }
 0x12f   : > { %v9506_v33 = vpop.permute.xlu1 %2037  ;;  %v9512_v38 = vpop.permute.xlu0 %2039 }
 0x132   : > { %2053 = vrot.lane.b32.xlu1 %v9115_v54, %s8708_s9  ;;  %2047 = vrot.lane.b32.xlu0 %v9104_v48, %s8708_s9 }
 0x133   : > { %v9510_v21 = vpop.permute.xlu1 %2041 }
 0x136   : > { %2057 = vrot.lane.b32.xlu1 %v9129_v17, %s8708_s9  ;;  %2051 = vrot.lane.b32.xlu0 %v9112_v53, %s8708_s9 }
 0x13a   : > { %2061 = vrot.lane.b32.xlu1 %v9139_v24, %s8708_s9  ;;  %2055 = vrot.lane.b32.xlu0 %v9119_v5, %s8708_s9 }
 0x13e   : > { %2059 = vrot.lane.b32.xlu0 %v9136_v23, %s8708_s9 }
 0x170   : > { %v8074_v46 = vpop.permute.xlu1 %8073  ;;  %v8079_v0 = vpop.permute.xlu0 %8078 }
 0x171   : > { %v8076_v9 = vunpack.i.h.bf16 %v8074_v46  ;;  %v8075_v29 = vunpack.i.l.bf16 %v8074_v46  ;;  %v8081_v45 = vunpack.i.h.bf16 %v8079_v0  ;;  %v8080_v43 = vunpack.i.l.bf16 %v8079_v0 }
 0x172   : > { %v808_v0 = vsel %vm807_vm5, %v806_v36, %v8025_v12 }
 0x173   : > { %v1214_v37 = vsel %vm799_vm1, %v12734_v20, %v8075_v29  ;;  %v1221_v13 = vsel %vm799_vm1, %v12735_v14, %v8076_v9  ;;  %v8031_v9 = vunpack.i.h.bf16 %v9318_v58  ;;  %v8030_v29 = vunpack.i.l.bf16 %v9318_v58 }
 0x174   : > { %v8084_v11 = vpop.permute.xlu1 %8083  ;;  %v8089_v4 = vpop.permute.xlu0 %8088  ;;  %v1222_v50 = vsel %vm801_vm2, %v1221_v13, %v8081_v45  ;;  %v1215_v8 = vsel %vm801_vm2, %v1214_v37, %v8080_v43  ;;  %v8036_v20 = vunpack.i.h.bf16 %v9320_v60  ;;  %v8035_v37 = vunpack.i.l.bf16 %v9320_v60 }
 0x175   : > { %v8086_v2 = vunpack.i.h.bf16 %v8084_v11  ;;  %v8085_v7 = vunpack.i.l.bf16 %v8084_v11  ;;  %v8091_v35 = vunpack.i.h.bf16 %v8089_v4  ;;  %v8090_v26 = vunpack.i.l.bf16 %v8089_v4 }
 0x176   : > { %v818_v56 = vsel %vm809_vm6, %v817_v61, %v8031_v9  ;;  %v12738_v9 = vld [vmem:[#allocation13_spill] sm:$0xff] }
 0x177   : > { %v1216_v52 = vsel %vm803_vm3, %v1215_v8, %v8085_v7  ;;  %v1223_v27 = vsel %vm803_vm3, %v1222_v50, %v8086_v2  ;;  %v810_v2 = vsel %vm809_vm6, %v808_v0, %v8030_v29  ;;  %v819_v3 = vsel %vm811_vm7, %v818_v56, %v8036_v20  ;;  %v12739_v29 = vld [vmem:[#allocation14_spill] sm:$0xff] }
 0x178   : > { %v8099_v59 = vpop.permute.xlu0 %8098  ;;  %v8094_v46 = vpop.permute.xlu1 %8093  ;;  %v1217_v51 = vsel %vm805_vm4, %v1216_v52, %v8090_v26  ;;  %v1224_v47 = vsel %vm805_vm4, %v1223_v27, %v8091_v35  ;;  %v812_v36 = vsel %vm811_vm7, %v810_v2, %v8035_v37  ;;  %v8041_v26 = vunpack.i.h.bf16 %v9488_v40 }
 0x179   : > { %v8096_v57 = vunpack.i.h.bf16 %v8094_v46  ;;  %v8095_v44 = vunpack.i.l.bf16 %v8094_v46  ;;  %v8101_v45 = vunpack.i.h.bf16 %v8099_v59  ;;  %v8100_v43 = vunpack.i.l.bf16 %v8099_v59  ;;  %v12736_v46 = vld [vmem:[#allocation15_spill] sm:$0xff] }
 0x17a   : > { %v8040_v52 = vunpack.i.l.bf16 %v9488_v40  ;;  %v8046_v27 = vunpack.i.h.bf16 %v9492_v32  ;;  %v8045_v59 = vunpack.i.l.bf16 %v9492_v32  ;;  %v12737_v61 = vcombine.low %v9186_v10, %v12736_v46 }
 0x17b   : > { %v1225_v14 = vsel %vm807_vm5, %v1224_v47, %v8096_v57  ;;  %v1218_v13 = vsel %vm807_vm5, %v1217_v51, %v8095_v44  ;;  %v12740_v57 = vcombine.low %v12738_v9, %v12739_v29  ;;  %v8051_v51 = vunpack.i.h.bf16 %v9490_v25 }
 0x17c   : > { %v8104_v11 = vpop.permute.xlu1 %8103  ;;  %v1226_v12 = vsel %vm809_vm6, %v1225_v14, %v8101_v45  ;;  %v1219_v7 = vsel %vm809_vm6, %v1218_v13, %v8100_v43  ;;  %v2022_v0 = vsel %vm799_vm1, %v12737_v61, %v8041_v26  ;;  %v8050_v45 = vunpack.i.l.bf16 %v9490_v25 }
 0x17d   : > { %v8106_v4 = vunpack.i.h.bf16 %v8104_v11  ;;  %v8105_v58 = vunpack.i.l.bf16 %v8104_v11  ;;  %v2015_v44 = vsel %vm799_vm1, %v12740_v57, %v8040_v52  ;;  %v2023_v40 = vsel %vm801_vm2, %v2022_v0, %v8046_v27 }
 0x17e   : > { %v2016_v43 = vsel %vm801_vm2, %v2015_v44, %v8045_v59  ;;  %v8056_v20 = vunpack.i.h.bf16 %v9496_v19  ;;  %v8055_v10 = vunpack.i.l.bf16 %v9496_v19  ;;  %v2024_v11 = vsel %vm803_vm3, %v2023_v40, %v8051_v51 }
 0x17f   : > { %v1227_v60 = vsel %vm811_vm7, %v1226_v12, %v8106_v4  ;;  %v1220_v50 = vsel %vm811_vm7, %v1219_v7, %v8105_v58  ;;  %v2017_v13 = vsel %vm803_vm3, %v2016_v43, %v8050_v45  ;;  %v8061_v19 = vunpack.i.h.bf16 %v9494_v34 }
 0x180   : > { %v7899_v8 = vpack.c.bf16 %v1227_v60, %v819_v3  ;;  %v7901_v35 = vpack.c.bf16 %v1220_v50, %v812_v36  ;;  %v8060_v12 = vunpack.i.l.bf16 %v9494_v34  ;;  %v2018_v3 = vsel %vm805_vm4, %v2017_v13, %v8055_v10 }
 0x181   : > { %v2025_v60 = vsel %vm805_vm4, %v2024_v11, %v8056_v20  ;;  %v8066_v34 = vunpack.i.h.bf16 %v9500_v31  ;;  %v8071_v57 = vunpack.i.h.bf16 %v9498_v30  ;;  %v8070_v44 = vunpack.i.l.bf16 %v9498_v30 }
 0x182   : > { %7900 = vmatprep.subr.bf16.mxu0 %v7899_v8  ;;  %v8065_v8 = vunpack.i.l.bf16 %v9500_v31  ;;  %v2026_v59 = vsel %vm807_vm5, %v2025_v60, %v8061_v19  ;;  %v2019_v46 = vsel %vm807_vm5, %v2018_v3, %v8060_v12 }
 0x183   : > { %7902 = vmatpush1.bf16.msra.mxu0 %v7901_v35  ;;  %v2027_v43 = vsel %vm809_vm6, %v2026_v59, %v8066_v34 }
 0x184   : > { %v2028_v30 = vsel %vm811_vm7, %v2027_v43, %v8071_v57 }
 0x190   : > { %v8114_v47 = vpop.permute.xlu1 %8113  ;;  %v8109_v32 = vpop.permute.xlu0 %8108 }
 0x191   : > { %v8111_v37 = vunpack.i.h.bf16 %v8109_v32  ;;  %v8110_v14 = vunpack.i.l.bf16 %v8109_v32  ;;  %v8116_v4 = vunpack.i.h.bf16 %v8114_v47  ;;  %v8115_v58 = vunpack.i.l.bf16 %v8114_v47 }
 0x192   : > { %v2020_v47 = vsel %vm809_vm6, %v2019_v46, %v8065_v8 }
 0x193   : > { %v1613_v25 = vsel %vm799_vm1, %v1542_v16, %v8111_v37  ;;  %v1606_v56 = vsel %vm799_vm1, %v1406_v18, %v8110_v14  ;;  %v2021_v11 = vsel %vm811_vm7, %v2020_v47, %v8070_v44 }
 0x194   : > { %v8124_v2 = vpop.permute.xlu1 %8123  ;;  %v8119_v7 = vpop.permute.xlu0 %8118  ;;  %v1607_v16 = vsel %vm801_vm2, %v1606_v56, %v8115_v58  ;;  %v1614_v22 = vsel %vm801_vm2, %v1613_v25, %v8116_v4 }
 0x195   : > { %v8121_v36 = vunpack.i.h.bf16 %v8119_v7  ;;  %v8120_v50 = vunpack.i.l.bf16 %v8119_v7  ;;  %v8126_v55 = vunpack.i.h.bf16 %v8124_v2  ;;  %v8125_v28 = vunpack.i.l.bf16 %v8124_v2 }
 0x196   : > { %v2215_v7 = vcombine.low %v9502_v41, %v9510_v21 }
 0x197   : > { %v1608_v15 = vsel %vm803_vm3, %v1607_v16, %v8120_v50  ;;  %v1615_v18 = vsel %vm803_vm3, %v1614_v22, %v8121_v36  ;;  %v2216_v36 = vcombine.high %v9502_v41, %v9510_v21  ;;  %v2079_v50 = vcombine.low %v9504_v1, %v9512_v38 }
 0x198   : > { %v8134_v35 = vpop.permute.xlu1 %8133  ;;  %v8129_v26 = vpop.permute.xlu0 %8128  ;;  %v1609_v9 = vsel %vm805_vm4, %v1608_v15, %v8125_v28  ;;  %v1616_v29 = vsel %vm805_vm4, %v1615_v18, %v8126_v55  ;;  %v2223_v22 = vrot.slane %v2215_v7, %v8930_v62  ;;  %v2080_v15 = vcombine.high %v9504_v1, %v9512_v38 }
 0x199   : > { %v8131_v52 = vunpack.i.h.bf16 %v8129_v26  ;;  %v8130_v27 = vunpack.i.l.bf16 %v8129_v26  ;;  %v8136_v61 = vunpack.i.h.bf16 %v8134_v35  ;;  %v8135_v0 = vunpack.i.l.bf16 %v8134_v35 }
 0x19a   : > { %v9637_v26 = vrot.slane %v2216_v36, %v8930_v62 }
 0x19b   : > { %v1610_v31 = vsel %vm807_vm5, %v1609_v9, %v8130_v27  ;;  %v1617_v51 = vsel %vm807_vm5, %v1616_v29, %v8131_v52  ;;  %v2087_v52 = vrot.slane %v2079_v50, %v8930_v62 }
 0x19c   : > { %v2046_v45 = vpop.permute.xlu1 %2045  ;;  %v8139_v40 = vpop.permute.xlu0 %8138  ;;  %v1618_v10 = vsel %vm809_vm6, %v1617_v51, %v8136_v61  ;;  %v1611_v37 = vsel %vm809_vm6, %v1610_v31, %v8135_v0 }
 0x19d   : > { %v8141_v32 = vunpack.i.h.bf16 %v8139_v40  ;;  %v8140_v20 = vunpack.i.l.bf16 %v8139_v40  ;;  %v2231_v2 = vcombine.low %v9506_v33, %v2046_v45  ;;  %v2232_v18 = vcombine.high %v9506_v33, %v2046_v45 }
 0x19e   : > { %v2094_v33 = vrot.slane %v2080_v15, %v8930_v62 }
 0x19f   : > { %v1619_v14 = vsel %vm811_vm7, %v1618_v10, %v8141_v32  ;;  %v1612_v13 = vsel %vm811_vm7, %v1611_v37, %v8140_v20  ;;  %v2239_v55 = vrot.slane %v2231_v2, %v8930_v62  ;;  %v2246_v38 = vrot.slane %v2232_v18, %v8930_v62 }
 0x1a0   : > { %v2050_v4 = vpop.permute.xlu1 %2049  ;;  %v2044_v58 = vpop.permute.xlu0 %2043  ;;  %v7903_v25 = vpack.c.bf16 %v2028_v30, %v1619_v14  ;;  %v7905_v56 = vpack.c.bf16 %v2021_v11, %v1612_v13 }
 0x1a1   : > { %v2095_v28 = vcombine.low %v9508_v6, %v2044_v58  ;;  %v2096_v35 = vcombine.high %v9508_v6, %v2044_v58  ;;  %v2279_v27 = vcombine.low %v2223_v22, %v2239_v55  ;;  %v2280_v51 = vcombine.high %v2223_v22, %v2239_v55 }
 0x1a2   : > { %7904 = vmatprep.subr.bf16.mxu0 %v7903_v25 }
 0x1a3   : > { %7906 = vmatpush1.bf16.msra.mxu0 %v7905_v56  ;;  %v2103_v59 = vrot.slane %v2095_v28, %v8930_v62  ;;  %v2110_v29 = vrot.slane %v2096_v35, %v8930_v62  ;;  %v9648_v43 = vrot.slane %v2279_v27, %v8932_v63  ;;  %v2295_v56 = vcombine.low %v9637_v26, %v2246_v38 }
 0x1a4   : > { %v2054_v19 = vpop.permute.xlu1 %2053  ;;  %v2048_v12 = vpop.permute.xlu0 %2047  ;;  %v2294_v36 = vrot.slane %v2280_v51, %v8932_v63 }
 0x1a5   : > { %12741 = vst [vmem:[#allocation15_spill] sm:$0xff] %v9648_v43  ;;  %v2143_v47 = vcombine.low %v2087_v52, %v2103_v59  ;;  %v2144_v32 = vcombine.high %v2087_v52, %v2103_v59  ;;  %v2159_v11 = vcombine.low %v2094_v33, %v2110_v29  ;;  %v2160_v7 = vcombine.high %v2094_v33, %v2110_v29 }
 0x1a6   : > { %v2296_v52 = vcombine.high %v9637_v26, %v2246_v38  ;;  %v2303_v27 = vrot.slane %v2295_v56, %v8932_v63  ;;  %v8597_v56 = vld [vmem:[%s8908_s8 + $0x28] sm:$0x3] }
 0x1a7   : > { %v9666_v55 = vrot.slane %v2143_v47, %v8932_v63  ;;  %v2167_v18 = vrot.slane %v2159_v11, %v8932_v63  ;;  %v12748_v11 = vld [vmem:[#allocation11_spill] sm:$0xff] }
 0x1a8   : > { %v2058_v3 = vpop.permute.xlu1 %2057  ;;  %v2052_v60 = vpop.permute.xlu0 %2051  ;;  %v2310_v26 = vrot.slane %v2296_v52, %v8932_v63 }
 0x1a9   : > { %v2247_v16 = vcombine.low %v2050_v4, %v2058_v3  ;;  %v2248_v46 = vcombine.high %v2050_v4, %v2058_v3  ;;  %12743 = vst [vmem:[#allocation14_spill] sm:$0xff] %v9666_v55 }
 0x1ab   : > { %v2255_v61 = vrot.slane %v2247_v16, %v8930_v62  ;;  %v2262_v20 = vrot.slane %v2248_v46, %v8930_v62 }
 0x1ac   : > { %v2062_v34 = vpop.permute.xlu1 %2061  ;;  %v2056_v8 = vpop.permute.xlu0 %2055 }
 0x1ad   : > { %v2263_v41 = vcombine.low %v2054_v19, %v2062_v34  ;;  %v2264_v21 = vcombine.high %v2054_v19, %v2062_v34  ;;  %v2111_v6 = vcombine.low %v2048_v12, %v2056_v8  ;;  %v2112_v0 = vcombine.high %v2048_v12, %v2056_v8 }
 0x1af   : > { %v2271_v1 = vrot.slane %v2263_v41, %v8930_v62  ;;  %v2278_v57 = vrot.slane %v2264_v21, %v8930_v62  ;;  %v2119_v37 = vrot.slane %v2111_v6, %v8930_v62  ;;  %v2126_v14 = vrot.slane %v2112_v0, %v8930_v62 }
 0x1b0   : > { %v2060_v9 = vpop.permute.xlu0 %2059  ;;  %v2174_v6 = vrot.slane %v2160_v7, %v8932_v63  ;;  %v8599_v7 = vld [vmem:[%s8908_s8 + $0x58] sm:$0x3] }
 0x1b1   : > { %v2311_v44 = vcombine.low %v2255_v61, %v2271_v1  ;;  %v2312_v31 = vcombine.high %v2255_v61, %v2271_v1  ;;  %v2127_v45 = vcombine.low %v2052_v60, %v2060_v9  ;;  %v2128_v40 = vcombine.high %v2052_v60, %v2060_v9 }
 0x1b2   : > { %v2327_v4 = vcombine.low %v2262_v20, %v2278_v57  ;;  %v2158_v60 = vrot.slane %v2144_v32, %v8932_v63  ;;  %v2328_v22 = vcombine.high %v2262_v20, %v2278_v57 }
 0x1b3   : > { %v9652_v10 = vrot.slane %v2311_v44, %v8932_v63  ;;  %v2135_v30 = vrot.slane %v2127_v45, %v8930_v62  ;;  %v2142_v13 = vrot.slane %v2128_v40, %v8930_v62  ;;  %v2326_v58 = vrot.slane %v2312_v31, %v8932_v63 }
 0x1b4   : > { %v2335_v34 = vrot.slane %v2327_v4, %v8932_v63  ;;  %v2342_v29 = vrot.slane %v2328_v22, %v8932_v63  ;;  %v12749_v4 = vld [vmem:[#allocation10_spill] sm:$0xff] }
 0x1b5   : > { %12742 = vst [vmem:[#allocation13_spill] sm:$0xff] %v9652_v10  ;;  %v2175_v19 = vcombine.low %v2119_v37, %v2135_v30  ;;  %v2176_v12 = vcombine.high %v2119_v37, %v2135_v30  ;;  %v2191_v2 = vcombine.low %v2126_v14, %v2142_v13  ;;  %v2192_v3 = vcombine.high %v2126_v14, %v2142_v13  ;;  %v12745_v14 = vld [vmem:[#allocation7_spill] sm:$0xff]  ;;  %v12746_v30 = vld [vmem:[#allocation9_spill] sm:$0xff]  ;;  %v12747_v13 = vld [vmem:[#allocation8_spill] sm:$0xff] }
 0x1b6   : > { %v2345_v15 = vcombine.low %v2294_v36, %v2326_v58  ;;  %v2344_v41 = vcombine.high %v9648_v43, %v9652_v10  ;;  %v2347_v0 = vcombine.low %v2303_v27, %v2335_v34  ;;  %v2346_v9 = vcombine.high %v2294_v36, %v2326_v58  ;;  %v12750_v58 = vld [vmem:[#allocation12_spill] sm:$0xff]  ;;  %v8601_v22 = vld [vmem:[%s8908_s8 + $0x18] sm:$0xff] }
 0x1b7   : > { %v2190_v50 = vrot.slane %v2176_v12, %v8932_v63  ;;  %v9669_v28 = vrot.slane %v2175_v19, %v8932_v63  ;;  %v2199_v16 = vrot.slane %v2191_v2, %v8932_v63  ;;  %v2206_v59 = vrot.slane %v2192_v3, %v8932_v63  ;;  %v8598_v12 = vld [vmem:[%s8908_s8 + $0x40] sm:$0x3] }
 0x1b8   : > { %v2349_v51 = vcombine.low %v2310_v26, %v2342_v29  ;;  %v2348_v45 = vcombine.high %v2303_v27, %v2335_v34  ;;  %v2350_v20 = vcombine.high %v2310_v26, %v2342_v29  ;;  %v2824_v19 = vrot.slane %v8597_v56, 2  ;;  %v8605_v27 = vld [vmem:[%s8908_s8 + $0x48] sm:$0xff]  ;;  %v8610_v26 = vld [vmem:[%s8908_s8 + $0x80] sm:$0xff] }
 0x1b9   : > { %12744 = vst [vmem:[#allocation16_spill] sm:$0xff] %v9669_v28  ;;  %v2209_v8 = vcombine.low %v2158_v60, %v2190_v50  ;;  %v2208_v35 = vcombine.high %v9666_v55, %v9669_v28  ;;  %v2211_v1 = vcombine.low %v2167_v18, %v2199_v16  ;;  %v2210_v33 = vcombine.high %v2158_v60, %v2190_v50  ;;  %v8600_v50 = vld [vmem:[%s8908_s8 + $0x8] sm:$0xff] }
 0x1ba   : > { %v2213_v44 = vcombine.low %v2174_v6, %v2206_v59  ;;  %v2212_v31 = vcombine.high %v2167_v18, %v2199_v16  ;;  %v2214_v32 = vcombine.high %v2174_v6, %v2206_v59  ;;  %v2829_v2 = vrot.slane %v8598_v12, 2  ;;  %v8602_v18 = vld [vmem:[%s8908_s8 + $0x20] sm:$0xff]  ;;  %v8608_v6 = vld [vmem:[%s8908_s8 + $0x68] sm:$0xff] }
 0x1bb   : > { %v8147_v46 = vpack.i.bf16 %v2345_v15, %v2209_v8  ;;  %v8142_v61 = vpack.i.bf16 %v2344_v41, %v2208_v35  ;;  %v8157_v38 = vpack.i.bf16 %v2347_v0, %v2211_v1  ;;  %v8152_v57 = vpack.i.bf16 %v2346_v9, %v2210_v33  ;;  %v8603_v8 = vld [vmem:[%s8908_s8 + $0x30] sm:$0xff]  ;;  %v8604_v41 = vld [vmem:[%s8908_s8 + $0x38] sm:$0xff]  ;;  %v8607_v1 = vld [vmem:[%s8908_s8 + $0x60] sm:$0xff] }
 0x1bc   : > { %v8167_v40 = vpack.i.bf16 %v2349_v51, %v2213_v44  ;;  %v8162_v47 = vpack.i.bf16 %v2348_v45, %v2212_v31  ;;  %v8172_v37 = vpack.i.bf16 %v2350_v20, %v2214_v32  ;;  %v2834_v3 = vrot.slane %v8599_v7, 2  ;;  %v8609_v9 = vld [vmem:[%s8908_s8 + $0x78] sm:$0xff]  ;;  %v8611_v31 = vld [vmem:[%s8908_s8 + $0x90] sm:$0xff] }
 0x1bd   : > { %8148 = vrot.lane.b32.xlu1 %v8147_v46, %s8711_s18  ;;  %8143 = vrot.lane.b32.xlu0 %v8142_v61, %s8710_s11  ;;  %v2817_v16 = vrot.slane %v8600_v50, 2  ;;  %v2821_v15 = vrot.slane %v8601_v22, 2  ;;  %v2822_v34 = vrot.slane %v8602_v18, 2  ;;  %v2826_v35 = vrot.slane %v8603_v8, 2  ;;  %v8606_v46 = vld [vmem:[%s8908_s8 + $0x50] sm:$0xff]  ;;  %v8612_v45 = vld [vmem:[%s8908_s8 + $0x98] sm:$0xff] }
 0x1be   : > { %v2827_v52 = vrot.slane %v8604_v41, 2  ;;  %v2831_v59 = vrot.slane %v8605_v27, 2  ;;  %v2832_v61 = vrot.slane %v8606_v46, 2  ;;  %v2836_v33 = vrot.slane %v8607_v1, 2  ;;  %v8614_v20 = vld [vmem:[%s8908_s8 + $0xb0] sm:$0xff] }
 0x1bf   : > { %v2837_v0 = vrot.slane %v8608_v6, 2  ;;  %v2841_v29 = vrot.slane %v8609_v9, 2  ;;  %v2846_v51 = vrot.slane %v8611_v31, 2  ;;  %v9776_v7 = vsel %vm2815_vm8, %v2821_v15, %v2822_v34 }
 0x1c0   : > { %v9779_v50 = vsel %vm2815_vm8, %v2822_v34, %v2824_v19  ;;  %v9782_v22 = vsel %vm2815_vm8, %v2826_v35, %v2827_v52  ;;  %v9785_v18 = vsel %vm2815_vm8, %v2827_v52, %v2829_v2  ;;  %v9788_v8 = vsel %vm2815_vm8, %v2831_v59, %v2832_v61 }
 0x1c1   : > { %8158 = vrot.lane.b32.xlu1 %v8157_v38, %s8712_s19  ;;  %8153 = vrot.lane.b32.xlu0 %v8152_v57, %s8709_s10  ;;  %v2842_v38 = vrot.slane %v8610_v26, 2  ;;  %v9798_v15 = vsel %vm2815_vm8, %v2836_v33, %v2837_v0  ;;  %v2888_v59 = vcombine.low %v9776_v7, %v9788_v8 }
 0x1c3   : > { %v9801_v19 = vsel %vm2815_vm8, %v2841_v29, %v2842_v38 }
 0x1c5   : > { %8168 = vrot.lane.b32.xlu1 %v8167_v40, %s8714_s23  ;;  %8163 = vrot.lane.b32.xlu0 %v8162_v47, %s8713_s21  ;;  %v2847_v40 = vrot.slane %v8612_v45, 2  ;;  %v8613_v47 = vld [vmem:[%s8908_s8 + $0xa8] sm:$0xff] }
 0x1c6   : > { %v2851_v32 = vrot.slane %v8613_v47, 2 }
 0x1c7   : > { %v9804_v34 = vsel %vm2815_vm8, %v2846_v51, %v2847_v40 }
 0x1c8   : > { %v2904_v46 = vcombine.low %v9798_v15, %v9804_v34 }
 0x1c9   : > { %2423 = vrot.lane.b32.xlu1 %v12745_v14, %s8716_s27  ;;  %8173 = vrot.lane.b32.xlu0 %v8172_v37, %s8715_s26  ;;  %v2852_v37 = vrot.slane %v8614_v20, 2  ;;  %v8615_v14 = vld [vmem:[%s8908_s8 + $0x70] sm:$0x3] }
 0x1ca   : > { %v2912_v31 = vrot.slane %v2904_v46, %v8930_v62 }
 0x1cb   : > { %v9807_v2 = vsel %vm2815_vm8, %v2851_v32, %v2852_v37 }
 0x1cd   : > { %2427 = vrot.lane.b32.xlu1 %v12746_v30, %s8716_s27  ;;  %2425 = vrot.lane.b32.xlu0 %v12747_v13, %s8716_s27  ;;  %v2839_v30 = vrot.slane %v8615_v14, 2  ;;  %v8616_v13 = vld [vmem:[%s8908_s8 + $0x88] sm:$0x3] }
 0x1cf   : > { %v9810_v35 = vsel %vm2815_vm8, %v2837_v0, %v2839_v30 }
 0x1d1   : > { %2431 = vrot.lane.b32.xlu1 %v12748_v11, %s8716_s27  ;;  %2429 = vrot.lane.b32.xlu0 %v12749_v4, %s8716_s27  ;;  %v2844_v11 = vrot.slane %v8616_v13, 2  ;;  %v8617_v4 = vld [vmem:[%s8908_s8 + $0xa0] sm:$0x3] }
 0x1d5   : > { %2435 = vrot.lane.b32.xlu1 %v9091_v39, %s8716_s27  ;;  %2433 = vrot.lane.b32.xlu0 %v12750_v58, %s8716_s27  ;;  %v2849_v58 = vrot.slane %v8617_v4, 2 }
 0x1d7   : > { %v9816_v41 = vsel %vm2815_vm8, %v2847_v40, %v2849_v58 }
 0x1d8   : > { %v3040_v9 = vcombine.low %v9810_v35, %v9816_v41 }
 0x1d9   : > { %2439 = vrot.lane.b32.xlu1 %v9104_v48, %s8716_s27  ;;  %2437 = vrot.lane.b32.xlu0 %v9099_v42, %s8716_s27 }
 0x1da   : > { %v3048_v20 = vrot.slane %v3040_v9, %v8930_v62 }
 0x1dd   : > { %2443 = vrot.lane.b32.xlu1 %v9112_v53, %s8716_s27  ;;  %2441 = vrot.lane.b32.xlu0 %v9107_v49, %s8716_s27 }
 0x1e1   : > { %2447 = vrot.lane.b32.xlu1 %v9119_v5, %s8716_s27  ;;  %2445 = vrot.lane.b32.xlu0 %v9115_v54, %s8716_s27  ;;  %v8595_v5 = vld [vmem:[%s8908_s8] sm:$0xff] }
 0x1e5   : > { %2451 = vrot.lane.b32.xlu1 %v9136_v23, %s8716_s27  ;;  %2449 = vrot.lane.b32.xlu0 %v9129_v17, %s8716_s27  ;;  %v2816_v17 = vrot.slane %v8595_v5, 2  ;;  %v8596_v23 = vld [vmem:[%s8908_s8 + $0x10] sm:$0x3]  ;;  %v8618_v5 = vld [vmem:[%s8908_s8 + $0xb8] sm:$0x3] }
 0x1e7   : > { %v9770_v56 = vsel %vm2815_vm8, %v2816_v17, %v2817_v16  ;;  %v9791_v17 = vsel %vm2815_vm8, %v2832_v61, %v2834_v3  ;;  %v9813_v3 = vsel %vm2815_vm8, %v2842_v38, %v2844_v11  ;;  %v2920_v61 = vcombine.low %v9801_v19, %v9807_v2 }
 0x1e8   : > { %v2872_v27 = vcombine.low %v9770_v56, %v9782_v22  ;;  %v3024_v0 = vcombine.low %v9779_v50, %v9791_v17  ;;  %v2896_v38 = vrot.slane %v2888_v59, %v8930_v62  ;;  %v2873_v46 = vcombine.high %v9770_v56, %v9782_v22 }
 0x1e9   : > { %2453 = vrot.lane.b32.xlu0 %v9139_v24, %s8716_s27  ;;  %v2819_v24 = vrot.slane %v8596_v23, 2  ;;  %v2854_v23 = vrot.slane %v8618_v5, 2  ;;  %v2928_v51 = vrot.slane %v2920_v61, %v8930_v62 }
 0x1ea   : > { %v2880_v26 = vrot.slane %v2872_v27, %v8930_v62  ;;  %v3032_v32 = vrot.slane %v3024_v0, %v8930_v62  ;;  %v2889_v0 = vcombine.high %v9776_v7, %v9788_v8 }
 0x1eb   : > { %v9773_v12 = vsel %vm2815_vm8, %v2817_v16, %v2819_v24  ;;  %v9819_v52 = vsel %vm2815_vm8, %v2852_v37, %v2854_v23  ;;  %v2968_v30 = vcombine.low %v2912_v31, %v2928_v51  ;;  %v2969_v23 = vcombine.high %v2912_v31, %v2928_v51 }
 0x1ec   : > { %v3008_v6 = vcombine.low %v9773_v12, %v9785_v18  ;;  %v3056_v29 = vcombine.low %v9813_v3, %v9819_v52  ;;  %v2936_v14 = vcombine.low %v2880_v26, %v2896_v38  ;;  %v2937_v13 = vcombine.high %v2880_v26, %v2896_v38 }
 0x1ed   : > { %v9865_v9 = vrot.slane %v2968_v30, %v8932_v63  ;;  %v2905_v26 = vcombine.high %v9798_v15, %v9804_v34  ;;  %v2921_v38 = vcombine.high %v9801_v19, %v9807_v2 }
 0x1ee   : > { %v3016_v47 = vrot.slane %v3008_v6, %v8930_v62  ;;  %v3064_v37 = vrot.slane %v3056_v29, %v8930_v62  ;;  %v9860_v6 = vrot.slane %v2936_v14, %v8932_v63  ;;  %v9868_v29 = vrot.slane %v2937_v13, %v8932_v63 }
 0x1ef   : > { %v9892_v13 = vrot.slane %v2873_v46, %v8930_v62  ;;  %v9908_v25 = vrot.slane %v2905_v26, %v8930_v62  ;;  %v9911_v21 = vrot.slane %v2921_v38, %v8930_v62 }
 0x1f0   : > { %v3072_v58 = vcombine.low %v3016_v47, %v3032_v32  ;;  %v3104_v5 = vcombine.low %v3048_v20, %v3064_v37  ;;  %v3073_v27 = vcombine.high %v3016_v47, %v3032_v32  ;;  %v3105_v59 = vcombine.high %v3048_v20, %v3064_v37 }
 0x1f1   : > { %v9883_v37 = vrot.slane %v2969_v23, %v8932_v63 }
 0x1f2   : > { %v9877_v32 = vrot.slane %v3072_v58, %v8932_v63  ;;  %v9880_v20 = vrot.slane %v3104_v5, %v8932_v63  ;;  %v9886_v14 = vrot.slane %v3073_v27, %v8932_v63  ;;  %v9889_v30 = vrot.slane %v3105_v59, %v8932_v63 }
 0x1f3   : > { %v9902_v27 = vrot.slane %v2889_v0, %v8930_v62 }
 0x22f   : > { %v9725_v39 = vpop.permute.xlu1 %8148  ;;  %v9727_v42 = vpop.permute.xlu0 %8143 }
 0x233   : > { %v9729_v48 = vpop.permute.xlu1 %8158  ;;  %v9731_v49 = vpop.permute.xlu0 %8153 }
 0x234   : > { %12751 = vst [vmem:[#allocation7_spill] sm:$0xff] %v9729_v48  ;;  %12752 = vst [vmem:[#allocation9_spill] sm:$0xff] %v9731_v49 }
 0x237   : > { %v9733_v53 = vpop.permute.xlu1 %8168  ;;  %v9735_v54 = vpop.permute.xlu0 %8163 }
 0x238   : > { %12753 = vst [vmem:[#allocation8_spill] sm:$0xff] %v9733_v53  ;;  %12754 = vst [vmem:[#allocation11_spill] sm:$0xff] %v9735_v54 }
 0x23b   : > { %v9742_v60 = vpop.permute.xlu1 %2423  ;;  %v9744_v36 = vpop.permute.xlu0 %8173 }
 0x23c   : > { %12755 = vst [vmem:[#allocation10_spill] sm:$0xff] %v9744_v36 }
 0x23f   : > { %v9757_v57 = vpop.permute.xlu1 %2427  ;;  %v9759_v44 = vpop.permute.xlu0 %2425 }
 0x243   : > { %v9793_v24 = vpop.permute.xlu1 %2431  ;;  %v9795_v16 = vpop.permute.xlu0 %2429 }
 0x244   : > { %v2471_v31 = vcombine.low %v9742_v60, %v9793_v24  ;;  %v2472_v58 = vcombine.high %v9742_v60, %v9793_v24 }
 0x246   : > { %v2479_v60 = vrot.slane %v2471_v31, %v8930_v62  ;;  %v9925_v31 = vrot.slane %v2472_v58, %v8930_v62 }
 0x247   : > { %v9829_v1 = vpop.permute.xlu1 %2435  ;;  %v9831_v33 = vpop.permute.xlu0 %2433 }
 0x248   : > { %v2487_v61 = vcombine.low %v9757_v57, %v9829_v1  ;;  %v2488_v5 = vcombine.high %v9757_v57, %v9829_v1  ;;  %v2607_v57 = vcombine.low %v9759_v44, %v9831_v33  ;;  %v2608_v24 = vcombine.high %v9759_v44, %v9831_v33 }
 0x249   : > { %v3057_v33 = vcombine.high %v9813_v3, %v9819_v52 }
 0x24a   : > { %v2495_v23 = vrot.slane %v2487_v61, %v8930_v62  ;;  %v9928_v54 = vrot.slane %v2488_v5, %v8930_v62  ;;  %v2622_v58 = vrot.slane %v2608_v24, %v8930_v62 }
 0x24b   : > { %v9845_v45 = vpop.permute.xlu1 %2439  ;;  %v9847_v40 = vpop.permute.xlu0 %2437 }
 0x24c   : > { %v2623_v59 = vcombine.low %v9795_v16, %v9847_v40  ;;  %v2624_v26 = vcombine.high %v9795_v16, %v9847_v40  ;;  %v2535_v44 = vcombine.low %v2479_v60, %v2495_v23 }
 0x24e   : > { %v2631_v0 = vrot.slane %v2623_v59, %v8930_v62  ;;  %v2638_v49 = vrot.slane %v2624_v26, %v8930_v62 }
 0x24f   : > { %v2444_v11 = vpop.permute.xlu1 %2443  ;;  %v9853_v4 = vpop.permute.xlu0 %2441 }
 0x253   : > { %v2448_v51 = vpop.permute.xlu1 %2447  ;;  %v2446_v47 = vpop.permute.xlu0 %2445 }
 0x254   : > { %v2503_v46 = vcombine.low %v9845_v45, %v2448_v51  ;;  %v2504_v48 = vcombine.high %v9845_v45, %v2448_v51  ;;  %v2536_v45 = vcombine.high %v2479_v60, %v2495_v23  ;;  %v9943_v51 = vrot.slane %v2535_v44, %v8932_v63 }
 0x255   : > { %v2687_v60 = vcombine.low %v2622_v58, %v2638_v49 }
 0x256   : > { %v2511_v16 = vrot.slane %v2503_v46, %v8930_v62  ;;  %v2518_v24 = vrot.slane %v2504_v48, %v8930_v62  ;;  %v2551_v48 = vcombine.low %v9925_v31, %v9928_v54 }
 0x257   : > { %v2452_v1 = vpop.permute.xlu1 %2451  ;;  %v2450_v61 = vpop.permute.xlu0 %2449 }
 0x258   : > { %v2519_v36 = vcombine.low %v2444_v11, %v2452_v1  ;;  %v2520_v53 = vcombine.high %v2444_v11, %v2452_v1  ;;  %v2615_v11 = vrot.slane %v2607_v57, %v8930_v62  ;;  %v2639_v1 = vcombine.low %v9853_v4, %v2450_v61 }
 0x259   : > { %v2640_v5 = vcombine.high %v9853_v4, %v2450_v61 }
 0x25a   : > { %v2527_v40 = vrot.slane %v2519_v36, %v8930_v62  ;;  %v2534_v28 = vrot.slane %v2520_v53, %v8930_v62  ;;  %v2671_v57 = vcombine.low %v2615_v11, %v2631_v0  ;;  %v2672_v10 = vcombine.high %v2615_v11, %v2631_v0 }
 0x25b   : > { %v2454_v38 = vpop.permute.xlu0 %2453  ;;  %v2647_v4 = vrot.slane %v2639_v1, %v8930_v62  ;;  %v2654_v61 = vrot.slane %v2640_v5, %v8930_v62  ;;  %v2688_v1 = vcombine.high %v2622_v58, %v2638_v49 }
 0x25c   : > { %v2567_v59 = vcombine.low %v2511_v16, %v2527_v40  ;;  %v2568_v55 = vcombine.high %v2511_v16, %v2527_v40  ;;  %v2655_v36 = vcombine.low %v2446_v47, %v2454_v38  ;;  %v2656_v46 = vcombine.high %v2446_v47, %v2454_v38 }
 0x25d   : > { %v2583_v44 = vcombine.low %v2518_v24, %v2534_v28  ;;  %v2550_v40 = vrot.slane %v2536_v45, %v8932_v63  ;;  %v9960_v11 = vrot.slane %v2671_v57, %v8932_v63  ;;  %v2695_v47 = vrot.slane %v2687_v60, %v8932_v63 }
 0x25e   : > { %v9947_v43 = vrot.slane %v2567_v59, %v8932_v63  ;;  %v2663_v53 = vrot.slane %v2655_v36, %v8930_v62  ;;  %v2670_v23 = vrot.slane %v2656_v46, %v8930_v62  ;;  %v2582_v26 = vrot.slane %v2568_v55, %v8932_v63 }
 0x25f   : > { %v2686_v59 = vrot.slane %v2672_v10, %v8932_v63  ;;  %v2702_v57 = vrot.slane %v2688_v1, %v8932_v63 }
 0x260   : > { %v2703_v0 = vcombine.low %v2647_v4, %v2663_v53  ;;  %v2704_v38 = vcombine.high %v2647_v4, %v2663_v53  ;;  %v2719_v16 = vcombine.low %v2654_v61, %v2670_v23  ;;  %v2720_v5 = vcombine.high %v2654_v61, %v2670_v23 }
 0x261   : > { %v2584_v4 = vcombine.high %v2518_v24, %v2534_v28  ;;  %v2591_v53 = vrot.slane %v2583_v44, %v8932_v63  ;;  %v2601_v45 = vcombine.low %v2550_v40, %v2582_v26  ;;  %v2600_v10 = vcombine.high %v9943_v51, %v9947_v43 }
 0x262   : > { %v9964_v55 = vrot.slane %v2703_v0, %v8932_v63  ;;  %v2718_v36 = vrot.slane %v2704_v38, %v8932_v63  ;;  %v2727_v46 = vrot.slane %v2719_v16, %v8932_v63  ;;  %v2552_v61 = vcombine.high %v9925_v31, %v9928_v54 }
 0x263   : > { %v2559_v23 = vrot.slane %v2551_v48, %v8932_v63  ;;  %v2734_v28 = vrot.slane %v2720_v5, %v8932_v63  ;;  %v12757_v24 = vcombine.high %v9773_v12, %v9785_v18  ;;  %v12759_v31 = vcombine.high %v9810_v35, %v9816_v41 }
 0x264   : > { %12756 = vst [vmem:[#allocation12_spill] sm:$0xff] %v9964_v55  ;;  %v2737_v49 = vcombine.low %v2686_v59, %v2718_v36  ;;  %v2736_v58 = vcombine.high %v9960_v11, %v9964_v55  ;;  %v2739_v38 = vcombine.low %v2695_v47, %v2727_v46  ;;  %v2738_v16 = vcombine.high %v2686_v59, %v2718_v36 }
 0x265   : > { %v3023_v60 = vrot.slane %v12757_v24, %v8930_v62  ;;  %v12758_v55 = vcombine.high %v9779_v50, %v9791_v17  ;;  %v3055_v48 = vrot.slane %v12759_v31, %v8930_v62  ;;  %v3071_v5 = vrot.slane %v3057_v33, %v8930_v62 }
 0x266   : > { %v8182_v44 = vpack.i.bf16 %v2737_v49, %v2601_v45  ;;  %v8177_v0 = vpack.i.bf16 %v2736_v58, %v2600_v10  ;;  %v2598_v24 = vrot.slane %v2584_v4, %v8932_v63  ;;  %v2603_v59 = vcombine.low %v2559_v23, %v2591_v53 }
 0x267   : > { %v3039_v54 = vrot.slane %v12758_v55, %v8930_v62  ;;  %v2602_v1 = vcombine.high %v2550_v40, %v2582_v26  ;;  %v2566_v36 = vrot.slane %v2552_v61, %v8932_v63  ;;  %v3001_v55 = vcombine.high %v9860_v6, %v9865_v9 }
 0x268   : > { %8183 = vrot.lane.b32.xlu0 %v8182_v44, %s8711_s18  ;;  %8178 = vrot.lane.b32.xlu1 %v8177_v0, %s8710_s11  ;;  %v3137_v45 = vcombine.high %v9877_v32, %v9880_v20  ;;  %v3003_v49 = vcombine.high %v9868_v29, %v9883_v37  ;;  %v8192_v33 = vpack.i.bf16 %v2739_v38, %v2603_v59 }
 0x269   : > { %v8187_v10 = vpack.i.bf16 %v2738_v16, %v2602_v1  ;;  %v2741_v4 = vcombine.low %v2702_v57, %v2734_v28  ;;  %v2740_v58 = vcombine.high %v2695_v47, %v2727_v46  ;;  %v3002_v44 = vcombine.low %v9868_v29, %v9883_v37 }
 0x26a   : > { %v2952_v26 = vcombine.low %v9892_v13, %v9902_v27  ;;  %v2984_v40 = vcombine.low %v9908_v25, %v9911_v21  ;;  %v3088_v61 = vcombine.low %v3023_v60, %v3039_v54  ;;  %v2605_v0 = vcombine.low %v2566_v36, %v2598_v24 }
 0x26b   : > { %v2604_v31 = vcombine.high %v2559_v23, %v2591_v53  ;;  %v3120_v38 = vcombine.low %v3055_v48, %v3071_v5  ;;  %v8212_v16 = vpack.i.bf16 %v3137_v45, %v3001_v55  ;;  %v3139_v47 = vcombine.high %v9886_v14, %v9889_v30 }
 0x26c   : > { %8193 = vrot.lane.b32.xlu0 %v8192_v33, %s8712_s19  ;;  %8188 = vrot.lane.b32.xlu1 %v8187_v10, %s8709_s10  ;;  %v3138_v29 = vcombine.low %v9886_v14, %v9889_v30  ;;  %v2953_v37 = vcombine.high %v9892_v13, %v9902_v27  ;;  %v8202_v46 = vpack.i.bf16 %v2741_v4, %v2605_v0  ;;  %v8146_v0 = vunpack.i.h.bf16 %v9727_v42 }
 0x26d   : > { %v8197_v59 = vpack.i.bf16 %v2740_v58, %v2604_v31  ;;  %v2742_v1 = vcombine.high %v2702_v57, %v2734_v28  ;;  %v2985_v33 = vcombine.high %v9908_v25, %v9911_v21  ;;  %v2960_v10 = vrot.slane %v2952_v26, %v8932_v63 }
 0x26e   : > { %v2992_v53 = vrot.slane %v2984_v40, %v8932_v63  ;;  %v3089_v23 = vcombine.high %v3023_v60, %v3039_v54  ;;  %v3121_v55 = vcombine.high %v3055_v48, %v3071_v5  ;;  %v2606_v14 = vcombine.high %v2566_v36, %v2598_v24 }
 0x26f   : > { %v3096_v30 = vrot.slane %v3088_v61, %v8932_v63  ;;  %v3128_v13 = vrot.slane %v3120_v38, %v8932_v63  ;;  %v8222_v57 = vpack.i.bf16 %v3139_v47, %v3003_v49  ;;  %v8217_v28 = vpack.i.bf16 %v3138_v29, %v3002_v44  ;;  %v12760_v47 = vld [vmem:[#allocation15_spill] sm:$0xff]  ;;  %v12761_v29 = vld [vmem:[#allocation13_spill] sm:$0xff] }
 0x270   : > { %8203 = vrot.lane.b32.xlu0 %v8202_v46, %s8714_s23  ;;  %8198 = vrot.lane.b32.xlu1 %v8197_v59, %s8713_s21  ;;  %v8207_v27 = vpack.i.bf16 %v2742_v1, %v2606_v14  ;;  %v2967_v25 = vrot.slane %v2953_v37, %v8932_v63  ;;  %v3005_v21 = vcombine.high %v2960_v10, %v2992_v53  ;;  %v8145_v31 = vunpack.i.l.bf16 %v9727_v42  ;;  %v12763_v59 = vld [vmem:[#allocation14_spill] sm:$0xff]  ;;  %v12764_v1 = vld [vmem:[#allocation16_spill] sm:$0xff] }
 0x271   : > { %v2999_v45 = vrot.slane %v2985_v33, %v8932_v63  ;;  %v3103_v60 = vrot.slane %v3089_v23, %v8932_v63  ;;  %v3135_v54 = vrot.slane %v3121_v55, %v8932_v63  ;;  %v3141_v48 = vcombine.high %v3096_v30, %v3128_v13 }
 0x272   : > { %v3004_v5 = vcombine.low %v2960_v10, %v2992_v53  ;;  %v3140_v24 = vcombine.low %v3096_v30, %v3128_v13  ;;  %v8151_v38 = vunpack.i.h.bf16 %v9725_v39  ;;  %v12762_v37 = vcombine.low %v12760_v47, %v12761_v29  ;;  %v12766_v53 = vld [vmem:[#allocation9_spill] sm:$0xff]  ;;  %v12772_v47 = vld [vmem:[#allocation8_spill] sm:$0xff] }
 0x273   : > { %v3007_v36 = vcombine.high %v2967_v25, %v2999_v45  ;;  %v3143_v4 = vcombine.high %v3103_v60, %v3135_v54  ;;  %v3006_v49 = vcombine.low %v2967_v25, %v2999_v45  ;;  %v8232_v58 = vpack.i.bf16 %v3141_v48, %v3005_v21  ;;  %v12768_v45 = vld [vmem:[#allocation12_spill] sm:$0xff]  ;;  %v12770_v48 = vld [vmem:[#allocation7_spill] sm:$0xff] }
 0x274   : > { %8213 = vrot.lane.b32.xlu0 %v8212_v16, %s8710_s11  ;;  %8208 = vrot.lane.b32.xlu1 %v8207_v27, %s8715_s26  ;;  %v8227_v44 = vpack.i.bf16 %v3140_v24, %v3004_v5  ;;  %v3142_v26 = vcombine.low %v3103_v60, %v3135_v54  ;;  %v8150_v16 = vunpack.i.l.bf16 %v9725_v39  ;;  %v2414_v46 = vsel %vm799_vm1, %v12762_v37, %v8146_v0 }
 0x275   : > { %v8242_v40 = vpack.i.bf16 %v3143_v4, %v3007_v36  ;;  %v12765_v33 = vcombine.low %v12763_v59, %v12764_v1  ;;  %v8156_v23 = vunpack.i.h.bf16 %v12766_v53  ;;  %v8155_v55 = vunpack.i.l.bf16 %v12766_v53 }
 0x276   : > { %v8237_v61 = vpack.i.bf16 %v3142_v26, %v3006_v49  ;;  %v12767_v25 = vcombine.low %v9943_v51, %v9947_v43  ;;  %v12769_v60 = vcombine.low %v9960_v11, %v12768_v45  ;;  %v8161_v5 = vunpack.i.h.bf16 %v12770_v48 }
 0x277   : > { %v2407_v10 = vsel %vm799_vm1, %v12765_v33, %v8145_v31  ;;  %v8160_v24 = vunpack.i.l.bf16 %v12770_v48  ;;  %v8171_v29 = vunpack.i.h.bf16 %v12772_v47  ;;  %v8170_v37 = vunpack.i.l.bf16 %v12772_v47 }
 0x278   : > { %8223 = vrot.lane.b32.xlu0 %v8222_v57, %s8709_s10  ;;  %8218 = vrot.lane.b32.xlu1 %v8217_v28, %s8711_s18  ;;  %v2408_v57 = vsel %vm801_vm2, %v2407_v10, %v8150_v16  ;;  %v2415_v28 = vsel %vm801_vm2, %v2414_v46, %v8151_v38 }
 0x279   : > { %v2409_v36 = vsel %vm803_vm3, %v2408_v57, %v8155_v55  ;;  %v2416_v4 = vsel %vm803_vm3, %v2415_v28, %v8156_v23 }
 0x27a   : > { %v2410_v46 = vsel %vm805_vm4, %v2409_v36, %v8160_v24  ;;  %v2417_v59 = vsel %vm805_vm4, %v2416_v4, %v8161_v5 }
 0x27c   : > { %8233 = vrot.lane.b32.xlu0 %v8232_v58, %s8713_s21  ;;  %8228 = vrot.lane.b32.xlu1 %v8227_v44, %s8712_s19  ;;  %v12771_v44 = vld [vmem:[#allocation11_spill] sm:$0xff] }
 0x27d   : > { %v8166_v26 = vunpack.i.h.bf16 %v12771_v44  ;;  %v8165_v43 = vunpack.i.l.bf16 %v12771_v44 }
 0x27f   : > { %v2411_v10 = vsel %vm807_vm5, %v2410_v46, %v8165_v43  ;;  %v2418_v53 = vsel %vm807_vm5, %v2417_v59, %v8166_v26 }
 0x280   : > { %8243 = vrot.lane.b32.xlu0 %v8242_v40, %s8715_s26  ;;  %8238 = vrot.lane.b32.xlu1 %v8237_v61, %s8714_s23  ;;  %v2419_v48 = vsel %vm809_vm6, %v2418_v53, %v8171_v29  ;;  %v2412_v24 = vsel %vm809_vm6, %v2411_v10, %v8170_v37 }
 0x284   : > { %3218 = vrot.lane.b32.xlu0 %v9773_v12, %s8708_s9  ;;  %3216 = vrot.lane.b32.xlu1 %v9770_v56, %s8708_s9 }
 0x288   : > { %3222 = vrot.lane.b32.xlu0 %v9779_v50, %s8708_s9  ;;  %3220 = vrot.lane.b32.xlu1 %v9776_v7, %s8708_s9 }
 0x28c   : > { %3226 = vrot.lane.b32.xlu0 %v9785_v18, %s8708_s9  ;;  %3224 = vrot.lane.b32.xlu1 %v9782_v22, %s8708_s9 }
 0x290   : > { %3230 = vrot.lane.b32.xlu0 %v9791_v17, %s8708_s9  ;;  %3228 = vrot.lane.b32.xlu1 %v9788_v8, %s8708_s9 }
 0x294   : > { %3234 = vrot.lane.b32.xlu0 %v9810_v35, %s8708_s9  ;;  %3232 = vrot.lane.b32.xlu1 %v9798_v15, %s8708_s9 }
 0x298   : > { %3238 = vrot.lane.b32.xlu0 %v9813_v3, %s8708_s9  ;;  %3236 = vrot.lane.b32.xlu1 %v9801_v19, %s8708_s9 }
 0x29c   : > { %3242 = vrot.lane.b32.xlu0 %v9816_v41, %s8708_s9  ;;  %3240 = vrot.lane.b32.xlu1 %v9804_v34, %s8708_s9 }
 0x2a0   : > { %3246 = vrot.lane.b32.xlu0 %v9819_v52, %s8708_s9  ;;  %3244 = vrot.lane.b32.xlu1 %v9807_v2, %s8708_s9 }
 0x2da   : > { %v8184_v14 = vpop.permute.xlu0 %8183  ;;  %v8179_v42 = vpop.permute.xlu1 %8178 }
 0x2db   : > { %v8181_v30 = vunpack.i.h.bf16 %v8179_v42  ;;  %v8180_v13 = vunpack.i.l.bf16 %v8179_v42  ;;  %v8186_v27 = vunpack.i.h.bf16 %v8184_v14  ;;  %v8185_v39 = vunpack.i.l.bf16 %v8184_v14 }
 0x2dd   : > { %v2799_v21 = vsel %vm799_vm1, %v12767_v25, %v8180_v13  ;;  %v2806_v54 = vsel %vm799_vm1, %v12769_v60, %v8181_v30 }
 0x2de   : > { %v8194_v49 = vpop.permute.xlu0 %8193  ;;  %v8189_v58 = vpop.permute.xlu1 %8188  ;;  %v2800_v0 = vsel %vm801_vm2, %v2799_v21, %v8185_v39  ;;  %v2807_v31 = vsel %vm801_vm2, %v2806_v54, %v8186_v27  ;;  %v12773_v27 = vld [vmem:[#allocation10_spill] sm:$0xff] }
 0x2df   : > { %v8191_v51 = vunpack.i.h.bf16 %v8189_v58  ;;  %v8190_v40 = vunpack.i.l.bf16 %v8189_v58  ;;  %v8196_v61 = vunpack.i.h.bf16 %v8194_v49  ;;  %v8195_v11 = vunpack.i.l.bf16 %v8194_v49 }
 0x2e0   : > { %v8176_v39 = vunpack.i.h.bf16 %v12773_v27  ;;  %v8175_v57 = vunpack.i.l.bf16 %v12773_v27 }
 0x2e1   : > { %v2801_v38 = vsel %vm803_vm3, %v2800_v0, %v8190_v40  ;;  %v2808_v16 = vsel %vm803_vm3, %v2807_v31, %v8191_v51 }
 0x2e2   : > { %v8204_v1 = vpop.permute.xlu0 %8203  ;;  %v8199_v33 = vpop.permute.xlu1 %8198  ;;  %v2802_v30 = vsel %vm805_vm4, %v2801_v38, %v8195_v11  ;;  %v2809_v13 = vsel %vm805_vm4, %v2808_v16, %v8196_v61  ;;  %v2420_v4 = vsel %vm811_vm7, %v2419_v48, %v8176_v39  ;;  %v2413_v58 = vsel %vm811_vm7, %v2412_v24, %v8175_v57 }
 0x2e3   : > { %v8201_v23 = vunpack.i.h.bf16 %v8199_v33  ;;  %v8200_v55 = vunpack.i.l.bf16 %v8199_v33  ;;  %v8206_v14 = vunpack.i.h.bf16 %v8204_v1  ;;  %v8205_v42 = vunpack.i.l.bf16 %v8204_v1 }
 0x2e5   : > { %v2803_v28 = vsel %vm807_vm5, %v2802_v30, %v8200_v55  ;;  %v2810_v25 = vsel %vm807_vm5, %v2809_v13, %v8201_v23 }
 0x2e6   : > { %v10116_v21 = vpop.permute.xlu0 %8213  ;;  %v8209_v45 = vpop.permute.xlu1 %8208  ;;  %v2811_v5 = vsel %vm809_vm6, %v2810_v25, %v8206_v14  ;;  %v2804_v36 = vsel %vm809_vm6, %v2803_v28, %v8205_v42 }
 0x2e7   : > { %v8211_v60 = vunpack.i.h.bf16 %v8209_v45  ;;  %v8210_v54 = vunpack.i.l.bf16 %v8209_v45 }
 0x2e9   : > { %v2812_v49 = vsel %vm811_vm7, %v2811_v5, %v8211_v60  ;;  %v2805_v44 = vsel %vm811_vm7, %v2804_v36, %v8210_v54 }
 0x2ea   : > { %v10126_v26 = vpop.permute.xlu0 %8223  ;;  %v10128_v43 = vpop.permute.xlu1 %8218  ;;  %v7907_v51 = vpack.c.bf16 %v2812_v49, %v2420_v4  ;;  %v7909_v40 = vpack.c.bf16 %v2805_v44, %v2413_v58 }
 0x2ec   : > { %7908 = vmatprep.subr.bf16.mxu0 %v7907_v51 }
 0x2ed   : > { %7910 = vmatpush1.bf16.msra.mxu0 %v7909_v40 }
 0x2ee   : > { %v10130_v61 = vpop.permute.xlu0 %8233  ;;  %v10132_v11 = vpop.permute.xlu1 %8228 }
 0x2f2   : > { %v10134_v0 = vpop.permute.xlu0 %8243  ;;  %v10136_v31 = vpop.permute.xlu1 %8238 }
 0x2f6   : > { %v3219_v38 = vpop.permute.xlu0 %3218  ;;  %v3217_v16 = vpop.permute.xlu1 %3216 }
 0x2fa   : > { %v3223_v47 = vpop.permute.xlu0 %3222  ;;  %v3221_v29 = vpop.permute.xlu1 %3220 }
 0x2fe   : > { %v3227_v37 = vpop.permute.xlu0 %3226  ;;  %v3225_v46 = vpop.permute.xlu1 %3224 }
 0x2ff   : > { %v3400_v14 = vcombine.low %v3219_v38, %v3227_v37  ;;  %v3401_v27 = vcombine.high %v3219_v38, %v3227_v37  ;;  %v3264_v39 = vcombine.low %v3217_v16, %v3225_v46  ;;  %v3265_v57 = vcombine.high %v3217_v16, %v3225_v46 }
 0x301   : > { %v3408_v60 = vrot.slane %v3400_v14, %v8930_v62  ;;  %v10148_v24 = vrot.slane %v3401_v27, %v8930_v62  ;;  %v3272_v36 = vrot.slane %v3264_v39, %v8930_v62  ;;  %v10152_v4 = vrot.slane %v3265_v57, %v8930_v62 }
 0x302   : > { %v3231_v59 = vpop.permute.xlu0 %3230  ;;  %v3229_v1 = vpop.permute.xlu1 %3228 }
 0x303   : > { %v3416_v53 = vcombine.low %v3223_v47, %v3231_v59  ;;  %v3417_v23 = vcombine.high %v3223_v47, %v3231_v59  ;;  %v3280_v55 = vcombine.low %v3221_v29, %v3229_v1  ;;  %v3281_v42 = vcombine.high %v3221_v29, %v3229_v1 }
 0x305   : > { %v3424_v28 = vrot.slane %v3416_v53, %v8930_v62  ;;  %v10140_v25 = vrot.slane %v3417_v23, %v8930_v62  ;;  %v3288_v45 = vrot.slane %v3280_v55, %v8930_v62  ;;  %v10145_v54 = vrot.slane %v3281_v42, %v8930_v62 }
 0x306   : > { %v3235_v33 = vpop.permute.xlu0 %3234  ;;  %v3233_v10 = vpop.permute.xlu1 %3232 }
 0x307   : > { %v3464_v49 = vcombine.low %v3408_v60, %v3424_v28  ;;  %v3465_v51 = vcombine.high %v3408_v60, %v3424_v28  ;;  %v3480_v40 = vcombine.low %v10148_v24, %v10140_v25  ;;  %v3481_v38 = vcombine.high %v10148_v24, %v10140_v25 }
 0x308   : > { %v3328_v16 = vcombine.low %v3272_v36, %v3288_v45  ;;  %v3329_v47 = vcombine.high %v3272_v36, %v3288_v45  ;;  %v3344_v29 = vcombine.low %v10152_v4, %v10145_v54  ;;  %v3345_v42 = vcombine.high %v10152_v4, %v10145_v54 }
 0x309   : > { %v10161_v14 = vrot.slane %v3464_v49, %v8932_v63  ;;  %v3488_v25 = vrot.slane %v3480_v40, %v8932_v63 }
 0x30a   : > { %v3239_v30 = vpop.permute.xlu0 %3238  ;;  %v3237_v13 = vpop.permute.xlu1 %3236  ;;  %v10176_v54 = vrot.slane %v3328_v16, %v8932_v63 }
 0x30e   : > { %v3243_v48 = vpop.permute.xlu0 %3242  ;;  %v3241_v5 = vpop.permute.xlu1 %3240 }
 0x30f   : > { %v3432_v58 = vcombine.low %v3235_v33, %v3243_v48  ;;  %v3433_v44 = vcombine.high %v3235_v33, %v3243_v48  ;;  %v3296_v37 = vcombine.low %v3233_v10, %v3241_v5  ;;  %v3297_v46 = vcombine.high %v3233_v10, %v3241_v5 }
 0x311   : > { %v3440_v27 = vrot.slane %v3432_v58, %v8930_v62  ;;  %v3447_v39 = vrot.slane %v3433_v44, %v8930_v62  ;;  %v3304_v45 = vrot.slane %v3296_v37, %v8930_v62  ;;  %v3311_v60 = vrot.slane %v3297_v46, %v8930_v62 }
 0x312   : > { %v3247_v59 = vpop.permute.xlu0 %3246  ;;  %v3245_v1 = vpop.permute.xlu1 %3244  ;;  %v3343_v46 = vrot.slane %v3329_v47, %v8932_v63 }
 0x313   : > { %v3448_v53 = vcombine.low %v3239_v30, %v3247_v59  ;;  %v3449_v23 = vcombine.high %v3239_v30, %v3247_v59  ;;  %v3312_v55 = vcombine.low %v3237_v13, %v3245_v1  ;;  %v3313_v33 = vcombine.high %v3237_v13, %v3245_v1 }
 0x314   : > { %v3479_v13 = vrot.slane %v3465_v51, %v8932_v63 }
 0x315   : > { %v3456_v57 = vrot.slane %v3448_v53, %v8930_v62  ;;  %v3463_v10 = vrot.slane %v3449_v23, %v8930_v62  ;;  %v3320_v28 = vrot.slane %v3312_v55, %v8930_v62  ;;  %v3327_v30 = vrot.slane %v3313_v33, %v8930_v62 }
 0x316   : > { %v3352_v53 = vrot.slane %v3344_v29, %v8932_v63 }
 0x317   : > { %v3496_v48 = vcombine.low %v3440_v27, %v3456_v57  ;;  %v3497_v5 = vcombine.high %v3440_v27, %v3456_v57  ;;  %v3512_v24 = vcombine.low %v3447_v39, %v3463_v10  ;;  %v3513_v36 = vcombine.high %v3447_v39, %v3463_v10 }
 0x318   : > { %v3360_v4 = vcombine.low %v3304_v45, %v3320_v28  ;;  %v3361_v49 = vcombine.high %v3304_v45, %v3320_v28  ;;  %v3376_v58 = vcombine.low %v3311_v60, %v3327_v30  ;;  %v3377_v37 = vcombine.high %v3311_v60, %v3327_v30 }
 0x319   : > { %v10179_v44 = vrot.slane %v3496_v48, %v8932_v63  ;;  %v3511_v51 = vrot.slane %v3497_v5, %v8932_v63  ;;  %v3520_v40 = vrot.slane %v3512_v24, %v8932_v63  ;;  %v3527_v57 = vrot.slane %v3513_v36, %v8932_v63 }
 0x31a   : > { %v10185_v16 = vrot.slane %v3360_v4, %v8932_v63  ;;  %v3375_v59 = vrot.slane %v3361_v49, %v8932_v63  ;;  %v3384_v1 = vrot.slane %v3376_v58, %v8932_v63  ;;  %v3391_v10 = vrot.slane %v3377_v37, %v8932_v63 }
 0x31b   : > { %v3528_v23 = vcombine.low %v10161_v14, %v10179_v44  ;;  %v3530_v55 = vcombine.low %v3479_v13, %v3511_v51  ;;  %v3529_v33 = vcombine.high %v10161_v14, %v10179_v44  ;;  %v3532_v29 = vcombine.low %v3488_v25, %v3520_v40 }
 0x31c   : > { %v3394_v47 = vcombine.low %v3343_v46, %v3375_v59  ;;  %v3393_v39 = vcombine.high %v10176_v54, %v10185_v16  ;;  %v3396_v28 = vcombine.low %v3352_v53, %v3384_v1  ;;  %v3395_v60 = vcombine.high %v3343_v46, %v3375_v59 }
 0x31d   : > { %v3531_v48 = vcombine.high %v3479_v13, %v3511_v51  ;;  %v3495_v5 = vrot.slane %v3481_v38, %v8932_v63  ;;  %v3359_v24 = vrot.slane %v3345_v42, %v8932_v63  ;;  %v3397_v27 = vcombine.high %v3352_v53, %v3384_v1 }
 0x31e   : > { %v8252_v30 = vpack.i.bf16 %v3530_v55, %v3394_v47  ;;  %v8247_v45 = vpack.i.bf16 %v3529_v33, %v3393_v39  ;;  %v8262_v58 = vpack.i.bf16 %v3532_v29, %v3396_v28  ;;  %v3533_v37 = vcombine.high %v3488_v25, %v3520_v40 }
 0x31f   : > { %v3398_v4 = vcombine.low %v3359_v24, %v3391_v10  ;;  %v3534_v49 = vcombine.low %v3495_v5, %v3527_v57  ;;  %v8257_v36 = vpack.i.bf16 %v3531_v48, %v3395_v60  ;;  %v3399_v51 = vcombine.high %v3359_v24, %v3391_v10 }
 0x320   : > { %8253 = vrot.lane.b32.xlu0 %v8252_v30, %s8711_s18  ;;  %8248 = vrot.lane.b32.xlu1 %v8247_v45, %s8710_s11  ;;  %v8267_v13 = vpack.i.bf16 %v3533_v37, %v3397_v27  ;;  %v3535_v38 = vcombine.high %v3495_v5, %v3527_v57  ;;  %v8236_v25 = vunpack.i.h.bf16 %v10130_v61  ;;  %v8235_v40 = vunpack.i.l.bf16 %v10130_v61 }
 0x321   : > { %v8272_v46 = vpack.i.bf16 %v3534_v49, %v3398_v4  ;;  %v8241_v39 = vunpack.i.h.bf16 %v10136_v31  ;;  %v8240_v57 = vunpack.i.l.bf16 %v10136_v31  ;;  %v8246_v49 = vunpack.i.h.bf16 %v10134_v0 }
 0x322   : > { %v8277_v42 = vpack.i.bf16 %v3535_v38, %v3399_v51 }
 0x324   : > { %8263 = vrot.lane.b32.xlu0 %v8262_v58, %s8712_s19  ;;  %8258 = vrot.lane.b32.xlu1 %v8257_v36, %s8709_s10  ;;  %v8245_v58 = vunpack.i.l.bf16 %v10134_v0 }
 0x328   : > { %8273 = vrot.lane.b32.xlu0 %v8272_v46, %s8714_s23  ;;  %8268 = vrot.lane.b32.xlu1 %v8267_v13, %s8713_s21 }
 0x32c   : > { %3608 = vrot.lane.b32.xlu0 %v9770_v56, %s8716_s27  ;;  %8278 = vrot.lane.b32.xlu1 %v8277_v42, %s8715_s26  ;;  %v3000_v56 = vcombine.low %v9860_v6, %v9865_v9 }
 0x330   : > { %3612 = vrot.lane.b32.xlu0 %v9776_v7, %s8716_s27  ;;  %3610 = vrot.lane.b32.xlu1 %v9773_v12, %s8716_s27  ;;  %v3136_v12 = vcombine.low %v9877_v32, %v9880_v20  ;;  %v8216_v7 = vunpack.i.h.bf16 %v10116_v21 }
 0x334   : > { %3616 = vrot.lane.b32.xlu0 %v9782_v22, %s8716_s27  ;;  %3614 = vrot.lane.b32.xlu1 %v9779_v50, %s8716_s27  ;;  %v8215_v50 = vunpack.i.l.bf16 %v10116_v21  ;;  %v8221_v22 = vunpack.i.h.bf16 %v10128_v43 }
 0x338   : > { %3620 = vrot.lane.b32.xlu0 %v9788_v8, %s8716_s27  ;;  %3618 = vrot.lane.b32.xlu1 %v9785_v18, %s8716_s27  ;;  %v8220_v18 = vunpack.i.l.bf16 %v10128_v43  ;;  %v3207_v8 = vsel %vm799_vm1, %v3136_v12, %v8216_v7 }
 0x33c   : > { %3624 = vrot.lane.b32.xlu0 %v9798_v15, %s8716_s27  ;;  %3622 = vrot.lane.b32.xlu1 %v9791_v17, %s8716_s27  ;;  %v3200_v17 = vsel %vm799_vm1, %v3000_v56, %v8215_v50  ;;  %v8226_v15 = vunpack.i.h.bf16 %v10126_v26 }
 0x340   : > { %3628 = vrot.lane.b32.xlu0 %v9801_v19, %s8716_s27  ;;  %3626 = vrot.lane.b32.xlu1 %v9810_v35, %s8716_s27  ;;  %v8225_v19 = vunpack.i.l.bf16 %v10126_v26  ;;  %v12774_v26 = vcombine.low %v10176_v54, %v10185_v16 }
 0x344   : > { %3632 = vrot.lane.b32.xlu0 %v9804_v34, %s8716_s27  ;;  %3630 = vrot.lane.b32.xlu1 %v9813_v3, %s8716_s27  ;;  %v3208_v34 = vsel %vm801_vm2, %v3207_v8, %v8221_v22 }
 0x345   : > { %v3209_v59 = vsel %vm803_vm3, %v3208_v34, %v8226_v15 }
 0x348   : > { %3636 = vrot.lane.b32.xlu0 %v9807_v2, %s8716_s27  ;;  %3634 = vrot.lane.b32.xlu1 %v9816_v41, %s8716_s27  ;;  %v3201_v2 = vsel %vm801_vm2, %v3200_v17, %v8220_v18  ;;  %v8231_v41 = vunpack.i.h.bf16 %v10132_v11 }
 0x34a   : > { %v3210_v14 = vsel %vm805_vm4, %v3209_v59, %v8231_v41  ;;  %v10335_v59 = vld [vmem:[%s8908_s8 + $0x150] sm:$0xff] }
 0x34b   : > { %v3211_v45 = vsel %vm807_vm5, %v3210_v14, %v8236_v25  ;;  %v10345_v14 = vld [vmem:[%s8908_s8 + $0x168] sm:$0xff] }
 0x34c   : > { %3638 = vrot.lane.b32.xlu1 %v9819_v52, %s8716_s27  ;;  %v8230_v52 = vunpack.i.l.bf16 %v10132_v11  ;;  %v3202_v11 = vsel %vm803_vm3, %v3201_v2, %v8225_v19  ;;  %v3212_v13 = vsel %vm809_vm6, %v3211_v45, %v8241_v39 }
 0x34d   : > { %v3213_v7 = vsel %vm811_vm7, %v3212_v13, %v8246_v49 }
 0x34e   : > { %v3203_v55 = vsel %vm805_vm4, %v3202_v11, %v8230_v52  ;;  %v10306_v52 = vld [vmem:[%s8908_s8 + $0xc0] sm:$0xff] }
 0x34f   : > { %v3204_v60 = vsel %vm807_vm5, %v3203_v55, %v8235_v40  ;;  %v10332_v11 = vld [vmem:[%s8908_s8 + $0x120] sm:$0xff]  ;;  %v10342_v55 = vld [vmem:[%s8908_s8 + $0x138] sm:$0xff] }
 0x350   : > { %v3205_v51 = vsel %vm809_vm6, %v3204_v60, %v8240_v57 }
 0x351   : > { %v3206_v50 = vsel %vm811_vm7, %v3205_v51, %v8245_v58 }
 0x392   : > { %v8254_v35 = vpop.permute.xlu0 %8253  ;;  %v8249_v3 = vpop.permute.xlu1 %8248 }
 0x393   : > { %v8251_v6 = vunpack.i.h.bf16 %v8249_v3  ;;  %v8250_v9 = vunpack.i.l.bf16 %v8249_v3  ;;  %v8256_v32 = vunpack.i.h.bf16 %v8254_v35  ;;  %v8255_v20 = vunpack.i.l.bf16 %v8254_v35 }
 0x395   : > { %v3599_v21 = vsel %vm799_vm1, %v3528_v23, %v8251_v6  ;;  %v3592_v43 = vsel %vm799_vm1, %v12774_v26, %v8250_v9  ;;  %v10309_v6 = vld [vmem:[%s8908_s8 + $0xc8] sm:$0xff]  ;;  %v10312_v9 = vld [vmem:[%s8908_s8 + $0xd8] sm:$0xff] }
 0x396   : > { %v8264_v1 = vpop.permute.xlu0 %8263  ;;  %v8259_v53 = vpop.permute.xlu1 %8258  ;;  %v3593_v16 = vsel %vm801_vm2, %v3592_v43, %v8255_v20  ;;  %v3600_v27 = vsel %vm801_vm2, %v3599_v21, %v8256_v32  ;;  %v10315_v32 = vld [vmem:[%s8908_s8 + $0xf0] sm:$0xff]  ;;  %v10318_v20 = vld [vmem:[%s8908_s8 + $0x108] sm:$0xff]  ;;  %v10321_v21 = vld [vmem:[%s8908_s8 + $0xe0] sm:$0xff] }
 0x397   : > { %v8261_v44 = vunpack.i.h.bf16 %v8259_v53  ;;  %v8260_v23 = vunpack.i.l.bf16 %v8259_v53  ;;  %v8266_v33 = vunpack.i.h.bf16 %v8264_v1  ;;  %v8265_v54 = vunpack.i.l.bf16 %v8264_v1  ;;  %v10324_v26 = vld [vmem:[%s8908_s8 + $0xf8] sm:$0xff]  ;;  %v10327_v43 = vld [vmem:[%s8908_s8 + $0x110] sm:$0xff] }
 0x398   : > { %v4025_v1 = vcombine.low %v10306_v52, %v10315_v32  ;;  %v4041_v53 = vcombine.low %v10312_v9, %v10318_v20  ;;  %v4026_v49 = vcombine.high %v10306_v52, %v10315_v32 }
 0x399   : > { %v3594_v61 = vsel %vm803_vm3, %v3593_v16, %v8260_v23  ;;  %v3601_v47 = vsel %vm803_vm3, %v3600_v27, %v8261_v44  ;;  %v4161_v44 = vcombine.low %v10309_v6, %v10324_v26  ;;  %v4177_v23 = vcombine.low %v10321_v21, %v10327_v43  ;;  %v10355_v16 = vld [vmem:[%s8908_s8 + $0x140] sm:$0xff]  ;;  %v10358_v27 = vld [vmem:[%s8908_s8 + $0x158] sm:$0xff] }
 0x39a   : > { %v8274_v10 = vpop.permute.xlu0 %8273  ;;  %v8269_v28 = vpop.permute.xlu1 %8268  ;;  %v3595_v24 = vsel %vm805_vm4, %v3594_v61, %v8265_v54  ;;  %v3602_v4 = vsel %vm805_vm4, %v3601_v47, %v8266_v33  ;;  %v10352_v54 = vld [vmem:[%s8908_s8 + $0x128] sm:$0xff]  ;;  %v10361_v61 = vld [vmem:[%s8908_s8 + $0x170] sm:$0xff]  ;;  %v4057_v47 = vcombine.low %v10332_v11, %v10335_v59 }
 0x39b   : > { %v8271_v29 = vunpack.i.h.bf16 %v8269_v28  ;;  %v8270_v30 = vunpack.i.l.bf16 %v8269_v28  ;;  %v8276_v48 = vunpack.i.h.bf16 %v8274_v10  ;;  %v8275_v5 = vunpack.i.l.bf16 %v8274_v10 }
 0x39c   : > { %v10370_v28 = vrot.slane %v4025_v1, %v8930_v62  ;;  %v10378_v60 = vrot.slane %v4161_v44, %v8930_v62 }
 0x39d   : > { %v3596_v31 = vsel %vm807_vm5, %v3595_v24, %v8270_v30  ;;  %v3603_v36 = vsel %vm807_vm5, %v3602_v4, %v8271_v29  ;;  %v10373_v29 = vrot.slane %v4041_v53, %v8930_v62  ;;  %v4073_v30 = vcombine.low %v10342_v55, %v10345_v14 }
 0x39e   : > { %v10285_v37 = vpop.permute.xlu0 %3608  ;;  %v8279_v46 = vpop.permute.xlu1 %8278  ;;  %v3604_v56 = vsel %vm809_vm6, %v3603_v36, %v8276_v48  ;;  %v3597_v12 = vsel %vm809_vm6, %v3596_v31, %v8275_v5  ;;  %v10381_v48 = vrot.slane %v4177_v23, %v8930_v62  ;;  %v4193_v24 = vcombine.low %v10352_v54, %v10358_v27 }
 0x39f   : > { %v8281_v38 = vunpack.i.h.bf16 %v8279_v46  ;;  %v8280_v42 = vunpack.i.l.bf16 %v8279_v46  ;;  %v4209_v4 = vcombine.low %v10355_v16, %v10361_v61  ;;  %v10391_v36 = vrot.slane %v4057_v47, %v8930_v62 }
 0x3a0   : > { %v4042_v46 = vcombine.high %v10312_v9, %v10318_v20 }
 0x3a1   : > { %v3605_v0 = vsel %vm811_vm7, %v3604_v56, %v8281_v38  ;;  %v3598_v22 = vsel %vm811_vm7, %v3597_v12, %v8280_v42  ;;  %v10401_v56 = vrot.slane %v4073_v30, %v8930_v62  ;;  %v4089_v12 = vcombine.low %v10370_v28, %v10373_v29 }
 0x3a2   : > { %v3613_v18 = vpop.permute.xlu0 %3612  ;;  %v10295_v8 = vpop.permute.xlu1 %3610  ;;  %v7911_v17 = vpack.c.bf16 %v3605_v0, %v3213_v7  ;;  %v7913_v15 = vpack.c.bf16 %v3598_v22, %v3206_v50  ;;  %v10423_v23 = vrot.slane %v4209_v4, %v8930_v62 }
 0x3a4   : > { %7912 = vmatprep.subr.bf16.mxu0 %v7911_v17 }
 0x3a5   : > { %7914 = vmatpush1.bf16.msra.mxu0 %v7913_v15 }
 0x3a6   : > { %v10297_v19 = vpop.permute.xlu0 %3616  ;;  %v10299_v34 = vpop.permute.xlu1 %3614 }
 0x3a7   : > { %v3656_v39 = vcombine.low %v10285_v37, %v10297_v19  ;;  %v3657_v13 = vcombine.high %v10285_v37, %v10297_v19 }
 0x3a9   : > { %v3664_v51 = vrot.slane %v3656_v39, %v8930_v62  ;;  %v3671_v53 = vrot.slane %v3657_v13, %v8930_v62 }
 0x3aa   : > { %v3621_v2 = vpop.permute.xlu0 %3620  ;;  %v10301_v35 = vpop.permute.xlu1 %3618 }
 0x3ab   : > { %v3672_v33 = vcombine.low %v3613_v18, %v3621_v2  ;;  %v3673_v45 = vcombine.high %v3613_v18, %v3621_v2  ;;  %v3792_v0 = vcombine.low %v10295_v8, %v10301_v35 }
 0x3ad   : > { %v3680_v5 = vrot.slane %v3672_v33, %v8930_v62  ;;  %v10406_v7 = vrot.slane %v3673_v45, %v8930_v62  ;;  %v4225_v33 = vcombine.low %v10378_v60, %v10381_v48  ;;  %v10428_v47 = vrot.slane %v3792_v0, %v8930_v62 }
 0x3ae   : > { %v3625_v3 = vpop.permute.xlu0 %3624  ;;  %v10303_v41 = vpop.permute.xlu1 %3622  ;;  %v10448_v0 = vrot.slane %v4089_v12, %v8932_v63  ;;  %v4121_v12 = vcombine.low %v10391_v36, %v10401_v56 }
 0x3af   : > { %v3720_v37 = vcombine.low %v3664_v51, %v3680_v5  ;;  %v3721_v18 = vcombine.high %v3664_v51, %v3680_v5  ;;  %v3808_v17 = vcombine.low %v10299_v34, %v10303_v41  ;;  %v3736_v45 = vcombine.low %v3671_v53, %v10406_v7 }
 0x3b1   : > { %v10432_v5 = vrot.slane %v3808_v17, %v8930_v62  ;;  %v3735_v13 = vrot.slane %v3721_v18, %v8932_v63 }
 0x3b2   : > { %v3629_v25 = vpop.permute.xlu0 %3628  ;;  %v10329_v40 = vpop.permute.xlu1 %3626 }
 0x3b6   : > { %v3633_v57 = vpop.permute.xlu0 %3632  ;;  %v10367_v10 = vpop.permute.xlu1 %3630 }
 0x3b7   : > { %v3688_v58 = vcombine.low %v3625_v3, %v3633_v57  ;;  %v3689_v31 = vcombine.high %v3625_v3, %v3633_v57 }
 0x3b9   : > { %v3696_v19 = vrot.slane %v3688_v58, %v8930_v62  ;;  %v3703_v2 = vrot.slane %v3689_v31, %v8930_v62  ;;  %v10439_v58 = vrot.slane %v3720_v37, %v8932_v63 }
 0x3ba   : > { %v3637_v38 = vpop.permute.xlu0 %3636  ;;  %v10398_v42 = vpop.permute.xlu1 %3634 }
 0x3bb   : > { %v3704_v50 = vcombine.low %v3629_v25, %v3637_v38  ;;  %v3705_v22 = vcombine.high %v3629_v25, %v3637_v38  ;;  %v3824_v15 = vcombine.low %v10329_v40, %v10398_v42  ;;  %v10420_v25 = vrot.slane %v4193_v24, %v8930_v62 }
 0x3bd   : > { %v3712_v3 = vrot.slane %v3704_v50, %v8930_v62  ;;  %v3719_v1 = vrot.slane %v3705_v22, %v8930_v62  ;;  %v10435_v24 = vrot.slane %v3824_v15, %v8930_v62  ;;  %v4090_v50 = vcombine.high %v10370_v28, %v10373_v29 }
 0x3be   : > { %v3639_v44 = vpop.permute.xlu1 %3638  ;;  %v4226_v22 = vcombine.high %v10378_v60, %v10381_v48  ;;  %v10463_v28 = vrot.slane %v4225_v33, %v8932_v63  ;;  %v3737_v29 = vcombine.high %v3671_v53, %v10406_v7  ;;  %v3744_v60 = vrot.slane %v3736_v45, %v8932_v63 }
 0x3bf   : > { %v3752_v39 = vcombine.low %v3696_v19, %v3712_v3  ;;  %v3753_v57 = vcombine.high %v3696_v19, %v3712_v3  ;;  %v3768_v30 = vcombine.low %v3703_v2, %v3719_v1  ;;  %v3840_v4 = vcombine.low %v10367_v10, %v3639_v44 }
 0x3c0   : > { %v3769_v37 = vcombine.high %v3703_v2, %v3719_v1  ;;  %v3856_v19 = vcombine.low %v10428_v47, %v10432_v5  ;;  %v4122_v48 = vcombine.high %v10391_v36, %v10401_v56  ;;  %v3825_v2 = vcombine.high %v10329_v40, %v10398_v42 }
 0x3c1   : > { %v10442_v31 = vrot.slane %v3752_v39, %v8932_v63  ;;  %v3767_v51 = vrot.slane %v3753_v57, %v8932_v63  ;;  %v3848_v38 = vrot.slane %v3840_v4, %v8930_v62  ;;  %v3776_v18 = vrot.slane %v3768_v30, %v8932_v63 }
 0x3c2   : > { %v3841_v1 = vcombine.high %v10367_v10, %v3639_v44  ;;  %v4257_v7 = vcombine.low %v10420_v25, %v10423_v23  ;;  %v3783_v57 = vrot.slane %v3769_v37, %v8932_v63  ;;  %v10483_v36 = vrot.slane %v3856_v19, %v8932_v63 }
 0x3c3   : > { %v3785_v17 = vcombine.high %v10439_v58, %v10442_v31  ;;  %v3786_v15 = vcombine.low %v3735_v13, %v3767_v51  ;;  %v3888_v3 = vcombine.low %v10435_v24, %v3848_v38  ;;  %v3787_v53 = vcombine.high %v3735_v13, %v3767_v51 }
 0x3c4   : > { %v3788_v33 = vcombine.low %v3744_v60, %v3776_v18  ;;  %v3784_v30 = vcombine.low %v10439_v58, %v10442_v31  ;;  %v10486_v40 = vrot.slane %v4090_v50, %v8932_v63  ;;  %v10489_v10 = vrot.slane %v4226_v22, %v8932_v63 }
 0x3c5   : > { %3929 = vrot.lane.b32.xlu0 %v3785_v17, %s8710_s11  ;;  %3933 = vrot.lane.b32.xlu1 %v3786_v15, %s8711_s18  ;;  %v10475_v39 = vrot.slane %v3888_v3, %v8932_v63  ;;  %v4258_v42 = vcombine.high %v10420_v25, %v10423_v23  ;;  %v3793_v56 = vcombine.high %v10295_v8, %v10301_v35 }
 0x3c6   : > { %v3809_v44 = vcombine.high %v10299_v34, %v10303_v41  ;;  %v3751_v45 = vrot.slane %v3737_v29, %v8932_v63  ;;  %v3839_v4 = vrot.slane %v3825_v2, %v8930_v62  ;;  %v4058_v13 = vcombine.high %v10332_v11, %v10335_v59 }
 0x3c7   : > { %v4074_v25 = vcombine.high %v10342_v55, %v10345_v14  ;;  %v3920_v8 = vcombine.low %v10483_v36, %v10475_v39  ;;  %v3855_v35 = vrot.slane %v3841_v1, %v8930_v62  ;;  %v3889_v34 = vcombine.high %v10435_v24, %v3848_v38 }
 0x3c8   : > { %v3789_v41 = vcombine.high %v3744_v60, %v3776_v18  ;;  %v3790_v23 = vcombine.low %v3751_v45, %v3783_v57  ;;  %v4162_v51 = vcombine.high %v10309_v6, %v10324_v26  ;;  %v4178_v50 = vcombine.high %v10321_v21, %v10327_v43 }
 0x3c9   : > { %3937 = vrot.lane.b32.xlu0 %v3787_v53, %s8709_s10  ;;  %3941 = vrot.lane.b32.xlu1 %v3788_v33, %s8712_s19  ;;  %v4194_v22 = vcombine.high %v10352_v54, %v10358_v27  ;;  %v4210_v37 = vcombine.high %v10355_v16, %v10361_v61  ;;  %v3807_v17 = vrot.slane %v3793_v56, %v8930_v62 }
 0x3ca   : > { %v3823_v15 = vrot.slane %v3809_v44, %v8930_v62  ;;  %v3857_v24 = vcombine.high %v10428_v47, %v10432_v5  ;;  %v10524_v38 = vrot.slane %v4121_v12, %v8932_v63  ;;  %v4040_v18 = vrot.slane %v4026_v49, %v8930_v62 }
 0x3cb   : > { %v4056_v19 = vrot.slane %v4042_v46, %v8930_v62  ;;  %v4072_v3 = vrot.slane %v4058_v13, %v8930_v62  ;;  %v3904_v47 = vcombine.low %v3839_v4, %v3855_v35  ;;  %v3791_v5 = vcombine.high %v3751_v45, %v3783_v57 }
 0x3cc   : > { %v3921_v29 = vcombine.high %v10483_v36, %v10475_v39  ;;  %v3903_v12 = vrot.slane %v3889_v34, %v8932_v63  ;;  %v4088_v60 = vrot.slane %v4074_v25, %v8930_v62  ;;  %v4176_v2 = vrot.slane %v4162_v51, %v8930_v62 }
 0x3cd   : > { %3945 = vrot.lane.b32.xlu0 %v3789_v41, %s8713_s21  ;;  %3949 = vrot.lane.b32.xlu1 %v3790_v23, %s8714_s23  ;;  %v4192_v49 = vrot.slane %v4178_v50, %v8930_v62  ;;  %v4208_v1 = vrot.slane %v4194_v22, %v8930_v62  ;;  %v3872_v53 = vcombine.low %v3807_v17, %v3823_v15 }
 0x3ce   : > { %v3871_v46 = vrot.slane %v3857_v24, %v8932_v63  ;;  %v4224_v33 = vrot.slane %v4210_v37, %v8930_v62  ;;  %v10547_v57 = vrot.slane %v4257_v7, %v8932_v63  ;;  %v4136_v56 = vrot.slane %v4122_v48, %v8932_v63 }
 0x3cf   : > { %v4272_v44 = vrot.slane %v4258_v42, %v8932_v63  ;;  %v4105_v45 = vcombine.low %v4040_v18, %v4056_v19  ;;  %v3905_v13 = vcombine.high %v3839_v4, %v3855_v35  ;;  %v3912_v41 = vrot.slane %v3904_v47, %v8932_v63 }
 0x3d0   : > { %v3922_v25 = vcombine.low %v3871_v46, %v3903_v12  ;;  %v3923_v34 = vcombine.high %v3871_v46, %v3903_v12  ;;  %v4154_v23 = vcombine.high %v10448_v0, %v10524_v38  ;;  %v4137_v51 = vcombine.low %v4072_v3, %v4088_v60 }
 0x3d1   : > { %3953 = vrot.lane.b32.xlu0 %v3791_v5, %s8715_s26  ;;  %3957 = vrot.lane.b32.xlu1 %v3921_v29, %s8710_s11  ;;  %v4241_v50 = vcombine.low %v4176_v2, %v4192_v49  ;;  %v3873_v22 = vcombine.high %v3807_v17, %v3823_v15  ;;  %v3880_v48 = vrot.slane %v3872_v53, %v8932_v63 }
 0x3d2   : > { %v4273_v7 = vcombine.low %v4208_v1, %v4224_v33  ;;  %v4290_v42 = vcombine.high %v10463_v28, %v10547_v57  ;;  %v4155_v4 = vcombine.low %v10486_v40, %v4136_v56  ;;  %v4291_v35 = vcombine.low %v10489_v10, %v4272_v44 }
 0x3d3   : > { %v4113_v37 = vrot.slane %v4105_v45, %v8932_v63  ;;  %v3924_v24 = vcombine.low %v3880_v48, %v3912_v41  ;;  %v3925_v47 = vcombine.high %v3880_v48, %v3912_v41  ;;  %v3919_v17 = vrot.slane %v3905_v13, %v8932_v63 }
 0x3d4   : > { %v4106_v15 = vcombine.high %v4040_v18, %v4056_v19  ;;  %v4145_v5 = vrot.slane %v4137_v51, %v8932_v63  ;;  %v4249_v29 = vrot.slane %v4241_v50, %v8932_v63  ;;  %v4138_v12 = vcombine.high %v4072_v3, %v4088_v60 }
 0x3d5   : > { %3961 = vrot.lane.b32.xlu0 %v3922_v25, %s8711_s18  ;;  %3965 = vrot.lane.b32.xlu1 %v3923_v34, %s8709_s10  ;;  %v4242_v53 = vcombine.high %v4176_v2, %v4192_v49  ;;  %v3887_v46 = vrot.slane %v3873_v22, %v8932_v63  ;;  %v4281_v25 = vrot.slane %v4273_v7, %v8932_v63 }
 0x3d6   : > { %v4274_v45 = vcombine.high %v4208_v1, %v4224_v33  ;;  %v4156_v34 = vcombine.high %v10486_v40, %v4136_v56  ;;  %v8282_v18 = vpack.i.bf16 %v4290_v42, %v4154_v23  ;;  %v4292_v19 = vcombine.high %v10489_v10, %v4272_v44 }
 0x3d7   : > { %v3926_v41 = vcombine.low %v3887_v46, %v3919_v17  ;;  %v3927_v13 = vcombine.high %v3887_v46, %v3919_v17  ;;  %v8287_v51 = vpack.i.bf16 %v4291_v35, %v4155_v4  ;;  %v4157_v50 = vcombine.low %v4113_v37, %v4145_v5 }
 0x3d8   : > { %v4120_v3 = vrot.slane %v4106_v15, %v8932_v63  ;;  %v4152_v60 = vrot.slane %v4138_v12, %v8932_v63  ;;  %v4293_v2 = vcombine.low %v4249_v29, %v4281_v25  ;;  %v4256_v49 = vrot.slane %v4242_v53, %v8932_v63 }
 0x3d9   : > { %3969 = vrot.lane.b32.xlu0 %v3924_v24, %s8712_s19  ;;  %3973 = vrot.lane.b32.xlu1 %v3925_v47, %s8713_s21  ;;  %v4288_v40 = vrot.slane %v4274_v45, %v8932_v63  ;;  %v8292_v1 = vpack.i.bf16 %v4292_v19, %v4156_v34  ;;  %v4158_v33 = vcombine.high %v4113_v37, %v4145_v5 }
 0x3da   : > { %v4159_v56 = vcombine.low %v4120_v3, %v4152_v60  ;;  %v8297_v10 = vpack.i.bf16 %v4293_v2, %v4157_v50  ;;  %v4294_v44 = vcombine.high %v4249_v29, %v4281_v25  ;;  %v4160_v22 = vcombine.high %v4120_v3, %v4152_v60 }
 0x3db   : > { %v4295_v23 = vcombine.low %v4256_v49, %v4288_v40  ;;  %v4296_v42 = vcombine.high %v4256_v49, %v4288_v40 }
 0x3dc   : > { %v8302_v48 = vpack.i.bf16 %v4294_v44, %v4158_v33 }
 0x3dd   : > { %3977 = vrot.lane.b32.xlu0 %v3926_v41, %s8714_s23  ;;  %3981 = vrot.lane.b32.xlu1 %v3927_v13, %s8715_s26  ;;  %v8307_v7 = vpack.i.bf16 %v4295_v23, %v4159_v56  ;;  %v8312_v4 = vpack.i.bf16 %v4296_v42, %v4160_v22 }
 0x3e1   : > { %8283 = vrot.lane.b32.xlu0 %v8282_v18, %s8710_s11  ;;  %8288 = vrot.lane.b32.xlu1 %v8287_v51, %s8711_s18 }
 0x3e5   : > { %8293 = vrot.lane.b32.xlu0 %v8292_v1, %s8709_s10  ;;  %8298 = vrot.lane.b32.xlu1 %v8297_v10, %s8712_s19 }
 0x3e9   : > { %8303 = vrot.lane.b32.xlu0 %v8302_v48, %s8713_s21  ;;  %8308 = vrot.lane.b32.xlu1 %v8307_v7, %s8714_s23 }
 0x3ed   : > { %8313 = vrot.lane.b32.xlu0 %v8312_v4, %s8715_s26  ;;  %4385 = vrot.lane.b32.xlu1 %v10306_v52, %s8708_s9 }
 0x3f1   : > { %4387 = vrot.lane.b32.xlu0 %v10309_v6, %s8708_s9  ;;  %4389 = vrot.lane.b32.xlu1 %v10312_v9, %s8708_s9 }
 0x3f5   : > { %4391 = vrot.lane.b32.xlu0 %v10321_v21, %s8708_s9  ;;  %4393 = vrot.lane.b32.xlu1 %v10315_v32, %s8708_s9 }
 0x3f9   : > { %4395 = vrot.lane.b32.xlu0 %v10324_v26, %s8708_s9  ;;  %4397 = vrot.lane.b32.xlu1 %v10318_v20, %s8708_s9 }
 0x3fd   : > { %4399 = vrot.lane.b32.xlu0 %v10327_v43, %s8708_s9  ;;  %4401 = vrot.lane.b32.xlu1 %v10332_v11, %s8708_s9 }
 0x401   : > { %4403 = vrot.lane.b32.xlu0 %v10352_v54, %s8708_s9  ;;  %4405 = vrot.lane.b32.xlu1 %v10342_v55, %s8708_s9 }
 0x405   : > { %4407 = vrot.lane.b32.xlu0 %v10355_v16, %s8708_s9  ;;  %4409 = vrot.lane.b32.xlu1 %v10335_v59, %s8708_s9 }
 0x409   : > { %4411 = vrot.lane.b32.xlu0 %v10358_v27, %s8708_s9  ;;  %4413 = vrot.lane.b32.xlu1 %v10345_v14, %s8708_s9 }
 0x40d   : > { %4415 = vrot.lane.b32.xlu0 %v10361_v61, %s8708_s9 }
 0x437   : > { %v3930_v35 = vpop.permute.xlu0 %3929  ;;  %v3934_v37 = vpop.permute.xlu1 %3933 }
 0x438   : > { %v3984_v12 = vsel %vm799_vm1, %v3784_v30, %v3930_v35 }
 0x439   : > { %v3985_v34 = vsel %vm801_vm2, %v3984_v12, %v3934_v37 }
 0x43b   : > { %v3938_v24 = vpop.permute.xlu0 %3937  ;;  %v3942_v47 = vpop.permute.xlu1 %3941 }
 0x43c   : > { %v3986_v41 = vsel %vm803_vm3, %v3985_v34, %v3938_v24 }
 0x43d   : > { %v3987_v31 = vsel %vm805_vm4, %v3986_v41, %v3942_v47 }
 0x43f   : > { %v3946_v17 = vpop.permute.xlu0 %3945  ;;  %v3950_v15 = vpop.permute.xlu1 %3949 }
 0x440   : > { %v3988_v39 = vsel %vm807_vm5, %v3987_v31, %v3946_v17 }
 0x441   : > { %v3989_v50 = vsel %vm809_vm6, %v3988_v39, %v3950_v15 }
 0x443   : > { %v3954_v5 = vpop.permute.xlu0 %3953  ;;  %v3958_v29 = vpop.permute.xlu1 %3957 }
 0x444   : > { %v3991_v53 = vsel %vm799_vm1, %v3920_v8, %v3958_v29  ;;  %v3990_v60 = vsel %vm811_vm7, %v3989_v50, %v3954_v5 }
 0x447   : > { %v3962_v46 = vpop.permute.xlu0 %3961  ;;  %v3966_v25 = vpop.permute.xlu1 %3965 }
 0x448   : > { %v3992_v45 = vsel %vm801_vm2, %v3991_v53, %v3962_v46 }
 0x449   : > { %v3993_v13 = vsel %vm803_vm3, %v3992_v45, %v3966_v25 }
 0x44b   : > { %v3970_v18 = vpop.permute.xlu0 %3969  ;;  %v3974_v19 = vpop.permute.xlu1 %3973 }
 0x44c   : > { %v3994_v58 = vsel %vm805_vm4, %v3993_v13, %v3970_v18 }
 0x44d   : > { %v3995_v30 = vsel %vm807_vm5, %v3994_v58, %v3974_v19 }
 0x44f   : > { %v3978_v36 = vpop.permute.xlu0 %3977  ;;  %v3982_v8 = vpop.permute.xlu1 %3981 }
 0x450   : > { %v3996_v51 = vsel %vm809_vm6, %v3995_v30, %v3978_v36 }
 0x451   : > { %v3997_v3 = vsel %vm811_vm7, %v3996_v51, %v3982_v8 }
 0x452   : > { %7608 = vmatprep.subr.mxu0 %v3997_v3 }
 0x453   : > { %v10636_v2 = vpop.permute.xlu0 %8283  ;;  %v10638_v49 = vpop.permute.xlu1 %8288  ;;  %7609 = vmatpush1.msra.mxu0 %v3990_v60 }
 0x457   : > { %v10640_v40 = vpop.permute.xlu0 %8293  ;;  %v10642_v1 = vpop.permute.xlu1 %8298 }
 0x45b   : > { %v10644_v33 = vpop.permute.xlu0 %8303  ;;  %v10646_v56 = vpop.permute.xlu1 %8308 }
 0x45f   : > { %v10648_v10 = vpop.permute.xlu0 %8313  ;;  %v4386_v44 = vpop.permute.xlu1 %4385 }
 0x463   : > { %v4388_v23 = vpop.permute.xlu0 %4387  ;;  %v4390_v22 = vpop.permute.xlu1 %4389 }
 0x467   : > { %v4392_v48 = vpop.permute.xlu0 %4391  ;;  %v4394_v7 = vpop.permute.xlu1 %4393 }
 0x468   : > { %v4433_v15 = vcombine.low %v4386_v44, %v4394_v7  ;;  %v4434_v12 = vcombine.high %v4386_v44, %v4394_v7 }
 0x46a   : > { %v4441_v34 = vrot.slane %v4433_v15, %v8930_v62  ;;  %v10653_v30 = vrot.slane %v4434_v12, %v8930_v62 }
 0x46b   : > { %v4396_v42 = vpop.permute.xlu0 %4395  ;;  %v4398_v4 = vpop.permute.xlu1 %4397 }
 0x46c   : > { %v4449_v17 = vcombine.low %v4390_v22, %v4398_v4  ;;  %v4569_v53 = vcombine.low %v4388_v23, %v4396_v42  ;;  %v4570_v41 = vcombine.high %v4388_v23, %v4396_v42  ;;  %v4450_v13 = vcombine.high %v4390_v22, %v4398_v4 }
 0x46e   : > { %v4457_v46 = vrot.slane %v4449_v17, %v8930_v62  ;;  %v4577_v36 = vrot.slane %v4569_v53, %v8930_v62  ;;  %v4584_v44 = vrot.slane %v4570_v41, %v8930_v62  ;;  %v4464_v23 = vrot.slane %v4450_v13, %v8930_v62 }
 0x46f   : > { %v4400_v35 = vpop.permute.xlu0 %4399  ;;  %v4402_v37 = vpop.permute.xlu1 %4401 }
 0x470   : > { %v4585_v25 = vcombine.low %v4392_v48, %v4400_v35  ;;  %v4586_v58 = vcombine.high %v4392_v48, %v4400_v35  ;;  %v4497_v8 = vcombine.low %v4441_v34, %v4457_v46  ;;  %v4498_v17 = vcombine.high %v4441_v34, %v4457_v46 }
 0x472   : > { %v4593_v51 = vrot.slane %v4585_v25, %v8930_v62  ;;  %v4600_v42 = vrot.slane %v4586_v58, %v8930_v62  ;;  %v4513_v58 = vcombine.low %v10653_v30, %v4464_v23 }
 0x473   : > { %v4404_v24 = vpop.permute.xlu0 %4403  ;;  %v4406_v47 = vpop.permute.xlu1 %4405 }
 0x474   : > { %v4633_v12 = vcombine.low %v4577_v36, %v4593_v51  ;;  %v4634_v53 = vcombine.high %v4577_v36, %v4593_v51  ;;  %v4649_v34 = vcombine.low %v4584_v44, %v4600_v42 }
 0x476   : > { %v10680_v51 = vrot.slane %v4633_v12, %v8932_v63 }
 0x477   : > { %v4408_v5 = vpop.permute.xlu0 %4407  ;;  %v4410_v29 = vpop.permute.xlu1 %4409 }
 0x478   : > { %v4465_v45 = vcombine.low %v4402_v37, %v4410_v29  ;;  %v4466_v50 = vcombine.high %v4402_v37, %v4410_v29  ;;  %v10664_v37 = vrot.slane %v4497_v8, %v8932_v63  ;;  %v4512_v8 = vrot.slane %v4498_v17, %v8932_v63 }
 0x47a   : > { %v4473_v3 = vrot.slane %v4465_v45, %v8930_v62  ;;  %v4480_v25 = vrot.slane %v4466_v50, %v8930_v62  ;;  %v4650_v50 = vcombine.high %v4584_v44, %v4600_v42 }
 0x47b   : > { %v4412_v18 = vpop.permute.xlu0 %4411  ;;  %v4414_v19 = vpop.permute.xlu1 %4413 }
 0x47c   : > { %v4481_v31 = vcombine.low %v4406_v47, %v4414_v19  ;;  %v4482_v39 = vcombine.high %v4406_v47, %v4414_v19  ;;  %v4601_v22 = vcombine.low %v4404_v24, %v4412_v18  ;;  %v4602_v48 = vcombine.high %v4404_v24, %v4412_v18 }
 0x47e   : > { %v4489_v60 = vrot.slane %v4481_v31, %v8930_v62  ;;  %v4496_v4 = vrot.slane %v4482_v39, %v8930_v62  ;;  %v4609_v24 = vrot.slane %v4601_v22, %v8930_v62  ;;  %v4616_v41 = vrot.slane %v4602_v48, %v8930_v62 }
 0x47f   : > { %v4416_v7 = vpop.permute.xlu0 %4415 }
 0x480   : > { %v4529_v35 = vcombine.low %v4473_v3, %v4489_v60  ;;  %v4530_v47 = vcombine.high %v4473_v3, %v4489_v60  ;;  %v4617_v15 = vcombine.low %v4408_v5, %v4416_v7  ;;  %v4618_v29 = vcombine.high %v4408_v5, %v4416_v7 }
 0x481   : > { %v4545_v19 = vcombine.low %v4480_v25, %v4496_v4  ;;  %v4648_v60 = vrot.slane %v4634_v53, %v8932_v63  ;;  %v4514_v53 = vcombine.high %v10653_v30, %v4464_v23 }
 0x482   : > { %v10668_v45 = vrot.slane %v4529_v35, %v8932_v63  ;;  %v4625_v13 = vrot.slane %v4617_v15, %v8930_v62  ;;  %v4632_v46 = vrot.slane %v4618_v29, %v8930_v62  ;;  %v4544_v18 = vrot.slane %v4530_v47, %v8932_v63 }
 0x483   : > { %v4657_v35 = vrot.slane %v4649_v34, %v8932_v63  ;;  %v4546_v47 = vcombine.high %v4480_v25, %v4496_v4  ;;  %v4553_v15 = vrot.slane %v4545_v19, %v8932_v63  ;;  %v4664_v34 = vrot.slane %v4650_v50, %v8932_v63 }
 0x484   : > { %v4665_v31 = vcombine.low %v4609_v24, %v4625_v13  ;;  %v4666_v39 = vcombine.high %v4609_v24, %v4625_v13  ;;  %v4681_v36 = vcombine.low %v4616_v41, %v4632_v46  ;;  %v4682_v3 = vcombine.high %v4616_v41, %v4632_v46 }
 0x485   : > { %v4563_v17 = vcombine.low %v4512_v8, %v4544_v18  ;;  %v4562_v42 = vcombine.high %v10664_v37, %v10668_v45  ;;  %v4521_v24 = vrot.slane %v4513_v58, %v8932_v63  ;;  %v4560_v19 = vrot.slane %v4546_v47, %v8932_v63 }
 0x486   : > { %v10684_v22 = vrot.slane %v4665_v31, %v8932_v63  ;;  %v4680_v48 = vrot.slane %v4666_v39, %v8932_v63  ;;  %v4689_v7 = vrot.slane %v4681_v36, %v8932_v63  ;;  %v4696_v41 = vrot.slane %v4682_v3, %v8932_v63 }
 0x487   : > { %v4565_v31 = vcombine.low %v4521_v24, %v4553_v15  ;;  %v4564_v39 = vcombine.high %v4512_v8, %v4544_v18  ;;  %v4528_v30 = vrot.slane %v4514_v53, %v8932_v63  ;;  %v4566_v50 = vcombine.high %v4521_v24, %v4553_v15 }
 0x488   : > { %v4699_v44 = vcombine.low %v4648_v60, %v4680_v48  ;;  %v4698_v12 = vcombine.high %v10680_v51, %v10684_v22  ;;  %v4701_v13 = vcombine.low %v4657_v35, %v4689_v7  ;;  %v4700_v46 = vcombine.high %v4648_v60, %v4680_v48 }
 0x489   : > { %v4703_v36 = vcombine.low %v4664_v34, %v4696_v41  ;;  %v4702_v3 = vcombine.high %v4657_v35, %v4689_v7  ;;  %v4567_v60 = vcombine.low %v4528_v30, %v4560_v19  ;;  %v4568_v18 = vcombine.high %v4528_v30, %v4560_v19  ;;  %v10732_v7 = vld [vmem:[%s8908_s8 + $0xd0] sm:$0x3] }
 0x48a   : > { %v8322_v4 = vpack.i.bf16 %v4699_v44, %v4563_v17  ;;  %v8317_v25 = vpack.i.bf16 %v4698_v12, %v4562_v42  ;;  %v8332_v23 = vpack.i.bf16 %v4701_v13, %v4565_v31  ;;  %v8327_v58 = vpack.i.bf16 %v4700_v46, %v4564_v39  ;;  %v10741_v44 = vld [vmem:[%s8908_s8 + $0x100] sm:$0x3]  ;;  %v10744_v42 = vld [vmem:[%s8908_s8 + $0xe8] sm:$0x3]  ;;  %v10761_v13 = vld [vmem:[%s8908_s8 + $0x118] sm:$0x3] }
 0x48b   : > { %v8342_v48 = vpack.i.bf16 %v4703_v36, %v4567_v60  ;;  %v8337_v47 = vpack.i.bf16 %v4702_v3, %v4566_v50  ;;  %v4704_v17 = vcombine.high %v4664_v34, %v4696_v41  ;;  %v5178_v35 = vrot.slane %v10309_v6, 1 }
 0x48c   : > { %8323 = vrot.lane.b32.xlu0 %v8322_v4, %s8711_s18  ;;  %8318 = vrot.lane.b32.xlu1 %v8317_v25, %s8710_s11  ;;  %v5180_v15 = vrot.slane %v10732_v7, 1  ;;  %v5188_v53 = vrot.slane %v10324_v26, 1  ;;  %v5190_v24 = vrot.slane %v10741_v44, 1  ;;  %v5183_v41 = vrot.slane %v10321_v21, 1  ;;  %v10758_v25 = vld [vmem:[%s8908_s8 + $0x130] sm:$0x3] }
 0x48d   : > { %v8347_v8 = vpack.i.bf16 %v4704_v17, %v4568_v18  ;;  %v5185_v4 = vrot.slane %v10744_v42, 1  ;;  %v5198_v46 = vrot.slane %v10352_v54, 1  ;;  %v5200_v34 = vrot.slane %v10758_v25, 1  ;;  %v10798_v17 = vld [vmem:[%s8908_s8 + $0x178] sm:$0x3] }
 0x48e   : > { %v10751_v12 = vsel %vm1630_vm0, %v5178_v35, %v5180_v15  ;;  %v10770_v19 = vsel %vm1630_vm0, %v5188_v53, %v5190_v24  ;;  %v5193_v39 = vrot.slane %v10327_v43, 1  ;;  %v5195_v30 = vrot.slane %v10761_v13, 1 }
 0x48f   : > { %v10773_v31 = vsel %vm1630_vm0, %v5183_v41, %v5185_v4  ;;  %v10788_v36 = vsel %vm1630_vm0, %v5198_v46, %v5200_v34  ;;  %v5208_v3 = vrot.slane %v10358_v27, 1  ;;  %v5213_v15 = vrot.slane %v10361_v61, 1 }
 0x490   : > { %8333 = vrot.lane.b32.xlu0 %v8332_v23, %s8712_s19  ;;  %8328 = vrot.lane.b32.xlu1 %v8327_v58, %s8709_s10  ;;  %v10778_v23 = vld [vmem:[%s8908_s8 + $0x160] sm:$0x3]  ;;  %v10781_v58 = vld [vmem:[%s8908_s8 + $0x148] sm:$0x3]  ;;  %v10792_v60 = vsel %vm1630_vm0, %v5193_v39, %v5195_v30  ;;  %v5215_v24 = vrot.slane %v10798_v17, 1  ;;  %v5177_v34 = vrot.slane %v10306_v52, 1 }
 0x491   : > { %v5210_v50 = vrot.slane %v10778_v23, 1  ;;  %v5197_v29 = vrot.slane %v10332_v11, 1 }
 0x492   : > { %v10817_v4 = vsel %vm1630_vm0, %v5213_v15, %v5215_v24  ;;  %v10837_v30 = vsel %vm1630_vm0, %v5177_v34, %v5178_v35  ;;  %v5192_v35 = vrot.slane %v10318_v20, 1  ;;  %v6367_v34 = vrot.slane %v10321_v21, 2 }
 0x493   : > { %v10805_v18 = vsel %vm1630_vm0, %v5208_v3, %v5210_v50  ;;  %v5187_v50 = vrot.slane %v10315_v32, 1 }
 0x494   : > { %8343 = vrot.lane.b32.xlu0 %v8342_v48, %s8714_s23  ;;  %8338 = vrot.lane.b32.xlu1 %v8337_v47, %s8713_s21  ;;  %v5203_v48 = vrot.slane %v10355_v16, 1  ;;  %v5205_v47 = vrot.slane %v10781_v58, 1 }
 0x495   : > { %v10846_v24 = vsel %vm1630_vm0, %v5187_v50, %v5188_v53  ;;  %v5207_v53 = vrot.slane %v10335_v59, 1  ;;  %v8295_v50 = vunpack.i.l.bf16 %v10640_v40 }
 0x498   : > { %4779 = vrot.lane.b32.xlu0 %v10309_v6, %s8716_s27  ;;  %8348 = vrot.lane.b32.xlu1 %v8347_v8, %s8715_s26  ;;  %v10808_v8 = vsel %vm1630_vm0, %v5203_v48, %v5205_v47  ;;  %v5182_v47 = vrot.slane %v10312_v9, 1 }
 0x49a   : > { %v10849_v5 = vsel %vm1630_vm0, %v5182_v47, %v5183_v41  ;;  %v5202_v41 = vrot.slane %v10342_v55, 1 }
 0x49c   : > { %4787 = vrot.lane.b32.xlu0 %v10324_v26, %s8716_s27  ;;  %4783 = vrot.lane.b32.xlu1 %v10321_v21, %s8716_s27 }
 0x4a0   : > { %4795 = vrot.lane.b32.xlu0 %v10352_v54, %s8716_s27  ;;  %4791 = vrot.lane.b32.xlu1 %v10327_v43, %s8716_s27 }
 0x4a4   : > { %4803 = vrot.lane.b32.xlu0 %v10358_v27, %s8716_s27  ;;  %4799 = vrot.lane.b32.xlu1 %v10355_v16, %s8716_s27 }
 0x4a8   : > { %4777 = vrot.lane.b32.xlu0 %v10306_v52, %s8716_s27  ;;  %4807 = vrot.lane.b32.xlu1 %v10361_v61, %s8716_s27 }
 0x4ac   : > { %4785 = vrot.lane.b32.xlu0 %v10315_v32, %s8716_s27  ;;  %4781 = vrot.lane.b32.xlu1 %v10312_v9, %s8716_s27  ;;  %v10858_v9 = vsel %vm1630_vm0, %v5197_v29, %v5198_v46  ;;  %v10861_v32 = vsel %vm1630_vm0, %v5192_v35, %v5193_v39  ;;  %v5212_v29 = vrot.slane %v10345_v14, 1  ;;  %v4153_v46 = vcombine.low %v10448_v0, %v10524_v38 }
 0x4ad   : > { %v4289_v39 = vcombine.low %v10463_v28, %v10547_v57  ;;  %v6369_v0 = vrot.slane %v10744_v42, 2  ;;  %v8290_v38 = vunpack.i.l.bf16 %v10638_v49  ;;  %v6382_v35 = vrot.slane %v10352_v54, 2  ;;  %v8624_v54 = vld [vmem:[%s8908_s8 + $0x138] sm:$0xff] }
 0x4b0   : > { %4793 = vrot.lane.b32.xlu0 %v10332_v11, %s8716_s27  ;;  %4789 = vrot.lane.b32.xlu1 %v10318_v20, %s8716_s27  ;;  %v10870_v20 = vsel %vm1630_vm0, %v5207_v53, %v5208_v3  ;;  %v10873_v11 = vsel %vm1630_vm0, %v5202_v41, %v5203_v48  ;;  %v8286_v3 = vunpack.i.h.bf16 %v10636_v2  ;;  %v8285_v48 = vunpack.i.l.bf16 %v10636_v2 }
 0x4b1   : > { %v8291_v2 = vunpack.i.h.bf16 %v10638_v49  ;;  %v10934_v49 = vsel %vm2815_vm8, %v6367_v34, %v6369_v0  ;;  %v6377_v53 = vrot.slane %v10327_v43, 2  ;;  %v6379_v41 = vrot.slane %v10761_v13, 2 }
 0x4b2   : > { %v4353_v57 = vsel %vm799_vm1, %v4153_v46, %v8285_v48  ;;  %v4360_v47 = vsel %vm799_vm1, %v4289_v39, %v8286_v3  ;;  %v8301_v3 = vunpack.i.h.bf16 %v10642_v1  ;;  %v6394_v13 = vrot.slane %v10778_v23, 2 }
 0x4b3   : > { %v4361_v46 = vsel %vm801_vm2, %v4360_v47, %v8291_v2  ;;  %v12664_v0 = vrot.slane %v10355_v16, 2  ;;  %v12784_v43 = vrot.slane %v10358_v27, 2 }
 0x4b4   : > { %4801 = vrot.lane.b32.xlu0 %v10335_v59, %s8716_s27  ;;  %4797 = vrot.lane.b32.xlu1 %v10342_v55, %s8716_s27  ;;  %v10881_v59 = vsel %vm1630_vm0, %v5212_v29, %v5213_v15  ;;  %v6362_v55 = vrot.slane %v10309_v6, 2  ;;  %v6372_v15 = vrot.slane %v10324_v26, 2  ;;  %v4354_v29 = vsel %vm801_vm2, %v4353_v57, %v8290_v38 }
 0x4b5   : > { %v4355_v39 = vsel %vm803_vm3, %v4354_v29, %v8295_v50  ;;  %v6389_v38 = vrot.slane %v10781_v58, 2 }
 0x4b8   : > { %5579 = vrot.lane.b32.xlu0 %v10751_v12, %s8708_s9  ;;  %4805 = vrot.lane.b32.xlu1 %v10345_v14, %s8716_s27  ;;  %v6364_v14 = vrot.slane %v10732_v7, 2  ;;  %v6374_v7 = vrot.slane %v10741_v44, 2  ;;  %v8296_v44 = vunpack.i.h.bf16 %v10640_v40  ;;  %v6384_v40 = vrot.slane %v10758_v25, 2 }
 0x4b9   : > { %v12665_v25 = vrot.slane %v10358_v27, 2  ;;  %v12786_v27 = vrot.slane %v10361_v61, 2 }
 0x4ba   : > { %v10914_v28 = vsel %vm2815_vm8, %v6362_v55, %v6364_v14  ;;  %v10929_v42 = vsel %vm2815_vm8, %v6372_v15, %v6374_v7  ;;  %v8300_v14 = vunpack.i.l.bf16 %v10642_v1  ;;  %v4362_v48 = vsel %vm803_vm3, %v4361_v46, %v8296_v44 }
 0x4bb   : > { %v10955_v7 = vsel %vm2815_vm8, %v6382_v35, %v6384_v40  ;;  %v10960_v1 = vsel %vm2815_vm8, %v6377_v53, %v6379_v41  ;;  %v6361_v44 = vrot.slane %v10306_v52, 2  ;;  %v4363_v40 = vsel %vm805_vm4, %v4362_v48, %v8301_v3 }
 0x4bc   : > { %5587 = vrot.lane.b32.xlu0 %v10770_v19, %s8708_s9  ;;  %5583 = vrot.lane.b32.xlu1 %v10773_v31, %s8708_s9  ;;  %12775 = vst [vmem:[#allocation15_spill] sm:$0xff] %v10955_v7  ;;  %v4356_v57 = vsel %vm805_vm4, %v4355_v39, %v8300_v14  ;;  %v10974_v58 = vsel %vm2815_vm8, %v12665_v25, %v6394_v13  ;;  %v12666_v41 = vrot.slane %v10361_v61, 2  ;;  %v6399_v13 = vrot.slane %v10798_v17, 2 }
 0x4bd   : > { %12776 = vst [vmem:[#allocation13_spill] sm:$0xff] %v10974_v58  ;;  %v12777_v52 = vcombine.low %v10680_v51, %v10684_v22  ;;  %v12778_v39 = vcombine.low %v10664_v37, %v10668_v45  ;;  %v10988_v48 = vsel %vm2815_vm8, %v12664_v0, %v6389_v38  ;;  %v8311_v51 = vunpack.i.h.bf16 %v10646_v56 }
 0x4be   : > { %12779 = vst [vmem:[#allocation14_spill] sm:$0xff] %v10988_v48  ;;  %v8310_v22 = vunpack.i.l.bf16 %v10646_v56  ;;  %v10998_v38 = vsel %vm2815_vm8, %v6361_v44, %v6362_v55  ;;  %v11012_v55 = vsel %vm2815_vm8, %v12666_v41, %v6399_v13  ;;  %v8620_v44 = vld [vmem:[%s8908_s8 + $0xd8] sm:$0xff]  ;;  %v5370_v61 = vcombine.high %v10751_v12, %v10770_v19 }
 0x4bf   : > { %12780 = vst [vmem:[#allocation16_spill] sm:$0xff] %v10998_v38  ;;  %12781 = vst [vmem:[#allocation9_spill] sm:$0xff] %v11012_v55 }
 0x4c0   : > { %5595 = vrot.lane.b32.xlu0 %v10788_v36, %s8708_s9  ;;  %5591 = vrot.lane.b32.xlu1 %v10792_v60, %s8708_s9 }
 0x4c4   : > { %5603 = vrot.lane.b32.xlu0 %v10805_v18, %s8708_s9  ;;  %5599 = vrot.lane.b32.xlu1 %v10808_v8, %s8708_s9 }
 0x4c8   : > { %5971 = vrot.lane.b32.xlu0 %v10751_v12, %s8716_s27  ;;  %5607 = vrot.lane.b32.xlu1 %v10817_v4, %s8708_s9 }
 0x4cc   : > { %5979 = vrot.lane.b32.xlu0 %v10770_v19, %s8716_s27  ;;  %5975 = vrot.lane.b32.xlu1 %v10773_v31, %s8716_s27 }
 0x4d0   : > { %5987 = vrot.lane.b32.xlu0 %v10788_v36, %s8716_s27  ;;  %5983 = vrot.lane.b32.xlu1 %v10792_v60, %s8716_s27 }
 0x4d4   : > { %5995 = vrot.lane.b32.xlu0 %v10805_v18, %s8716_s27  ;;  %5991 = vrot.lane.b32.xlu1 %v10808_v8, %s8716_s27 }
 0x4d8   : > { %5577 = vrot.lane.b32.xlu0 %v10837_v30, %s8708_s9  ;;  %5999 = vrot.lane.b32.xlu1 %v10817_v4, %s8716_s27 }
 0x4dc   : > { %5585 = vrot.lane.b32.xlu0 %v10846_v24, %s8708_s9  ;;  %5581 = vrot.lane.b32.xlu1 %v10849_v5, %s8708_s9 }
 0x4e0   : > { %5593 = vrot.lane.b32.xlu0 %v10858_v9, %s8708_s9  ;;  %5589 = vrot.lane.b32.xlu1 %v10861_v32, %s8708_s9 }
 0x4e4   : > { %5601 = vrot.lane.b32.xlu0 %v10870_v20, %s8708_s9  ;;  %5597 = vrot.lane.b32.xlu1 %v10873_v11, %s8708_s9 }
 0x4e8   : > { %5969 = vrot.lane.b32.xlu0 %v10837_v30, %s8716_s27  ;;  %5605 = vrot.lane.b32.xlu1 %v10881_v59, %s8708_s9 }
 0x4ec   : > { %5977 = vrot.lane.b32.xlu0 %v10846_v24, %s8716_s27  ;;  %5973 = vrot.lane.b32.xlu1 %v10849_v5, %s8716_s27 }
 0x4f0   : > { %5985 = vrot.lane.b32.xlu0 %v10858_v9, %s8716_s27  ;;  %5981 = vrot.lane.b32.xlu1 %v10861_v32, %s8716_s27 }
 0x4f4   : > { %5993 = vrot.lane.b32.xlu0 %v10870_v20, %s8716_s27  ;;  %5989 = vrot.lane.b32.xlu1 %v10873_v11, %s8716_s27 }
 0x4f8   : > { %6763 = vrot.lane.b32.xlu0 %v10914_v28, %s8708_s9  ;;  %5997 = vrot.lane.b32.xlu1 %v10881_v59, %s8716_s27 }
 0x4fc   : > { %6771 = vrot.lane.b32.xlu0 %v10929_v42, %s8708_s9  ;;  %6767 = vrot.lane.b32.xlu1 %v10934_v49, %s8708_s9 }
 0x4fe   : > { %v8324_v2 = vpop.permute.xlu0 %8323  ;;  %v8319_v50 = vpop.permute.xlu1 %8318 }
 0x4ff   : > { %v8321_v47 = vunpack.i.h.bf16 %v8319_v50  ;;  %v8320_v23 = vunpack.i.l.bf16 %v8319_v50  ;;  %v8326_v29 = vunpack.i.h.bf16 %v8324_v2  ;;  %v8325_v46 = vunpack.i.l.bf16 %v8324_v2 }
 0x500   : > { %6779 = vrot.lane.b32.xlu0 %v10955_v7, %s8708_s9  ;;  %6775 = vrot.lane.b32.xlu1 %v10960_v1, %s8708_s9  ;;  %v8306_v2 = vunpack.i.h.bf16 %v10644_v33  ;;  %v8305_v50 = vunpack.i.l.bf16 %v10644_v33 }
 0x501   : > { %v4768_v14 = vsel %vm799_vm1, %v12777_v52, %v8321_v47  ;;  %v4761_v3 = vsel %vm799_vm1, %v12778_v39, %v8320_v23  ;;  %v8619_v52 = vld [vmem:[%s8908_s8 + $0xf0] sm:$0xff] }
 0x502   : > { %v8334_v47 = vpop.permute.xlu0 %8333  ;;  %v8329_v37 = vpop.permute.xlu1 %8328  ;;  %v6371_v17 = vrot.slane %v8619_v52, 2  ;;  %v4762_v33 = vsel %vm801_vm2, %v4761_v3, %v8325_v46  ;;  %v4769_v25 = vsel %vm801_vm2, %v4768_v14, %v8326_v29  ;;  %v6366_v46 = vrot.slane %v8620_v44, 2 }
 0x503   : > { %v8331_v45 = vunpack.i.h.bf16 %v8329_v37  ;;  %v8330_v23 = vunpack.i.l.bf16 %v8329_v37  ;;  %v8336_v39 = vunpack.i.h.bf16 %v8334_v47  ;;  %v8335_v0 = vunpack.i.l.bf16 %v8334_v47 }
 0x504   : > { %6787 = vrot.lane.b32.xlu0 %v10974_v58, %s8708_s9  ;;  %6783 = vrot.lane.b32.xlu1 %v10988_v48, %s8708_s9  ;;  %v8316_v29 = vunpack.i.h.bf16 %v10648_v10  ;;  %v8315_v14 = vunpack.i.l.bf16 %v10648_v10  ;;  %v4364_v37 = vsel %vm807_vm5, %v4363_v40, %v8306_v2  ;;  %v11022_v13 = vsel %vm2815_vm8, %v6371_v17, %v6372_v15  ;;  %v8622_v15 = vld [vmem:[%s8908_s8 + $0x108] sm:$0xff] }
 0x505   : > { %v4763_v6 = vsel %vm803_vm3, %v4762_v33, %v8330_v23  ;;  %v4770_v56 = vsel %vm803_vm3, %v4769_v25, %v8331_v45  ;;  %v4357_v23 = vsel %vm807_vm5, %v4356_v57, %v8305_v50  ;;  %12782 = vst [vmem:[#allocation12_spill] sm:$0xff] %v11022_v13  ;;  %v8621_v45 = vld [vmem:[%s8908_s8 + $0x120] sm:$0xff]  ;;  %v11034_v26 = vsel %vm2815_vm8, %v6366_v46, %v6367_v34  ;;  %v8623_v46 = vld [vmem:[%s8908_s8 + $0x150] sm:$0xff] }
 0x506   : > { %v8344_v3 = vpop.permute.xlu0 %8343  ;;  %v8339_v47 = vpop.permute.xlu1 %8338  ;;  %v6381_v33 = vrot.slane %v8621_v45, 2  ;;  %v4771_v10 = vsel %vm805_vm4, %v4770_v56, %v8336_v39  ;;  %v4764_v57 = vsel %vm805_vm4, %v4763_v6, %v8335_v0  ;;  %12783 = vst [vmem:[#allocation7_spill] sm:$0xff] %v11034_v26  ;;  %v6376_v40 = vrot.slane %v8622_v15, 2 }
 0x507   : > { %v8341_v52 = vunpack.i.h.bf16 %v8339_v47  ;;  %v8340_v25 = vunpack.i.l.bf16 %v8339_v47  ;;  %v8346_v44 = vunpack.i.h.bf16 %v8344_v3  ;;  %v8345_v41 = vunpack.i.l.bf16 %v8344_v3 }
 0x508   : > { %6761 = vrot.lane.b32.xlu0 %v10998_v38, %s8708_s9  ;;  %6791 = vrot.lane.b32.xlu1 %v11012_v55, %s8708_s9  ;;  %v4365_v47 = vsel %vm809_vm6, %v4364_v37, %v8311_v51  ;;  %v4358_v0 = vsel %vm809_vm6, %v4357_v23, %v8310_v22  ;;  %v11052_v56 = vsel %vm2815_vm8, %v6381_v33, %v6382_v35  ;;  %v12785_v33 = vrot.slane %v10355_v16, 2 }
 0x509   : > { %v4772_v2 = vsel %vm807_vm5, %v4771_v10, %v8341_v52  ;;  %v4765_v50 = vsel %vm807_vm5, %v4764_v57, %v8340_v25  ;;  %v4366_v34 = vsel %vm811_vm7, %v4365_v47, %v8316_v29  ;;  %v4359_v6 = vsel %vm811_vm7, %v4358_v0, %v8315_v14  ;;  %v8625_v10 = vld [vmem:[%s8908_s8 + $0x168] sm:$0xff] }
 0x50a   : > { %v11039_v17 = vpop.permute.xlu0 %4779  ;;  %v8349_v3 = vpop.permute.xlu1 %8348  ;;  %v4773_v51 = vsel %vm809_vm6, %v4772_v2, %v8346_v44  ;;  %v4766_v22 = vsel %vm809_vm6, %v4765_v50, %v8345_v41  ;;  %v6391_v29 = vrot.slane %v8623_v46, 2  ;;  %v11060_v14 = vsel %vm2815_vm8, %v6376_v40, %v6377_v53 }
 0x50b   : > { %v8351_v39 = vunpack.i.h.bf16 %v8349_v3  ;;  %v8350_v21 = vunpack.i.l.bf16 %v8349_v3  ;;  %v6386_v52 = vrot.slane %v8624_v54, 2  ;;  %v6396_v57 = vrot.slane %v8625_v10, 2 }
 0x50c   : > { %6769 = vrot.lane.b32.xlu0 %v11022_v13, %s8708_s9  ;;  %6765 = vrot.lane.b32.xlu1 %v11034_v26, %s8708_s9  ;;  %v11076_v53 = vsel %vm2815_vm8, %v6391_v29, %v12784_v43  ;;  %v5369_v2 = vcombine.low %v10751_v12, %v10770_v19  ;;  %v5385_v50 = vcombine.low %v10773_v31, %v10792_v60 }
 0x50d   : > { %v4774_v37 = vsel %vm811_vm7, %v4773_v51, %v8351_v39  ;;  %v4767_v23 = vsel %vm811_vm7, %v4766_v22, %v8350_v21  ;;  %v11081_v44 = vsel %vm2815_vm8, %v6386_v52, %v12785_v33  ;;  %v11095_v16 = vsel %vm2815_vm8, %v6396_v57, %v12786_v27 }
 0x50e   : > { %v11065_v35 = vpop.permute.xlu0 %4787  ;;  %v11067_v25 = vpop.permute.xlu1 %4783  ;;  %v7915_v45 = vpack.c.bf16 %v4774_v37, %v4366_v34  ;;  %v7917_v41 = vpack.c.bf16 %v4767_v23, %v4359_v6  ;;  %v5401_v0 = vcombine.low %v10788_v36, %v10805_v18  ;;  %v5417_v39 = vcombine.low %v10808_v8, %v10817_v4 }
 0x50f   : > { %v11116_v21 = vrot.slane %v5369_v2, %v8930_v62  ;;  %v5386_v34 = vcombine.high %v10773_v31, %v10792_v60  ;;  %v11121_v6 = vrot.slane %v5385_v50, %v8930_v62  ;;  %v5402_v46 = vcombine.high %v10788_v36, %v10805_v18 }
 0x510   : > { %6777 = vrot.lane.b32.xlu0 %v11052_v56, %s8708_s9  ;;  %6773 = vrot.lane.b32.xlu1 %v11060_v14, %s8708_s9  ;;  %v5409_v12 = vrot.slane %v5401_v0, %v8930_v62  ;;  %v5418_v19 = vcombine.high %v10808_v8, %v10817_v4  ;;  %v5425_v31 = vrot.slane %v5417_v39, %v8930_v62 }
 0x511   : > { %7916 = vmatprep.subr.bf16.mxu1 %v7915_v45  ;;  %v11140_v60 = vrot.slane %v5370_v61, %v8930_v62  ;;  %v11147_v37 = vrot.slane %v5386_v34, %v8930_v62  ;;  %v5433_v8 = vcombine.low %v11116_v21, %v11121_v6  ;;  %v5233_v4 = vcombine.low %v10837_v30, %v10846_v24 }
 0x512   : > { %7918 = vmatpush1.bf16.msra.mxu1 %v7917_v41  ;;  %v11084_v15 = vpop.permute.xlu0 %4795  ;;  %v11086_v40 = vpop.permute.xlu1 %4791  ;;  %v5249_v23 = vcombine.low %v10849_v5, %v10861_v32  ;;  %v5234_v45 = vcombine.high %v10837_v30, %v10846_v24  ;;  %v5250_v41 = vcombine.high %v10849_v5, %v10861_v32  ;;  %v4961_v43 = vcombine.low %v11039_v17, %v11065_v35 }
 0x513   : > { %v4977_v36 = vcombine.low %v11067_v25, %v11086_v40  ;;  %v11169_v10 = vrot.slane %v5402_v46, %v8930_v62  ;;  %v11172_v57 = vrot.slane %v5418_v19, %v8930_v62  ;;  %v5465_v27 = vcombine.low %v5409_v12, %v5425_v31 }
 0x514   : > { %6785 = vrot.lane.b32.xlu0 %v11076_v53, %s8708_s9  ;;  %6781 = vrot.lane.b32.xlu1 %v11081_v44, %s8708_s9  ;;  %v5265_v5 = vcombine.low %v10858_v9, %v10870_v20  ;;  %v5281_v30 = vcombine.low %v10873_v11, %v10881_v59  ;;  %v11189_v2 = vrot.slane %v5233_v4, %v8930_v62 }
 0x515   : > { %v11183_v24 = vrot.slane %v4977_v36, %v8930_v62  ;;  %v11192_v50 = vrot.slane %v5249_v23, %v8930_v62  ;;  %v5266_v0 = vcombine.high %v10858_v9, %v10870_v20  ;;  %v5282_v39 = vcombine.high %v10873_v11, %v10881_v59 }
 0x516   : > { %v11101_v3 = vpop.permute.xlu0 %4803  ;;  %v11103_v47 = vpop.permute.xlu1 %4799  ;;  %v11203_v46 = vrot.slane %v5234_v45, %v8930_v62  ;;  %v11209_v19 = vrot.slane %v4961_v43, %v8930_v62  ;;  %v5434_v9 = vcombine.high %v11116_v21, %v11121_v6  ;;  %v5449_v20 = vcombine.low %v11140_v60, %v11147_v37 }
 0x517   : > { %v4993_v18 = vcombine.low %v11084_v15, %v11101_v3  ;;  %v5466_v11 = vcombine.high %v5409_v12, %v5425_v31  ;;  %v5481_v59 = vcombine.low %v11169_v10, %v11172_v57  ;;  %v5289_v4 = vrot.slane %v5281_v30, %v8930_v62 }
 0x518   : > { %7155 = vrot.lane.b32.xlu0 %v10914_v28, %s8716_s27  ;;  %6789 = vrot.lane.b32.xlu1 %v11095_v16, %s8708_s9  ;;  %v5025_v21 = vcombine.low %v11209_v19, %v11183_v24  ;;  %v5297_v6 = vcombine.low %v11189_v2, %v11192_v50  ;;  %v5298_v12 = vcombine.high %v11189_v2, %v11192_v50  ;;  %s445_s9 = scalar_lea.vmem %s12643_s2, %s7865_s29 }
 0x519   : > { %v11186_v32 = vrot.slane %v4993_v18, %v8930_v62  ;;  %v5273_v18 = vrot.slane %v5265_v5, %v8930_v62  ;;  %v11232_v31 = vrot.slane %v5266_v0, %v8930_v62  ;;  %v11235_v23 = vrot.slane %v5282_v39, %v8930_v62 }
 0x51a   : > { %v11123_v51 = vpop.permute.xlu0 %4777  ;;  %v11125_v22 = vpop.permute.xlu1 %4807  ;;  %v11247_v30 = vrot.slane %v5433_v8, %v8932_v63  ;;  %v11250_v2 = vrot.slane %v5465_v27, %v8932_v63  ;;  %v11259_v0 = vrot.slane %v5434_v9, %v8932_v63  ;;  %v11262_v39 = vrot.slane %v5466_v11, %v8932_v63 }
 0x51b   : > { %v5009_v29 = vcombine.low %v11103_v47, %v11125_v22  ;;  %v5329_v8 = vcombine.low %v5273_v18, %v5289_v4  ;;  %v11265_v27 = vrot.slane %v5025_v21, %v8932_v63  ;;  %v11276_v11 = vrot.slane %v5449_v20, %v8932_v63 }
 0x51c   : > { %7163 = vrot.lane.b32.xlu0 %v10929_v42, %s8716_s27  ;;  %7159 = vrot.lane.b32.xlu1 %v10934_v49, %s8716_s27  ;;  %12788 = vst [vmem:[#allocation8_spill] sm:$0xff] %v11247_v30  ;;  %12789 = vst [vmem:[#allocation10_spill] sm:$0xff] %v11250_v2  ;;  %v5499_v20 = vcombine.low %v11259_v0, %v11262_v39 }
 0x51d   : > { %v11166_v33 = vrot.slane %v5009_v29, %v8930_v62  ;;  %v11206_v29 = vrot.slane %v5250_v41, %v8930_v62  ;;  %12790 = vst [vmem:[#allocation17_spill] sm:$0xff] %v11265_v27 }
 0x51e   : > { %v11155_v54 = vpop.permute.xlu0 %4785  ;;  %v11157_v52 = vpop.permute.xlu1 %4781 }
 0x51f   : > { %v5057_v36 = vcombine.low %v11186_v32, %v11166_v33 }
 0x520   : > { %7171 = vrot.lane.b32.xlu0 %v10955_v7, %s8716_s27  ;;  %7167 = vrot.lane.b32.xlu1 %v10960_v1, %s8716_s27 }
 0x521   : > { %v11244_v5 = vrot.slane %v5057_v36, %v8932_v63  ;;  %v5330_v36 = vcombine.high %v5273_v18, %v5289_v4  ;;  %v11279_v18 = vrot.slane %v5481_v59, %v8932_v63  ;;  %v5010_v4 = vcombine.high %v11103_v47, %v11125_v22 }
 0x522   : > { %v11198_v61 = vpop.permute.xlu0 %4793  ;;  %v11200_v34 = vpop.permute.xlu1 %4789  ;;  %v4994_v22 = vcombine.high %v11084_v15, %v11101_v3  ;;  %v5058_v59 = vcombine.high %v11186_v32, %v11166_v33  ;;  %v11311_v47 = vrot.slane %v5297_v6, %v8932_v63  ;;  %v5026_v3 = vcombine.high %v11209_v19, %v11183_v24 }
 0x523   : > { %12787 = vst [vmem:[#allocation11_spill] sm:$0xff] %v11244_v5  ;;  %v4841_v50 = vcombine.low %v11157_v52, %v11200_v34  ;;  %v11318_v33 = vrot.slane %v5010_v4, %v8930_v62  ;;  %v11331_v6 = vrot.slane %v5330_v36, %v8932_v63  ;;  %v4962_v24 = vcombine.high %v11039_v17, %v11065_v35 }
 0x524   : > { %7179 = vrot.lane.b32.xlu0 %v10974_v58, %s8716_s27  ;;  %7175 = vrot.lane.b32.xlu1 %v10988_v48, %s8716_s27  ;;  %v4825_v48 = vcombine.low %v11123_v51, %v11155_v54  ;;  %12794 = vst [vmem:[#allocation21_spill] sm:$0xff] %v11311_v47  ;;  %v11336_v19 = vrot.slane %v4994_v22, %v8930_v62 }
 0x525   : > { %v4849_v58 = vrot.slane %v4841_v50, %v8930_v62  ;;  %v5090_v17 = vcombine.high %v11265_v27, %v11244_v5  ;;  %v5040_v35 = vrot.slane %v5026_v3, %v8932_v63 }
 0x526   : > { %v11237_v45 = vpop.permute.xlu0 %4801  ;;  %v11239_v41 = vpop.permute.xlu1 %4797  ;;  %v5073_v22 = vcombine.low %v11336_v19, %v11318_v33 }
 0x527   : > { %v4857_v43 = vcombine.low %v11198_v61, %v11237_v45 }
 0x528   : > { %7153 = vrot.lane.b32.xlu0 %v10998_v38, %s8716_s27  ;;  %7183 = vrot.lane.b32.xlu1 %v11012_v55, %s8716_s27  ;;  %v5498_v38 = vcombine.high %v11247_v30, %v11250_v2  ;;  %v4978_v30 = vcombine.high %v11067_v25, %v11086_v40  ;;  %v4833_v2 = vrot.slane %v4825_v48, %v8930_v62 }
 0x529   : > { %v4865_v50 = vrot.slane %v4857_v43, %v8930_v62  ;;  %v11321_v25 = vrot.slane %v5329_v8, %v8932_v63  ;;  %v11328_v40 = vrot.slane %v5298_v12, %v8932_v63  ;;  %v5072_v43 = vrot.slane %v5058_v59, %v8932_v63 }
 0x52a   : > { %v11273_v55 = vpop.permute.xlu0 %5579  ;;  %v4806_v9 = vpop.permute.xlu1 %4805  ;;  %v4889_v48 = vcombine.low %v4833_v2, %v4849_v58  ;;  %v11341_v4 = vrot.slane %v4978_v30, %v8930_v62  ;;  %v4842_v30 = vcombine.high %v11157_v52, %v11200_v34 }
 0x52b   : > { %12791 = vst [vmem:[#allocation18_spill] sm:$0xff] %v11273_v55  ;;  %v4873_v21 = vcombine.low %v11239_v41, %v4806_v9  ;;  %12795 = vst [vmem:[#allocation22_spill] sm:$0xff] %v11321_v25  ;;  %v4874_v8 = vcombine.high %v11239_v41, %v4806_v9  ;;  %v4826_v41 = vcombine.high %v11123_v51, %v11155_v54 }
 0x52c   : > { %7161 = vrot.lane.b32.xlu0 %v11022_v13, %s8716_s27  ;;  %7157 = vrot.lane.b32.xlu1 %v11034_v26, %s8716_s27  ;;  %v4890_v9 = vcombine.high %v4833_v2, %v4849_v58  ;;  %v11362_v59 = vrot.slane %v4889_v48, %v8932_v63  ;;  %v5091_v54 = vcombine.low %v5040_v35, %v5072_v43 }
 0x52d   : > { %v4881_v7 = vrot.slane %v4873_v21, %v8930_v62  ;;  %v11372_v51 = vrot.slane %v4874_v8, %v8930_v62  ;;  %v5362_v52 = vcombine.high %v11311_v47, %v11321_v25  ;;  %v5363_v3 = vcombine.low %v11328_v40, %v11331_v6 }
 0x52e   : > { %v11306_v26 = vpop.permute.xlu0 %5587  ;;  %v11308_v13 = vpop.permute.xlu1 %5583  ;;  %12799 = vst [vmem:[#allocation26_spill] sm:$0xff] %v11362_v59  ;;  %v5081_v48 = vrot.slane %v5073_v22, %v8932_v63  ;;  %v5092_v47 = vcombine.high %v5040_v35, %v5072_v43  ;;  %v12803_v35 = vcombine.low %v11232_v31, %v11235_v23 }
 0x52f   : > { %12792 = vst [vmem:[#allocation19_spill] sm:$0xff] %v11306_v26  ;;  %12793 = vst [vmem:[#allocation20_spill] sm:$0xff] %v11308_v13  ;;  %v4921_v32 = vcombine.low %v4865_v50, %v4881_v7  ;;  %v4922_v21 = vcombine.high %v4865_v50, %v4881_v7  ;;  %v4858_v7 = vcombine.high %v11198_v61, %v11237_v45 }
 0x530   : > { %7169 = vrot.lane.b32.xlu0 %v11052_v56, %s8716_s27  ;;  %7165 = vrot.lane.b32.xlu1 %v11060_v14, %s8716_s27  ;;  %v11369_v50 = vrot.slane %v4962_v24, %v8930_v62  ;;  %v8352_v45 = vpack.i.bf16 %v5498_v38, %v5090_v17  ;;  %v11389_v24 = vrot.slane %v4826_v41, %v8930_v62 }
 0x531   : > { %v11344_v12 = vrot.slane %v4921_v32, %v8932_v63  ;;  %v4936_v58 = vrot.slane %v4922_v21, %v8932_v63  ;;  %v11392_v8 = vrot.slane %v4858_v7, %v8930_v62  ;;  %v11395_v21 = vrot.slane %v4842_v30, %v8930_v62 }
 0x532   : > { %v11346_v15 = vpop.permute.xlu0 %5595  ;;  %v11348_v36 = vpop.permute.xlu1 %5591  ;;  %v5041_v32 = vcombine.low %v11369_v50, %v11341_v4  ;;  %v4904_v38 = vrot.slane %v4890_v9, %v8932_v63  ;;  %v8362_v7 = vpack.i.bf16 %v5499_v20, %v5091_v54  ;;  %v5761_v30 = vcombine.low %v11273_v55, %v11306_v26 }
 0x533   : > { %12796 = vst [vmem:[#allocation23_spill] sm:$0xff] %v11344_v12  ;;  %12797 = vst [vmem:[#allocation24_spill] sm:$0xff] %v11346_v15  ;;  %v4954_v2 = vcombine.high %v11362_v59, %v11344_v12  ;;  %v5777_v17 = vcombine.low %v11308_v13, %v11348_v36  ;;  %v4937_v22 = vcombine.low %v11392_v8, %v11372_v51 }
 0x534   : > { %12798 = vst [vmem:[#allocation25_spill] sm:$0xff] %v11348_v36  ;;  %7177 = vrot.lane.b32.xlu0 %v11076_v53, %s8716_s27  ;;  %7173 = vrot.lane.b32.xlu1 %v11081_v44, %s8716_s27  ;;  %v4955_v27 = vcombine.low %v4904_v38, %v4936_v58  ;;  %v5049_v13 = vrot.slane %v5041_v32, %v8932_v63 }
 0x535   : > { %v8357_v5 = vpack.i.bf16 %v5362_v52, %v4954_v2  ;;  %v12802_v20 = vcombine.low %v11203_v46, %v11206_v29  ;;  %v5353_v54 = vrot.slane %v12803_v35, %v8932_v63  ;;  %v4905_v52 = vcombine.low %v11389_v24, %v11395_v21 }
 0x536   : > { %v11377_v61 = vpop.permute.xlu0 %5603  ;;  %v11379_v34 = vpop.permute.xlu1 %5599  ;;  %v11429_v2 = vrot.slane %v5777_v17, %v8930_v62  ;;  %v5364_v32 = vcombine.high %v11328_v40, %v11331_v6  ;;  %v12804_v35 = vcombine.high %v11259_v0, %v11262_v39  ;;  %v5093_v59 = vcombine.low %v5049_v13, %v5081_v48 }
 0x537   : > { %12800 = vst [vmem:[#allocation27_spill] sm:$0xff] %v11377_v61  ;;  %v5793_v41 = vcombine.low %v11346_v15, %v11377_v61  ;;  %v5321_v43 = vrot.slane %v12802_v20, %v8932_v63  ;;  %v4945_v17 = vrot.slane %v4937_v22, %v8932_v63  ;;  %v8367_v40 = vpack.i.bf16 %v5363_v3, %v4955_v27 }
 0x538   : > { %7181 = vrot.lane.b32.xlu1 %v11095_v16, %s8716_s27  ;;  %8353 = vrot.lane.b32.xlu0 %v8352_v45, %s8710_s11  ;;  %v8372_v12 = vpack.i.bf16 %v12804_v35, %v5092_v47  ;;  %v4956_v6 = vcombine.high %v4904_v38, %v4936_v58  ;;  %v5094_v39 = vcombine.high %v5049_v13, %v5081_v48  ;;  %s7739_s27 = scalar_lea.sflag [#allocation5], %s8905_s6 }
 0x539   : > { %v11436_v20 = vrot.slane %v5793_v41, %v8930_v62  ;;  %v4913_v41 = vrot.slane %v4905_v52, %v8932_v63  ;;  %v5502_v47 = vcombine.high %v11276_v11, %v11279_v18  ;;  %v5365_v22 = vcombine.low %v5321_v43, %v5353_v54 }
 0x53a   : > { %v11409_v9 = vpop.permute.xlu0 %5971  ;;  %v11411_v25 = vpop.permute.xlu1 %5607  ;;  %v12807_v38 = vcombine.low %v11276_v11, %v11279_v18  ;;  %v8377_v52 = vpack.i.bf16 %v5364_v32, %v4956_v6  ;;  %v5366_v48 = vcombine.high %v5321_v43, %v5353_v54 }
 0x53b   : > { %12801 = vst [vmem:[#allocation28_spill] sm:$0xff] %v11409_v9  ;;  %v5809_v36 = vcombine.low %v11379_v34, %v11411_v25  ;;  %v8392_v26 = vpack.i.bf16 %v5502_v47, %v5094_v39  ;;  %v4958_v18 = vcombine.high %v4913_v41, %v4945_v17  ;;  %v5450_v47 = vcombine.high %v11140_v60, %v11147_v37  ;;  %v12809_v37 = vld [vmem:[#allocation13_spill] sm:$0xff] }
 0x53c   : > { %8363 = vrot.lane.b32.xlu0 %v8362_v7, %s8711_s18  ;;  %8358 = vrot.lane.b32.xlu1 %v8357_v5, %s8710_s11  ;;  %v11446_v7 = vrot.slane %v5761_v30, %v8930_v62  ;;  %v8382_v30 = vpack.i.bf16 %v12807_v38, %v5093_v59  ;;  %v5074_v38 = vcombine.high %v11336_v19, %v11318_v33 }
 0x53d   : > { %v11439_v45 = vrot.slane %v5809_v36, %v8930_v62  ;;  %v6570_v60 = vcombine.high %v10934_v49, %v10960_v1  ;;  %v5042_v33 = vcombine.high %v11369_v50, %v11341_v4  ;;  %v11536_v4 = vrot.slane %v5450_v47, %v8932_v63 }
 0x53e   : > { %v11448_v5 = vpop.permute.xlu0 %5979  ;;  %v11450_v55 = vpop.permute.xlu1 %5975  ;;  %v5825_v0 = vcombine.low %v11446_v7, %v11429_v2 }
 0x53f   : > { %12805 = vst [vmem:[#allocation29_spill] sm:$0xff] %v11448_v5  ;;  %v5857_v36 = vcombine.low %v11436_v20, %v11439_v45  ;;  %v6153_v32 = vcombine.low %v11409_v9, %v11448_v5  ;;  %v12819_v9 = vld [vmem:[#allocation16_spill] sm:$0xff] }
 0x540   : > { %8373 = vrot.lane.b32.xlu0 %v8372_v12, %s8709_s10  ;;  %8368 = vrot.lane.b32.xlu1 %v8367_v40, %s8711_s18  ;;  %v4957_v12 = vcombine.low %v4913_v41, %v4945_v17  ;;  %v11472_v35 = vrot.slane %v5825_v0, %v8932_v63  ;;  %v8402_v17 = vpack.i.bf16 %v5366_v48, %v4958_v18 }
 0x541   : > { %v11462_v27 = vrot.slane %v5857_v36, %v8932_v63  ;;  %v6553_v41 = vcombine.low %v10914_v28, %v10929_v42  ;;  %v6161_v39 = vrot.slane %v6153_v32, %v8930_v62  ;;  %v6569_v48 = vcombine.low %v10934_v49, %v10960_v1 }
 0x542   : > { %v11464_v58 = vpop.permute.xlu0 %5987  ;;  %v11466_v3 = vpop.permute.xlu1 %5983  ;;  %12808 = vst [vmem:[#allocation31_spill] sm:$0xff] %v11472_v35  ;;  %v8387_v11 = vpack.i.bf16 %v5365_v22, %v4957_v12  ;;  %v5482_v22 = vcombine.high %v11169_v10, %v11172_v57  ;;  %v12810_v10 = vld [vmem:[#allocation15_spill] sm:$0xff]  ;;  %v11533_v32 = vrot.slane %v5074_v38, %v8932_v63  ;;  %v11554_v38 = vrot.slane %v6570_v60, %v8930_v62 }
 0x543   : > { %12806 = vst [vmem:[#allocation30_spill] sm:$0xff] %v11462_v27  ;;  %v6169_v13 = vcombine.low %v11450_v55, %v11466_v3  ;;  %v6585_v57 = vcombine.low %v12810_v10, %v12809_v37  ;;  %v11528_v18 = vrot.slane %v6553_v41, %v8930_v62  ;;  %v6586_v1 = vcombine.high %v12810_v10, %v12809_v37 }
 0x544   : > { %8383 = vrot.lane.b32.xlu0 %v8382_v30, %s8712_s19  ;;  %8378 = vrot.lane.b32.xlu1 %v8377_v52, %s8709_s10  ;;  %v6554_v30 = vcombine.high %v10914_v28, %v10929_v42  ;;  %v11539_v50 = vrot.slane %v5482_v22, %v8932_v63  ;;  %v11551_v37 = vrot.slane %v6569_v48, %v8930_v62 }
 0x545   : > { %v6177_v6 = vrot.slane %v6169_v13, %v8930_v62  ;;  %12814 = vst [vmem:[#allocation33_spill] sm:$0xff] %v11554_v38  ;;  %v11557_v47 = vrot.slane %v6585_v57, %v8930_v62  ;;  %v11560_v22 = vrot.slane %v5042_v33, %v8932_v63  ;;  %v5890_v48 = vcombine.high %v11472_v35, %v11462_v27  ;;  %v12816_v57 = vld [vmem:[#allocation9_spill] sm:$0xff]  ;;  %v12817_v33 = vld [vmem:[#allocation14_spill] sm:$0xff] }
 0x546   : > { %v11478_v40 = vpop.permute.xlu0 %5995  ;;  %v11480_v36 = vpop.permute.xlu1 %5991  ;;  %v11573_v10 = vrot.slane %v6586_v1, %v8930_v62  ;;  %v6602_v35 = vcombine.high %v12817_v33, %v12816_v57  ;;  %v6450_v1 = vcombine.high %v11052_v56, %v11076_v53 }
 0x547   : > { %v6185_v43 = vcombine.low %v11464_v58, %v11478_v40  ;;  %v6217_v52 = vcombine.low %v6161_v39, %v6177_v6  ;;  %v5095_v59 = vcombine.low %v11560_v22, %v11533_v32 }
 0x548   : > { %8393 = vrot.lane.b32.xlu0 %v8392_v26, %s8713_s21  ;;  %8388 = vrot.lane.b32.xlu1 %v8387_v11, %s8712_s19  ;;  %12815 = vst [vmem:[#allocation34_spill] sm:$0xff] %v11573_v10  ;;  %v5503_v11 = vcombine.low %v11536_v4, %v11539_v50 }
 0x549   : > { %v6193_v12 = vrot.slane %v6185_v43, %v8930_v62  ;;  %v11542_v43 = vrot.slane %v6554_v30, %v8930_v62 }
 0x54a   : > { %v11491_v54 = vpop.permute.xlu0 %5577  ;;  %v11493_v0 = vpop.permute.xlu1 %5999  ;;  %v8407_v27 = vpack.i.bf16 %v5503_v11, %v5095_v59 }
 0x54b   : > { %v6201_v26 = vcombine.low %v11480_v36, %v11493_v0  ;;  %12811 = vst [vmem:[#allocation13_spill] sm:$0xff] %v11542_v43  ;;  %v5096_v43 = vcombine.high %v11560_v22, %v11533_v32 }
 0x54c   : > { %8403 = vrot.lane.b32.xlu0 %v8402_v17, %s8713_s21  ;;  %v11545_v17 = vrot.slane %v6217_v52, %v8932_v63 }
 0x54d   : > { %v6209_v13 = vrot.slane %v6201_v26, %v8930_v62 }
 0x54e   : > { %v11519_v19 = vpop.permute.xlu0 %5585  ;;  %v11521_v28 = vpop.permute.xlu1 %5581  ;;  %12812 = vst [vmem:[#allocation15_spill] sm:$0xff] %v11545_v17 }
 0x54f   : > { %v6249_v49 = vcombine.low %v6193_v12, %v6209_v13  ;;  %v6250_v41 = vcombine.high %v6193_v12, %v6209_v13  ;;  %v5858_v12 = vcombine.high %v11436_v20, %v11439_v45  ;;  %v6218_v13 = vcombine.high %v6161_v39, %v6177_v6 }
 0x550   : > { %v5826_v45 = vcombine.high %v11446_v7, %v11429_v2  ;;  %v5625_v42 = vcombine.low %v11491_v54, %v11519_v19 }
 0x551   : > { %v11548_v26 = vrot.slane %v6249_v49, %v8932_v63  ;;  %v6601_v49 = vcombine.low %v12817_v33, %v12816_v57  ;;  %v11584_v20 = vrot.slane %v6250_v41, %v8932_v63  ;;  %v12818_v41 = vld [vmem:[#allocation12_spill] sm:$0xff] }
 0x552   : > { %v11562_v30 = vpop.permute.xlu0 %5593  ;;  %v11564_v52 = vpop.permute.xlu1 %5589  ;;  %v6417_v5 = vcombine.low %v12819_v9, %v12818_v41  ;;  %v6418_v33 = vcombine.high %v12819_v9, %v12818_v41  ;;  %v12821_v9 = vld [vmem:[#allocation7_spill] sm:$0xff] }
 0x553   : > { %12813 = vst [vmem:[#allocation32_spill] sm:$0xff] %v11548_v26  ;;  %v6282_v60 = vcombine.high %v11545_v17, %v11548_v26  ;;  %v5641_v6 = vcombine.low %v11521_v28, %v11564_v52  ;;  %v11612_v57 = vrot.slane %v6601_v49, %v8930_v62  ;;  %v11627_v49 = vrot.slane %v6602_v35, %v8930_v62 }
 0x554   : > { %v6433_v59 = vcombine.low %v12821_v9, %v11060_v14  ;;  %v6434_v11 = vcombine.high %v12821_v9, %v11060_v14  ;;  %v11642_v26 = vrot.slane %v5625_v42, %v8930_v62  ;;  %v6465_v9 = vcombine.low %v11081_v44, %v11095_v16 }
 0x555   : > { %v8397_v39 = vpack.i.bf16 %v6282_v60, %v5890_v48  ;;  %v11603_v48 = vrot.slane %v5858_v12, %v8932_v63  ;;  %v11606_v60 = vrot.slane %v6218_v13, %v8932_v63  ;;  %v5840_v12 = vrot.slane %v5826_v45, %v8932_v63  ;;  %12820 = vst [vmem:[#allocation9_spill] sm:$0xff] %v11627_v49 }
 0x556   : > { %v11596_v2 = vpop.permute.xlu0 %5601  ;;  %v11598_v7 = vpop.permute.xlu1 %5597  ;;  %v11620_v13 = vrot.slane %v5641_v6, %v8930_v62  ;;  %v6449_v45 = vcombine.low %v11052_v56, %v11076_v53  ;;  %v6466_v17 = vcombine.high %v11081_v44, %v11095_v16  ;;  %v5504_v56 = vcombine.high %v11536_v4, %v11539_v50 }
 0x557   : > { %8398 = vrot.lane.b32.xlu1 %v8397_v39, %s8710_s11  ;;  %v5657_v38 = vcombine.low %v11562_v30, %v11596_v2  ;;  %v6283_v39 = vcombine.low %v11606_v60, %v11584_v20  ;;  %v5891_v14 = vcombine.low %v5840_v12, %v11603_v48  ;;  %v6649_v61 = vcombine.low %v11557_v47, %v11612_v57 }
 0x558   : > { %v5689_v53 = vcombine.low %v11642_v26, %v11620_v13  ;;  %v11667_v44 = vrot.slane %v6417_v5, %v8930_v62  ;;  %v11670_v16 = vrot.slane %v6418_v33, %v8930_v62  ;;  %v11673_v32 = vrot.slane %v6433_v59, %v8930_v62 }
 0x559   : > { %v11659_v42 = vrot.slane %v5657_v38, %v8930_v62  ;;  %v8417_v15 = vpack.i.bf16 %v6283_v39, %v5891_v14  ;;  %v11678_v38 = vrot.slane %v6434_v11, %v8930_v62  ;;  %v11681_v22 = vrot.slane %v6449_v45, %v8930_v62 }
 0x55a   : > { %v11635_v6 = vpop.permute.xlu0 %5969  ;;  %v11637_v41 = vpop.permute.xlu1 %5605  ;;  %v11684_v39 = vrot.slane %v6450_v1, %v8930_v62  ;;  %v11690_v33 = vrot.slane %v6465_v9, %v8930_v62  ;;  %v11693_v59 = vrot.slane %v6466_v17, %v8930_v62  ;;  %v12822_v11 = vcombine.high %v11203_v46, %v11206_v29 }
 0x55b   : > { %v5673_v35 = vcombine.low %v11598_v7, %v11637_v41  ;;  %8408 = vrot.lane.b32.xlu1 %v8407_v27, %s8714_s23  ;;  %v12823_v1 = vcombine.high %v11232_v31, %v11235_v23  ;;  %v8427_v17 = vpack.i.bf16 %v5504_v56, %v5096_v43  ;;  %v6284_v9 = vcombine.high %v11606_v60, %v11584_v20 }
 0x55c   : > { %v11699_v45 = vrot.slane %v12822_v11, %v8932_v63  ;;  %v5892_v56 = vcombine.high %v5840_v12, %v11603_v48  ;;  %v4906_v29 = vcombine.high %v11389_v24, %v11395_v21  ;;  %v5642_v12 = vcombine.high %v11521_v28, %v11564_v52 }
 0x55d   : > { %v11662_v27 = vrot.slane %v5673_v35, %v8930_v62  ;;  %v11705_v35 = vrot.slane %v12823_v1, %v8932_v63  ;;  %v11759_v28 = vrot.slane %v6649_v61, %v8932_v63  ;;  %v12829_v52 = vcombine.high %v11528_v18, %v11551_v37 }
 0x55e   : > { %v11675_v4 = vpop.permute.xlu0 %5977  ;;  %v5974_v50 = vpop.permute.xlu1 %5973  ;;  %v8437_v23 = vpack.i.bf16 %v6284_v9, %v5892_v56  ;;  %v12826_v9 = vcombine.low %v11528_v18, %v11551_v37  ;;  %v4938_v61 = vcombine.high %v11392_v8, %v11372_v51  ;;  %v5690_v51 = vcombine.high %v11642_v26, %v11620_v13 }
 0x55f   : > { %v5721_v5 = vcombine.low %v11659_v42, %v11662_v27  ;;  %8418 = vrot.lane.b32.xlu1 %v8417_v15, %s8711_s18  ;;  %v11708_v15 = vrot.slane %v5689_v53, %v8932_v63  ;;  %v6017_v24 = vcombine.low %v11635_v6, %v11675_v4  ;;  %12828 = vst [vmem:[#allocation7_spill] sm:$0xff] %v11759_v28 }
 0x560   : > { %v11756_v56 = vrot.slane %v12826_v9, %v8932_v63  ;;  %v5626_v9 = vcombine.high %v11491_v54, %v11519_v19 }
 0x561   : > { %12824 = vst [vmem:[#allocation14_spill] sm:$0xff] %v11708_v15  ;;  %v11711_v14 = vrot.slane %v5721_v5, %v8932_v63 }
 0x562   : > { %v5986_v53 = vpop.permute.xlu0 %5985  ;;  %v5982_v11 = vpop.permute.xlu1 %5981  ;;  %12827 = vst [vmem:[#allocation16_spill] sm:$0xff] %v11756_v56 }
 0x563   : > { %12825 = vst [vmem:[#allocation12_spill] sm:$0xff] %v11711_v14  ;;  %8428 = vrot.lane.b32.xlu1 %v8427_v17, %s8715_s26  ;;  %v6033_v43 = vcombine.low %v5974_v50, %v5982_v11  ;;  %v5674_v17 = vcombine.high %v11598_v7, %v11637_v41  ;;  %v6034_v5 = vcombine.high %v5974_v50, %v5982_v11 }
 0x564   : > { %v11765_v7 = vrot.slane %v12829_v52, %v8932_v63  ;;  %v11768_v41 = vrot.slane %v4906_v29, %v8932_v63  ;;  %v5658_v50 = vcombine.high %v11562_v30, %v11596_v2  ;;  %v11780_v52 = vrot.slane %v5642_v12, %v8930_v62 }
 0x565   : > { %v6041_v11 = vrot.slane %v6033_v43, %v8930_v62  ;;  %v11783_v29 = vrot.slane %v5674_v17, %v8930_v62  ;;  %v5722_v30 = vcombine.high %v11659_v42, %v11662_v27  ;;  %v6025_v2 = vrot.slane %v6017_v24, %v8930_v62 }
 0x566   : > { %v5994_v21 = vpop.permute.xlu0 %5993  ;;  %v5990_v1 = vpop.permute.xlu1 %5989  ;;  %v11793_v8 = vrot.slane %v6034_v5, %v8930_v62  ;;  %v11810_v5 = vrot.slane %v4938_v61, %v8932_v63 }
 0x567   : > { %8438 = vrot.lane.b32.xlu1 %v8437_v23, %s8709_s10  ;;  %v6018_v23 = vcombine.high %v11635_v6, %v11675_v4  ;;  %v6049_v18 = vcombine.low %v5986_v53, %v5994_v21  ;;  %v6050_v37 = vcombine.high %v5986_v53, %v5994_v21  ;;  %v11796_v53 = vrot.slane %v5658_v50, %v8930_v62 }
 0x568   : > { %v6081_v42 = vcombine.low %v6025_v2, %v6041_v11  ;;  %v6082_v27 = vcombine.high %v6025_v2, %v6041_v11  ;;  %v11816_v24 = vrot.slane %v5722_v30, %v8932_v63  ;;  %v12833_v2 = vld [vmem:[#allocation20_spill] sm:$0xff]  ;;  %v11831_v30 = vrot.slane %v5690_v51, %v8932_v63 }
 0x569   : > { %v11799_v43 = vrot.slane %v6018_v23, %v8930_v62  ;;  %v6057_v12 = vrot.slane %v6049_v18, %v8930_v62  ;;  %v11803_v17 = vrot.slane %v6050_v37, %v8930_v62  ;;  %v5737_v21 = vcombine.low %v11796_v53, %v11783_v29 }
 0x56a   : > { %v11788_v6 = vpop.permute.xlu0 %6763  ;;  %v5998_v4 = vpop.permute.xlu1 %5997  ;;  %v11839_v60 = vrot.slane %v6082_v27, %v8932_v63  ;;  %v5810_v51 = vcombine.high %v11379_v34, %v11411_v25  ;;  %v5756_v25 = vcombine.high %v11831_v30, %v11816_v24 }
 0x56b   : > { %v6065_v54 = vcombine.low %v5990_v1, %v5998_v4  ;;  %v6066_v19 = vcombine.high %v5990_v1, %v5998_v4  ;;  %v11813_v1 = vrot.slane %v5626_v9, %v8930_v62  ;;  %v6097_v11 = vcombine.low %v11799_v43, %v11793_v8  ;;  %v12832_v9 = vld [vmem:[#allocation25_spill] sm:$0xff] }
 0x56c   : > { %v5778_v4 = vcombine.high %v12833_v2, %v12832_v9  ;;  %v6202_v2 = vcombine.high %v11480_v36, %v11493_v0  ;;  %v6170_v36 = vcombine.high %v11450_v55, %v11466_v3  ;;  %v6186_v0 = vcombine.high %v11464_v58, %v11478_v40  ;;  %v12837_v55 = vld [vmem:[#allocation27_spill] sm:$0xff]  ;;  %v12838_v3 = vld [vmem:[#allocation24_spill] sm:$0xff]  ;;  %v12839_v58 = vld [vmem:[#allocation29_spill] sm:$0xff] }
 0x56d   : > { %v6073_v26 = vrot.slane %v6065_v54, %v8930_v62  ;;  %v11807_v13 = vrot.slane %v6066_v19, %v8930_v62  ;;  %12830 = vst [vmem:[#allocation35_spill] sm:$0xff] %v11813_v1  ;;  %v5705_v54 = vcombine.low %v11813_v1, %v11780_v52  ;;  %v11836_v19 = vrot.slane %v6081_v42, %v8932_v63  ;;  %v12840_v40 = vld [vmem:[#allocation28_spill] sm:$0xff]  ;;  %v12843_v1 = vld [vmem:[#allocation18_spill] sm:$0xff] }
 0x56e   : > { %v11820_v50 = vpop.permute.xlu0 %6771  ;;  %v11822_v23 = vpop.permute.xlu1 %6767  ;;  %v11855_v42 = vrot.slane %v5737_v21, %v8932_v63  ;;  %v5754_v21 = vcombine.high %v11708_v15, %v11711_v14  ;;  %v5794_v49 = vcombine.high %v12838_v3, %v12837_v55  ;;  %v6154_v10 = vcombine.high %v12840_v40, %v12839_v58 }
 0x56f   : > { %12831 = vst [vmem:[#allocation36_spill] sm:$0xff] %v11822_v23  ;;  %v6113_v18 = vcombine.low %v6057_v12, %v6073_v26  ;;  %v6114_v37 = vcombine.high %v6057_v12, %v6073_v26  ;;  %v6129_v61 = vcombine.low %v11803_v17, %v11807_v13  ;;  %12834 = vst [vmem:[#allocation25_spill] sm:$0xff] %v11836_v19 }
 0x570   : > { %v6216_v14 = vrot.slane %v6202_v2, %v8930_v62  ;;  %v12844_v2 = vcombine.high %v11557_v47, %v11612_v57  ;;  %v11910_v3 = vrot.slane %v5778_v4, %v8930_v62  ;;  %v12845_v57 = vcombine.low %v11699_v45, %v11705_v35 }
 0x571   : > { %v11842_v12 = vrot.slane %v6113_v18, %v8932_v63  ;;  %v11845_v26 = vrot.slane %v6114_v37, %v8932_v63  ;;  %v11848_v9 = vrot.slane %v6129_v61, %v8932_v63  ;;  %v4959_v18 = vcombine.low %v11768_v41, %v11810_v5 }
 0x572   : > { %v11857_v27 = vpop.permute.xlu0 %6779  ;;  %v11859_v20 = vpop.permute.xlu1 %6775  ;;  %v11864_v37 = vrot.slane %v6097_v11, %v8932_v63  ;;  %v11881_v61 = vrot.slane %v5705_v54, %v8932_v63  ;;  %v11907_v55 = vrot.slane %v12844_v2, %v8932_v63  ;;  %v5808_v58 = vrot.slane %v5794_v49, %v8930_v62 }
 0x573   : > { %12835 = vst [vmem:[#allocation20_spill] sm:$0xff] %v11842_v12  ;;  %12836 = vst [vmem:[#allocation37_spill] sm:$0xff] %v11857_v27  ;;  %v6148_v34 = vcombine.high %v11839_v60, %v11845_v26  ;;  %v6146_v11 = vcombine.high %v11836_v19, %v11842_v12  ;;  %v6961_v31 = vcombine.low %v11822_v23, %v11859_v20  ;;  %v12842_v19 = vld [vmem:[#allocation19_spill] sm:$0xff] }
 0x574   : > { %v6149_v46 = vcombine.low %v11864_v37, %v11848_v9  ;;  %v5762_v23 = vcombine.high %v12843_v1, %v12842_v19  ;;  %v6184_v1 = vrot.slane %v6170_v36, %v8930_v62  ;;  %v6200_v19 = vrot.slane %v6186_v0, %v8930_v62 }
 0x575   : > { %v8447_v48 = vpack.i.bf16 %v6148_v34, %v5756_v25  ;;  %v8412_v54 = vpack.i.bf16 %v6146_v11, %v5754_v21  ;;  %v6945_v25 = vcombine.low %v11788_v6, %v11820_v50  ;;  %v5757_v34 = vcombine.low %v11881_v61, %v11855_v42 }
 0x576   : > { %v11892_v15 = vpop.permute.xlu0 %6787  ;;  %v11894_v12 = vpop.permute.xlu1 %6783  ;;  %v5824_v21 = vrot.slane %v5810_v51, %v8930_v62  ;;  %v8422_v4 = vpack.i.bf16 %v12845_v57, %v4959_v18  ;;  %v6168_v51 = vrot.slane %v6154_v10, %v8930_v62  ;;  %v6265_v36 = vcombine.low %v6200_v19, %v6216_v14  ;;  %v12846_v10 = vld [vmem:[#allocation13_spill] sm:$0xff] }
 0x577   : > { %12841 = vst [vmem:[#allocation27_spill] sm:$0xff] %v11892_v15  ;;  %8448 = vrot.lane.b32.xlu1 %v8447_v48, %s8709_s10  ;;  %8413 = vrot.lane.b32.xlu0 %v8412_v54, %s8710_s11  ;;  %v11917_v48 = vrot.slane %v6961_v31, %v8930_v62  ;;  %v6977_v11 = vcombine.low %v11857_v27, %v11892_v15  ;;  %v12847_v18 = vld [vmem:[#allocation33_spill] sm:$0xff] }
 0x578   : > { %v8457_v47 = vpack.i.bf16 %v6149_v46, %v5757_v34  ;;  %v6147_v31 = vcombine.low %v11839_v60, %v11845_v26  ;;  %v6953_v54 = vrot.slane %v6945_v25, %v8930_v62  ;;  %v6682_v49 = vcombine.high %v11756_v56, %v11759_v28 }
 0x579   : > { %v12848_v34 = vcombine.low %v12846_v10, %v12847_v18  ;;  %v5776_v57 = vrot.slane %v5762_v23, %v8930_v62  ;;  %v5873_v27 = vcombine.low %v5808_v58, %v5824_v21  ;;  %v6233_v60 = vcombine.low %v6168_v51, %v6184_v1 }
 0x57a   : > { %v11926_v40 = vpop.permute.xlu0 %6761  ;;  %v11928_v0 = vpop.permute.xlu1 %6791  ;;  %v5755_v26 = vcombine.low %v11831_v30, %v11816_v24  ;;  %v6266_v25 = vcombine.high %v6200_v19, %v6216_v14  ;;  %v6985_v56 = vrot.slane %v6977_v11, %v8930_v62  ;;  %v5874_v24 = vcombine.high %v5808_v58, %v5824_v21 }
 0x57b   : > { %v6993_v46 = vcombine.low %v11894_v12, %v11928_v0  ;;  %8458 = vrot.lane.b32.xlu1 %v8457_v47, %s8712_s19  ;;  %v11942_v2 = vrot.slane %v12848_v34, %v8932_v63  ;;  %8423 = vrot.lane.b32.xlu0 %v8422_v4, %s8714_s23  ;;  %v7009_v47 = vcombine.low %v6953_v54, %v11917_v48 }
 0x57c   : > { %v5841_v10 = vcombine.low %v5776_v57, %v11910_v3  ;;  %v6273_v34 = vrot.slane %v6265_v36, %v8932_v63  ;;  %v8432_v18 = vpack.i.bf16 %v6147_v31, %v5755_v26  ;;  %v4960_v4 = vcombine.high %v11768_v41, %v11810_v5 }
 0x57d   : > { %12849 = vst [vmem:[#allocation24_spill] sm:$0xff] %v11942_v2  ;;  %v7001_v28 = vrot.slane %v6993_v46, %v8930_v62  ;;  %v6234_v14 = vcombine.high %v6168_v51, %v6184_v1  ;;  %v12850_v19 = vcombine.low %v11667_v44, %v11673_v32  ;;  %v5881_v46 = vrot.slane %v5873_v27, %v8932_v63 }
 0x57e   : > { %v11953_v2 = vpop.permute.xlu0 %6769  ;;  %v11955_v23 = vpop.permute.xlu1 %6765  ;;  %v6241_v36 = vrot.slane %v6233_v60, %v8932_v63  ;;  %v12851_v41 = vcombine.low %v11681_v22, %v11690_v33  ;;  %v5842_v21 = vcombine.high %v5776_v57, %v11910_v3  ;;  %v11976_v1 = vrot.slane %v6266_v25, %v8932_v63 }
 0x57f   : > { %v7041_v30 = vcombine.low %v6985_v56, %v7001_v28  ;;  %v11963_v11 = vrot.slane %v12850_v19, %v8932_v63  ;;  %v7042_v15 = vcombine.high %v6985_v56, %v7001_v28  ;;  %8433 = vrot.lane.b32.xlu0 %v8432_v18, %s8711_s18  ;;  %v11979_v58 = vrot.slane %v7009_v47, %v8932_v63 }
 0x580   : > { %v11972_v5 = vrot.slane %v12851_v41, %v8932_v63  ;;  %v5849_v56 = vrot.slane %v5841_v10, %v8932_v63  ;;  %v7010_v28 = vcombine.high %v6953_v54, %v11917_v48  ;;  %v12853_v18 = vcombine.high %v11699_v45, %v11705_v35 }
 0x581   : > { %v11982_v27 = vrot.slane %v7041_v30, %v8932_v63  ;;  %v6285_v57 = vcombine.low %v6241_v36, %v6273_v34  ;;  %v11992_v60 = vrot.slane %v5874_v24, %v8932_v63  ;;  %v11995_v26 = vrot.slane %v6234_v14, %v8932_v63 }
 0x582   : > { %v11986_v51 = vpop.permute.xlu0 %6777  ;;  %v6774_v31 = vpop.permute.xlu1 %6773  ;;  %v8442_v3 = vpack.i.bf16 %v12853_v18, %v4960_v4  ;;  %v12002_v54 = vrot.slane %v7042_v15, %v8932_v63  ;;  %v5893_v45 = vcombine.low %v5849_v56, %v5881_v46  ;;  %v12854_v35 = vcombine.high %v11667_v44, %v11673_v32 }
 0x583   : > { %12852 = vst [vmem:[#allocation29_spill] sm:$0xff] %v11982_v27  ;;  %v7074_v48 = vcombine.high %v11979_v58, %v11982_v27  ;;  %v12855_v47 = vcombine.high %v11681_v22, %v11690_v33  ;;  %v5856_v24 = vrot.slane %v5842_v21, %v8932_v63  ;;  %v6825_v15 = vcombine.low %v11955_v23, %v6774_v31 }
 0x584   : > { %8443 = vrot.lane.b32.xlu0 %v8442_v3, %s8715_s26  ;;  %v12009_v10 = vrot.slane %v12854_v35, %v8932_v63  ;;  %v6287_v30 = vcombine.low %v11995_v26, %v11976_v1  ;;  %v12022_v19 = vrot.slane %v7010_v28, %v8932_v63  ;;  %v8452_v41 = vpack.i.bf16 %v6285_v57, %v5893_v45 }
 0x585   : > { %v12015_v4 = vrot.slane %v12855_v47, %v8932_v63  ;;  %v8467_v14 = vpack.i.bf16 %v7074_v48, %v6682_v49  ;;  %v6286_v18 = vcombine.high %v6241_v36, %v6273_v34  ;;  %v6683_v22 = vcombine.low %v11765_v7, %v11907_v55 }
 0x586   : > { %v6786_v44 = vpop.permute.xlu0 %6785  ;;  %v6782_v32 = vpop.permute.xlu1 %6781  ;;  %v6809_v33 = vcombine.low %v11926_v40, %v11953_v2  ;;  %v5895_v49 = vcombine.low %v5856_v24, %v11992_v60  ;;  %v12856_v28 = vcombine.low %v11670_v16, %v11678_v38  ;;  %v5894_v34 = vcombine.high %v5849_v56, %v5881_v46 }
 0x587   : > { %8468 = vrot.lane.b32.xlu1 %v8467_v14, %s8710_s11  ;;  %v7075_v36 = vcombine.low %v12022_v19, %v12002_v54  ;;  %v12857_v48 = vcombine.low %v11684_v39, %v11693_v59  ;;  %v6833_v35 = vrot.slane %v6825_v15, %v8930_v62  ;;  %v6841_v47 = vcombine.low %v11986_v51, %v6786_v44 }
 0x588   : > { %v12036_v3 = vrot.slane %v12856_v28, %v8932_v63  ;;  %8453 = vrot.lane.b32.xlu0 %v8452_v41, %s8712_s19  ;;  %v8477_v14 = vpack.i.bf16 %v6287_v30, %v5895_v49  ;;  %v6548_v46 = vcombine.high %v12009_v10, %v12015_v4  ;;  %v6826_v56 = vcombine.high %v11955_v23, %v6774_v31 }
 0x589   : > { %v12047_v45 = vrot.slane %v12857_v48, %v8932_v63  ;;  %v8462_v25 = vpack.i.bf16 %v6286_v18, %v5894_v34  ;;  %v6150_v57 = vcombine.high %v11864_v37, %v11848_v9  ;;  %v5896_v48 = vcombine.high %v5856_v24, %v11992_v60 }
 0x58a   : > { %v12054_v41 = vpop.permute.xlu0 %7155  ;;  %v6790_v28 = vpop.permute.xlu1 %6789  ;;  %v6817_v21 = vrot.slane %v6809_v33, %v8930_v62  ;;  %v6842_v15 = vcombine.high %v11986_v51, %v6786_v44  ;;  %v6810_v23 = vcombine.high %v11926_v40, %v11953_v2  ;;  %v5758_v31 = vcombine.high %v11881_v61, %v11855_v42 }
 0x58b   : > { %v6857_v27 = vcombine.low %v6782_v32, %v6790_v28  ;;  %v6858_v30 = vcombine.high %v6782_v32, %v6790_v28  ;;  %8478 = vrot.lane.b32.xlu1 %v8477_v14, %s8714_s23  ;;  %v8487_v18 = vpack.i.bf16 %v7075_v36, %v6683_v22  ;;  %v6288_v9 = vcombine.high %v11995_v26, %v11976_v1 }
 0x58c   : > { %8463 = vrot.lane.b32.xlu0 %v8462_v25, %s8713_s21  ;;  %v6873_v37 = vcombine.low %v6817_v21, %v6833_v35  ;;  %v6849_v60 = vrot.slane %v6841_v47, %v8930_v62  ;;  %v5738_v40 = vcombine.high %v11796_v53, %v11783_v29  ;;  %v6130_v2 = vcombine.high %v11803_v17, %v11807_v13 }
 0x58d   : > { %v6865_v51 = vrot.slane %v6857_v27, %v8930_v62  ;;  %v12072_v24 = vrot.slane %v6858_v30, %v8930_v62  ;;  %v12079_v42 = vrot.slane %v6826_v56, %v8930_v62  ;;  %v8472_v26 = vpack.i.bf16 %v6150_v57, %v5758_v31 }
 0x58e   : > { %v12081_v61 = vpop.permute.xlu0 %7163  ;;  %v12083_v1 = vpop.permute.xlu1 %7159  ;;  %v6874_v25 = vcombine.high %v6817_v21, %v6833_v35  ;;  %v12086_v27 = vrot.slane %v6842_v15, %v8930_v62  ;;  %v6098_v29 = vcombine.high %v11799_v43, %v11793_v8  ;;  %v12092_v53 = vrot.slane %v6810_v23, %v8930_v62  ;;  %v12858_v43 = vld [vmem:[#allocation35_spill] sm:$0xff]  ;;  %v12861_v15 = vld [vmem:[#allocation37_spill] sm:$0xff] }
 0x58f   : > { %v6905_v44 = vcombine.low %v6849_v60, %v6865_v51  ;;  %v6906_v32 = vcombine.high %v6849_v60, %v6865_v51  ;;  %8488 = vrot.lane.b32.xlu1 %v8487_v18, %s8711_s18  ;;  %v8497_v17 = vpack.i.bf16 %v6288_v9, %v5896_v48  ;;  %v7076_v13 = vcombine.high %v12022_v19, %v12002_v54  ;;  %v12860_v48 = vld [vmem:[#allocation27_spill] sm:$0xff] }
 0x590   : > { %8473 = vrot.lane.b32.xlu0 %v8472_v26, %s8713_s21  ;;  %v12098_v22 = vrot.slane %v6873_v37, %v8932_v63  ;;  %v6921_v8 = vcombine.low %v12086_v27, %v12072_v24  ;;  %v5706_v21 = vcombine.high %v12858_v43, %v11780_v52  ;;  %v12111_v34 = vrot.slane %v5738_v40, %v8932_v63 }
 0x591   : > { %v12101_v33 = vrot.slane %v6905_v44, %v8932_v63  ;;  %v12104_v49 = vrot.slane %v6906_v32, %v8932_v63  ;;  %v12114_v54 = vrot.slane %v6130_v2, %v8932_v63  ;;  %v6994_v19 = vcombine.high %v11894_v12, %v11928_v0  ;;  %v12859_v0 = vld [vmem:[#allocation36_spill] sm:$0xff] }
 0x592   : > { %v12118_v36 = vpop.permute.xlu0 %7171  ;;  %v12120_v57 = vpop.permute.xlu1 %7167  ;;  %v6888_v35 = vrot.slane %v6874_v25, %v8932_v63  ;;  %v6889_v47 = vcombine.low %v12092_v53, %v12079_v42  ;;  %v12131_v56 = vrot.slane %v6098_v29, %v8932_v63  ;;  %v6946_v12 = vcombine.high %v11788_v6, %v11820_v50 }
 0x593   : > { %v6937_v52 = vcombine.low %v12098_v22, %v12101_v33  ;;  %8498 = vrot.lane.b32.xlu1 %v8497_v17, %s8715_s26  ;;  %v6938_v14 = vcombine.high %v12098_v22, %v12101_v33  ;;  %v6962_v28 = vcombine.high %v12859_v0, %v11859_v20  ;;  %v6978_v30 = vcombine.high %v12861_v15, %v12860_v48 }
 0x594   : > { %v12140_v23 = vrot.slane %v6921_v8, %v8932_v63  ;;  %v12862_v31 = vcombine.high %v11765_v7, %v11907_v55  ;;  %v12863_v9 = vcombine.high %v11963_v11, %v11972_v5  ;;  %v6940_v60 = vcombine.high %v6888_v35, %v12104_v49 }
 0x595   : > { %v12150_v6 = vrot.slane %v5706_v21, %v8932_v63  ;;  %v12153_v20 = vrot.slane %v6994_v19, %v8930_v62  ;;  %v6151_v7 = vcombine.low %v12131_v56, %v12114_v54  ;;  %v6547_v55 = vcombine.low %v12009_v10, %v12015_v4 }
 0x596   : > { %v8507_v18 = vpack.i.bf16 %v7076_v13, %v12862_v31  ;;  %v8482_v37 = vpack.i.bf16 %v6938_v14, %v12863_v9  ;;  %v12155_v50 = vpop.permute.xlu0 %7179  ;;  %v12157_v51 = vpop.permute.xlu1 %7175  ;;  %v6897_v40 = vrot.slane %v6889_v47, %v8932_v63  ;;  %v7337_v2 = vcombine.low %v12054_v41, %v12081_v61  ;;  %v12867_v9 = vld [vmem:[#allocation9_spill] sm:$0xff] }
 0x597   : > { %v7353_v26 = vcombine.low %v12083_v1, %v12120_v57  ;;  %v6549_v25 = vcombine.low %v12036_v3, %v12047_v45  ;;  %v12172_v44 = vrot.slane %v6962_v28, %v8930_v62  ;;  %v6992_v32 = vrot.slane %v6978_v30, %v8930_v62 }
 0x598   : > { %8508 = vrot.lane.b32.xlu1 %v8507_v18, %s8709_s10  ;;  %v7369_v29 = vcombine.low %v12118_v36, %v12155_v50  ;;  %8483 = vrot.lane.b32.xlu0 %v8482_v37, %s8710_s11  ;;  %v5759_v17 = vcombine.low %v12150_v6, %v12111_v34  ;;  %v12181_v13 = vrot.slane %v6946_v12, %v8930_v62 }
 0x599   : > { %v6922_v8 = vcombine.high %v12086_v27, %v12072_v24  ;;  %v8517_v43 = vpack.i.bf16 %v6940_v60, %v6548_v46  ;;  %v6941_v21 = vcombine.low %v6897_v40, %v12140_v23  ;;  %v7057_v19 = vcombine.low %v6992_v32, %v12153_v20 }
 0x59a   : > { %v6890_v47 = vcombine.high %v12092_v53, %v12079_v42  ;;  %v12192_v14 = vpop.permute.xlu0 %7153  ;;  %v12194_v0 = vpop.permute.xlu1 %7183  ;;  %v8492_v12 = vpack.i.bf16 %v6151_v7, %v5759_v17  ;;  %v6939_v28 = vcombine.low %v6888_v35, %v12104_v49  ;;  %v12198_v24 = vrot.slane %v7337_v2, %v8930_v62  ;;  %v12869_v7 = vld [vmem:[#allocation33_spill] sm:$0xff] }
 0x59b   : > { %v12201_v10 = vrot.slane %v7353_v26, %v8930_v62  ;;  %v12204_v4 = vrot.slane %v7369_v29, %v8930_v62  ;;  %v7385_v46 = vcombine.low %v12157_v51, %v12194_v0  ;;  %v7025_v42 = vcombine.low %v12181_v13, %v12172_v44  ;;  %v12870_v2 = vld [vmem:[#allocation13_spill] sm:$0xff] }
 0x59c   : > { %8518 = vrot.lane.b32.xlu1 %v8517_v43, %s8709_s10  ;;  %8493 = vrot.lane.b32.xlu0 %v8492_v12, %s8714_s23  ;;  %v6550_v27 = vcombine.high %v12036_v3, %v12047_v45  ;;  %v12864_v53 = vcombine.high %v11670_v16, %v11678_v38  ;;  %v12865_v35 = vcombine.high %v11684_v39, %v11693_v59  ;;  %v12866_v59 = vld [vmem:[#allocation34_spill] sm:$0xff] }
 0x59d   : > { %v12227_v15 = vrot.slane %v6922_v8, %v8932_v63  ;;  %v12230_v30 = vrot.slane %v7385_v46, %v8930_v62  ;;  %v8527_v31 = vpack.i.bf16 %v6941_v21, %v6549_v25  ;;  %v6942_v3 = vcombine.high %v6897_v40, %v12140_v23 }
 0x59e   : > { %v12218_v49 = vrot.slane %v12864_v53, %v8932_v63  ;;  %v12224_v48 = vrot.slane %v12865_v35, %v8932_v63  ;;  %v7065_v45 = vrot.slane %v7057_v19, %v8932_v63  ;;  %v12234_v16 = vpop.permute.xlu0 %7161  ;;  %v12236_v38 = vpop.permute.xlu1 %7157  ;;  %v8502_v18 = vpack.i.bf16 %v6939_v28, %v6547_v55  ;;  %v12871_v28 = vld [vmem:[#allocation24_spill] sm:$0xff] }
 0x59f   : > { %v6152_v39 = vcombine.high %v12131_v56, %v12114_v54  ;;  %v12868_v37 = vcombine.low %v12866_v59, %v12867_v9  ;;  %v6634_v26 = vcombine.high %v12870_v2, %v12869_v7  ;;  %v12247_v23 = vrot.slane %v6890_v47, %v8932_v63 }
 0x5a0   : > { %v7401_v40 = vcombine.low %v12198_v24, %v12201_v10  ;;  %v7433_v55 = vcombine.low %v12204_v4, %v12230_v30  ;;  %8528 = vrot.lane.b32.xlu1 %v8527_v31, %s8712_s19  ;;  %v6666_v54 = vcombine.high %v12866_v59, %v12867_v9  ;;  %v7033_v56 = vrot.slane %v7025_v42, %v8932_v63 }
 0x5a1   : > { %v6673_v60 = vrot.slane %v12868_v37, %v8932_v63  ;;  %8503 = vrot.lane.b32.xlu0 %v8502_v18, %s8711_s18  ;;  %v5760_v25 = vcombine.high %v12150_v6, %v12111_v34  ;;  %v6551_v29 = vcombine.low %v12218_v49, %v12224_v48  ;;  %v7058_v17 = vcombine.high %v6992_v32, %v12153_v20 }
 0x5a2   : > { %v12264_v8 = vrot.slane %v7433_v55, %v8932_v63  ;;  %v8537_v43 = vpack.i.bf16 %v6942_v3, %v6550_v27  ;;  %v6943_v21 = vcombine.low %v12247_v23, %v12227_v15  ;;  %v7170_v19 = vpop.permute.xlu0 %7169  ;;  %v12268_v47 = vpop.permute.xlu1 %7165  ;;  %v7077_v42 = vcombine.low %v7033_v56, %v7065_v45 }
 0x5a3   : > { %v8512_v12 = vpack.i.bf16 %v6152_v39, %v5760_v25  ;;  %v6685_v46 = vcombine.low %v12871_v28, %v6673_v60  ;;  %v12272_v34 = vrot.slane %v7401_v40, %v8932_v63  ;;  %v7026_v6 = vcombine.high %v12181_v13, %v12172_v44 }
 0x5a4   : > { %8538 = vrot.lane.b32.xlu1 %v8537_v43, %s8713_s21  ;;  %v6686_v20 = vcombine.high %v12871_v28, %v6673_v60  ;;  %v6648_v32 = vrot.slane %v6634_v26, %v8932_v63  ;;  %v7072_v27 = vrot.slane %v7058_v17, %v8932_v63  ;;  %v8547_v53 = vpack.i.bf16 %v6943_v21, %v6551_v29 }
 0x5a5   : > { %8513 = vrot.lane.b32.xlu0 %v8512_v12, %s8715_s26  ;;  %v6680_v35 = vrot.slane %v6666_v54, %v8932_v63  ;;  %v7465_v31 = vcombine.low %v12272_v34, %v12264_v8  ;;  %v7201_v3 = vcombine.low %v12192_v14, %v12234_v16  ;;  %v7217_v44 = vcombine.low %v12236_v38, %v12268_v47 }
 0x5a6   : > { %v7174_v13 = vpop.permute.xlu1 %7173  ;;  %v8522_v18 = vpack.i.bf16 %v7077_v42, %v6685_v46  ;;  %v7078_v39 = vcombine.high %v7033_v56, %v7065_v45  ;;  %v7178_v59 = vpop.permute.xlu0 %7177  ;;  %v7040_v9 = vrot.slane %v7026_v6, %v8932_v63  ;;  %v7466_v60 = vcombine.high %v12272_v34, %v12264_v8 }
 0x5a7   : > { %v7233_v37 = vcombine.low %v7170_v19, %v7178_v59  ;;  %v6687_v7 = vcombine.low %v6648_v32, %v6680_v35  ;;  %v7209_v2 = vrot.slane %v7201_v3, %v8930_v62  ;;  %v7225_v26 = vrot.slane %v7217_v44, %v8930_v62 }
 0x5a8   : > { %8548 = vrot.lane.b32.xlu1 %v8547_v53, %s8714_s23  ;;  %v8532_v55 = vpack.i.bf16 %v7078_v39, %v6686_v20  ;;  %v7079_v54 = vcombine.low %v7040_v9, %v7072_v27  ;;  %v6688_v25 = vcombine.high %v6648_v32, %v6680_v35  ;;  %v7080_v29 = vcombine.high %v7040_v9, %v7072_v27 }
 0x5a9   : > { %8523 = vrot.lane.b32.xlu0 %v8522_v18, %s8712_s19  ;;  %v7241_v45 = vrot.slane %v7233_v37, %v8930_v62  ;;  %v7265_v43 = vcombine.low %v7209_v2, %v7225_v26  ;;  %v6552_v46 = vcombine.high %v12218_v49, %v12224_v48  ;;  %v7370_v42 = vcombine.high %v12118_v36, %v12155_v50 }
 0x5aa   : > { %v7182_v40 = vpop.permute.xlu1 %7181  ;;  %v8542_v21 = vpack.i.bf16 %v7079_v54, %v6687_v7  ;;  %v8552_v28 = vpack.i.bf16 %v7080_v29, %v6688_v25  ;;  %v7234_v6 = vcombine.high %v7170_v19, %v7178_v59  ;;  %v7386_v32 = vcombine.high %v12157_v51, %v12194_v0  ;;  %v12344_v44 = vpop.permute.xlu0 %8353 }
 0x5ab   : > { %v7249_v56 = vcombine.low %v7174_v13, %v7182_v40  ;;  %v7250_v20 = vcombine.high %v7174_v13, %v7182_v40  ;;  %v7434_v27 = vcombine.high %v12204_v4, %v12230_v30  ;;  %v6944_v49 = vcombine.high %v12247_v23, %v12227_v15 }
 0x5ac   : > { %7502 = vrot.lane.b32.xlu1 %v7466_v60, %s8710_s11  ;;  %v7202_v36 = vcombine.high %v12192_v14, %v12234_v16  ;;  %v7218_v50 = vcombine.high %v12236_v38, %v12268_v47  ;;  %v7266_v48 = vcombine.high %v7209_v2, %v7225_v26  ;;  %v12318_v19 = vrot.slane %v7265_v43, %v8932_v63 }
 0x5ad   : > { %8533 = vrot.lane.b32.xlu0 %v8532_v55, %s8713_s21  ;;  %v7257_v17 = vrot.slane %v7249_v56, %v8930_v62  ;;  %v7338_v51 = vcombine.high %v12054_v41, %v12081_v61  ;;  %v7354_v0 = vcombine.high %v12083_v1, %v12120_v57  ;;  %v7402_v4 = vcombine.high %v12198_v24, %v12201_v10 }
 0x5ae   : > { %v12326_v15 = vpop.permute.xlu1 %8358  ;;  %v7248_v14 = vrot.slane %v7234_v6, %v8930_v62  ;;  %v7264_v30 = vrot.slane %v7250_v20, %v8930_v62  ;;  %v7384_v41 = vrot.slane %v7370_v42, %v8930_v62  ;;  %v7400_v61 = vrot.slane %v7386_v32, %v8930_v62 }
 0x5af   : > { %v7297_v12 = vcombine.low %v7241_v45, %v7257_v17  ;;  %v7298_v53 = vcombine.high %v7241_v45, %v7257_v17  ;;  %v7448_v1 = vrot.slane %v7434_v27, %v8932_v63  ;;  %v8557_v57 = vpack.i.bf16 %v6944_v49, %v6552_v46 }
 0x5b0   : > { %v7216_v24 = vrot.slane %v7202_v36, %v8930_v62  ;;  %v7232_v10 = vrot.slane %v7218_v50, %v8930_v62  ;;  %v7280_v23 = vrot.slane %v7266_v48, %v8932_v63  ;;  %v7352_v3 = vrot.slane %v7338_v51, %v8930_v62 }
 0x5b1   : > { %8543 = vrot.lane.b32.xlu0 %v8542_v21, %s8714_s23  ;;  %v12309_v35 = vrot.slane %v7297_v12, %v8932_v63  ;;  %v7312_v16 = vrot.slane %v7298_v53, %v8932_v63  ;;  %v7368_v13 = vrot.slane %v7354_v0, %v8930_v62  ;;  %v7416_v18 = vrot.slane %v7402_v4, %v8932_v63  ;;  %v12354_v62 = vpop.permute.xlu0 %8363 }
 0x5b2   : > { %v7313_v39 = vcombine.low %v7248_v14, %v7264_v30  ;;  %v12349_v9 = vpop.permute.xlu1 %8368  ;;  %v7449_v37 = vcombine.low %v7384_v41, %v7400_v61  ;;  %v7281_v60 = vcombine.low %v7216_v24, %v7232_v10  ;;  %v7314_v29 = vcombine.high %v7248_v14, %v7264_v30  ;;  %v12381_v14 = vld [vmem:[%s441_s5] sm:$0xff] }
 0x5b3   : > { %v7330_v38 = vcombine.high %v12318_v19, %v12309_v35  ;;  %v7329_v47 = vcombine.low %v12318_v19, %v12309_v35  ;;  %v7331_v59 = vcombine.low %v7280_v23, %v7312_v16  ;;  %v7467_v7 = vcombine.low %v7416_v18, %v7448_v1 }
 0x5b4   : > { %v7417_v2 = vcombine.low %v7352_v3, %v7368_v13  ;;  %v7321_v26 = vrot.slane %v7313_v39, %v8932_v63  ;;  %v7332_v40 = vcombine.high %v7280_v23, %v7312_v16  ;;  %v7457_v55 = vrot.slane %v7449_v37, %v8932_v63  ;;  %v12872_v16 = vld [vmem:[#allocation10_spill] sm:$0xff] }
 0x5b5   : > { %8553 = vrot.lane.b32.xlu0 %v8552_v28, %s8715_s26  ;;  %7474 = vrot.lane.b32.xlu1 %v7330_v38, %s8710_s11  ;;  %v7289_v54 = vrot.slane %v7281_v60, %v8932_v63  ;;  %v7468_v45 = vcombine.high %v7416_v18, %v7448_v1  ;;  %v7450_v43 = vcombine.high %v7384_v41, %v7400_v61  ;;  %v8374_v28 = vpop.permute.xlu0 %8373  ;;  %v8717_v46 = vmov 0.0   ;;  %v12873_v38 = vld [vmem:[#allocation8_spill] sm:$0xff]  ;;  %v12874_v60 = vld [vmem:[#allocation17_spill] sm:$0xff] }
 0x5b6   : > { %v12359_v56 = vpop.permute.xlu1 %8378  ;;  %v7425_v25 = vrot.slane %v7417_v2, %v8932_v63  ;;  %v7282_v21 = vcombine.high %v7216_v24, %v7232_v10  ;;  %7656 = vmatprep.mubr.f32.mxu0 %v8717_v46  ;;  %7727 = vmatprep.mubr.f32.mxu1 %v8717_v46  ;;  %v7418_v42 = vcombine.high %v7352_v3, %v7368_v13  ;;  %v8718_v36 = vmov 0  }
 0x5b7   : > { %v7333_v17 = vcombine.low %v7289_v54, %v7321_v26  ;;  %v7328_v6 = vrot.slane %v7314_v29, %v8932_v63  ;;  %v7334_v20 = vcombine.high %v7289_v54, %v7321_v26  ;;  %v7464_v32 = vrot.slane %v7450_v43, %v8932_v63  ;;  %8562 = vset.pattern.permute.xlu0 %v8718_v36 }
 0x5b8   : > { %v7469_v12 = vcombine.low %v7425_v25, %v7457_v55  ;;  %v7296_v27 = vrot.slane %v7282_v21, %v8932_v63  ;;  %v7470_v49 = vcombine.high %v7425_v25, %v7457_v55  ;;  %v7432_v50 = vrot.slane %v7418_v42, %v8932_v63  ;;  %7891 = vmatmul.mubr.msk.f32.vlgmr.msra.gmra.mrb[0].mxu0 %vm7588_vm9, %v12381_v14 }
 0x5b9   : > { %8558 = vrot.lane.b32.xlu0 %v8557_v57, %s8715_s26  ;;  %7478 = vrot.lane.b32.xlu1 %v7331_v59, %s8711_s18  ;;  %v8384_v51 = vpop.permute.xlu0 %8383  ;;  %v5497_v41 = vcombine.low %v12873_v38, %v12872_v16  ;;  %v8356_v61 = vunpack.i.h.bf16 %v12344_v44  ;;  %v8355_v1 = vunpack.i.l.bf16 %v12344_v44  ;;  %v8366_v24 = vunpack.i.h.bf16 %v12354_v62  ;;  %v7582_v44 = vld [vmem:[%s445_s9] sm:$0xff] }
 0x5ba   : > { %v12367_v53 = vpop.permute.xlu1 %8388  ;;  %v7335_v48 = vcombine.low %v7296_v27, %v7328_v6  ;;  %v7471_v4 = vcombine.low %v7432_v50, %v7464_v32  ;;  %v7336_v63 = vcombine.high %v7296_v27, %v7328_v6  ;;  %v7472_v57 = vcombine.high %v7432_v50, %v7464_v32 }
 0x5bb   : > { %v8365_v10 = vunpack.i.l.bf16 %v12354_v62  ;;  %v8376_v3 = vunpack.i.h.bf16 %v8374_v28  ;;  %v8375_v13 = vunpack.i.l.bf16 %v8374_v28  ;;  %v8386_v18 = vunpack.i.h.bf16 %v8384_v51 }
 0x5bc   : > { %v8385_v39 = vunpack.i.l.bf16 %v8384_v51  ;;  %v5568_v37 = vsel %vm799_vm1, %v5497_v41, %v8356_v61  ;;  %v8361_v38 = vunpack.i.h.bf16 %v12326_v15  ;;  %v8360_v41 = vunpack.i.l.bf16 %v12326_v15  ;;  %v12880_v15 = vld [vmem:[#allocation23_spill] sm:$0xff] }
 0x5bd   : > { %7506 = vrot.lane.b32.xlu0 %v7467_v7, %s8711_s18  ;;  %7482 = vrot.lane.b32.xlu1 %v7332_v40, %s8709_s10  ;;  %v8394_v23 = vpop.permute.xlu0 %8393  ;;  %v12875_v7 = vld [vmem:[#allocation11_spill] sm:$0xff]  ;;  %v5569_v54 = vsel %vm801_vm2, %v5568_v37, %v8366_v24  ;;  %v8381_v24 = vunpack.i.h.bf16 %v12359_v56  ;;  %s7898_s18 = sshll.u32 %s8696_s15, 9  ;;  %s8719_s15 = smov [#allocation4]  }
 0x5be   : > { %v12876_v2 = vcombine.low %v12874_v60, %v12875_v7  ;;  %v8396_v40 = vunpack.i.h.bf16 %v8394_v23  ;;  %v8395_v55 = vunpack.i.l.bf16 %v8394_v23  ;;  %v8391_v23 = vunpack.i.h.bf16 %v12367_v53  ;;  %s8630_s29 = sshll.u32 %s8719_s15, 4  ;;  %s8631_s29 = int_to_ptr.vmem [resolvable:$false] %s8630_s29 }
 0x5bf   : > { %s8632_s30 = scalar_lea.vmem %s8631_s29, 1024 }
 0x5c0   : > { %v5160_v26 = vsel %vm799_vm1, %v12876_v2, %v8355_v1  ;;  %v8371_v1 = vunpack.i.h.bf16 %v12349_v9 }
 0x5c1   : > { %7510 = vrot.lane.b32.xlu0 %v7468_v45, %s8709_s10  ;;  %7486 = vrot.lane.b32.xlu1 %v7333_v17, %s8712_s19  ;;  %v5161_v62 = vsel %vm801_vm2, %v5160_v26, %v8365_v10  ;;  %v5570_v17 = vsel %vm803_vm3, %v5569_v54, %v8376_v3  ;;  %v8404_v50 = vpop.permute.xlu0 %8403  ;;  %v8380_v10 = vunpack.i.l.bf16 %v12359_v56  ;;  %v8390_v3 = vunpack.i.l.bf16 %v12367_v53  ;;  %s7864_s10 = sshll.u32 %s8905_s6, 5 }
 0x5c2   : > { %v5162_v29 = vsel %vm803_vm3, %v5161_v62, %v8375_v13  ;;  %v5571_v21 = vsel %vm805_vm4, %v5570_v17, %v8386_v18  ;;  %v8406_v60 = vunpack.i.h.bf16 %v8404_v50  ;;  %v8405_v7 = vunpack.i.l.bf16 %v8404_v50  ;;  %s436_s11 = scalar_lea.vmem [#allocation4], %s7864_s10 }
 0x5c3   : > { %v5163_v43 = vsel %vm805_vm4, %v5162_v29, %v8385_v39  ;;  %v5572_v46 = vsel %vm807_vm5, %v5571_v21, %v8396_v40  ;;  %v12879_v39 = vld [vmem:[#allocation26_spill] sm:$0xff] }
 0x5c4   : > { %v5164_v28 = vsel %vm807_vm5, %v5163_v43, %v8395_v55 }
 0x5c5   : > { %7514 = vrot.lane.b32.xlu0 %v7469_v12, %s8712_s19  ;;  %7490 = vrot.lane.b32.xlu1 %v7334_v20, %s8713_s21  ;;  %s7755_s19 = sshll.u32 %s436_s11, 4  ;;  %s12594_s19 = int_to_ptr.vmem [resolvable:$true] %s7755_s19 }
 0x5c6   : > { %s8626_s28 = scalar_lea.vmem %s12594_s19, 512  ;;  %p8633_p4 = scmp.lt.s32.totalorder %s12594_s19, %s8631_s29 }
 0x5c7   : > { %p8627_p1 = scmp.ne.s32.totalorder %s12594_s19, %s8626_s28  ;;  %p8634_p6 = scmp.lt.s32.totalorder %s8632_s30, %s8626_s28 }
 0x5c9   : > { %7518 = vrot.lane.b32.xlu0 %v7470_v49, %s8713_s21  ;;  %v12375_v0 = vpop.permute.xlu1 %8398  ;;  %7494 = vrot.lane.b32.xlu1 %v7335_v48, %s8714_s23  ;;  %p8628_p2 = pnand %p8627_p1, %p8779_p5  ;;  %p8635_p7 = por %p8634_p6, %p8633_p4 }
 0x5cb   : > { %p8629_p3 = pneg %p8628_p2 }
 0x5cd   : > { %7522 = vrot.lane.b32.xlu0 %v7471_v4, %s8714_s23  ;;  %v8409_v30 = vpop.permute.xlu1 %8408  ;;  %7498 = vrot.lane.b32.xlu1 %v7336_v63, %s8715_s26  ;;  %v12877_v63 = vld [vmem:[#allocation22_spill] sm:$0xff]  ;;  %p8636_p8 = pnand %p8635_p7, %p8629_p3 }
 0x5ce   : > { %v8411_v45 = vunpack.i.h.bf16 %v8409_v30  ;;  %v8410_v25 = vunpack.i.l.bf16 %v8409_v30  ;;  %v12878_v30 = vld [vmem:[#allocation21_spill] sm:$0xff] }
 0x5cf   : > { %v5361_v16 = vcombine.low %v12878_v30, %v12877_v63 }
 0x5d0   : > { %v5573_v20 = vsel %vm809_vm6, %v5572_v46, %v8411_v45  ;;  %v5165_v32 = vsel %vm809_vm6, %v5164_v28, %v8410_v25 }
 0x5d1   : > { %7526 = vrot.lane.b32.xlu0 %v7472_v57, %s8715_s26  ;;  %v12397_v59 = vpop.permute.xlu1 %8418  ;;  %v8370_v57 = vunpack.i.l.bf16 %v12349_v9  ;;  %v5561_v18 = vsel %vm799_vm1, %v5361_v16, %v8361_v38  ;;  %s12592_s26 = scalar_lea.hbm %s12644_s3, %s7898_s18 }
 0x5d2   : > { %v5562_v2 = vsel %vm801_vm2, %v5561_v18, %v8371_v1  ;;  %v12883_v1 = vld [vmem:[#allocation32_spill] sm:$0xff] }
 0x5d3   : > { %v5563_v53 = vsel %vm803_vm3, %v5562_v2, %v8381_v24 }
 0x5d4   : > { %v5564_v54 = vsel %vm805_vm4, %v5563_v53, %v8391_v23  ;;  %v12886_v23 = vld [vmem:[#allocation30_spill] sm:$0xff] }
 0x5d5   : > { %7585 = vperm.xlu0 %8562, %v7582_v44   ;;  %v8429_v12 = vpop.permute.xlu1 %8428  ;;  %v12881_v44 = vcombine.low %v12879_v39, %v12880_v15  ;;  %v5565_v29 = vsel %vm807_vm5, %v5564_v54, %v8406_v60 }
 0x5d6   : > { %v8431_v42 = vunpack.i.h.bf16 %v8429_v12  ;;  %v8430_v6 = vunpack.i.l.bf16 %v8429_v12 }
 0x5d7   : > { %v5153_v37 = vsel %vm799_vm1, %v12881_v44, %v8360_v41  ;;  %v12882_v41 = vld [vmem:[#allocation15_spill] sm:$0xff] }
 0x5d8   : > { %v5166_v27 = vsel %vm811_vm7, %v5165_v32, %v8430_v6  ;;  %v5574_v49 = vsel %vm811_vm7, %v5573_v20, %v8431_v42  ;;  %v5154_v9 = vsel %vm801_vm2, %v5153_v37, %v8370_v57  ;;  %v8401_v32 = vunpack.i.h.bf16 %v12375_v0 }
 0x5d9   : > { %v7919_v36 = vpack.c.bf16 %v5574_v49, %v5166_v27  ;;  %v8439_v51 = vpop.permute.xlu1 %8438  ;;  %v5155_v40 = vsel %vm803_vm3, %v5154_v9, %v8380_v10  ;;  %v8400_v27 = vunpack.i.l.bf16 %v12375_v0  ;;  %v8421_v49 = vunpack.i.h.bf16 %v12397_v59  ;;  %v12885_v10 = vld [vmem:[#allocation31_spill] sm:$0xff] }
 0x5da   : > { %v5156_v62 = vsel %vm805_vm4, %v5155_v40, %v8390_v3  ;;  %v8440_v63 = vunpack.i.l.bf16 %v8439_v51  ;;  %v12884_v57 = vcombine.low %v12882_v41, %v12883_v1  ;;  %v12887_v3 = vcombine.low %v12885_v10, %v12886_v23 }
 0x5db   : > { %7920 = vmatprep.subr.bf16.mxu1 %v7919_v36  ;;  %v5157_v25 = vsel %vm807_vm5, %v5156_v62, %v8405_v7  ;;  %v8420_v36 = vunpack.i.l.bf16 %v12397_v59 }
 0x5dc   : > { %v6352_v24 = vsel %vm799_vm1, %v12884_v57, %v8401_v32  ;;  %v5960_v0 = vsel %vm799_vm1, %v12887_v3, %v8400_v27 }
 0x5dd   : > { %v5961_v59 = vsel %vm801_vm2, %v5960_v0, %v8420_v36  ;;  %v6353_v15 = vsel %vm801_vm2, %v6352_v24, %v8421_v49  ;;  %v12888_v49 = vld [vmem:[#allocation14_spill] sm:$0xff]  ;;  %v12889_v36 = vld [vmem:[#allocation12_spill] sm:$0xff] }
 0x5de   : > { %v5962_v44 = vsel %vm803_vm3, %v5961_v59, %v8440_v63  ;;  %v12891_v63 = vld [vmem:[#allocation25_spill] sm:$0xff] }
 0x5e9   : > { %v12416_v48 = vpop.permute.xlu0 %8413  ;;  %v12422_v61 = vpop.permute.xlu1 %8448 }
 0x5ea   : > { %v8451_v1 = vunpack.i.h.bf16 %v12422_v61 }
 0x5ed   : > { %v8424_v4 = vpop.permute.xlu0 %8423  ;;  %v12441_v55 = vpop.permute.xlu1 %8458 }
 0x5ee   : > { %v8426_v56 = vunpack.i.h.bf16 %v8424_v4  ;;  %v8425_v26 = vunpack.i.l.bf16 %v8424_v4  ;;  %v8441_v4 = vunpack.i.h.bf16 %v8439_v51 }
 0x5f0   : > { %v5158_v21 = vsel %vm809_vm6, %v5157_v25, %v8425_v26  ;;  %v5566_v12 = vsel %vm809_vm6, %v5565_v29, %v8426_v56  ;;  %v6354_v37 = vsel %vm803_vm3, %v6353_v15, %v8441_v4 }
 0x5f1   : > { %v12430_v13 = vpop.permute.xlu0 %8433 }
 0x5f6   : > { %v8444_v45 = vpop.permute.xlu0 %8443 }
 0x5f7   : > { %v8446_v17 = vunpack.i.h.bf16 %v8444_v45  ;;  %v8445_v43 = vunpack.i.l.bf16 %v8444_v45 }
 0x5f9   : > { %v12449_v28 = vpop.permute.xlu1 %8468  ;;  %v5159_v46 = vsel %vm811_vm7, %v5158_v21, %v8445_v43  ;;  %v5567_v42 = vsel %vm811_vm7, %v5566_v12, %v8446_v17 }
 0x5fa   : > { %v8454_v6 = vpop.permute.xlu0 %8453  ;;  %v7921_v20 = vpack.c.bf16 %v5567_v42, %v5159_v46  ;;  %v8416_v46 = vunpack.i.h.bf16 %v12416_v48  ;;  %v8415_v42 = vunpack.i.l.bf16 %v12416_v48 }
 0x5fb   : > { %v8456_v16 = vunpack.i.h.bf16 %v8454_v6  ;;  %v8455_v38 = vunpack.i.l.bf16 %v8454_v6  ;;  %v8436_v6 = vunpack.i.h.bf16 %v12430_v13 }
 0x5fc   : > { %7922 = vmatpush1.bf16.msra.mxu1 %v7921_v20  ;;  %v8435_v20 = vunpack.i.l.bf16 %v12430_v13  ;;  %v8450_v13 = vunpack.i.l.bf16 %v12422_v61 }
 0x5fd   : > { %v8479_v50 = vpop.permute.xlu1 %8478  ;;  %v5963_v60 = vsel %vm805_vm4, %v5962_v44, %v8455_v38  ;;  %v6355_v7 = vsel %vm805_vm4, %v6354_v37, %v8456_v16 }
 0x5fe   : > { %v8464_v30 = vpop.permute.xlu0 %8463  ;;  %v8481_v9 = vunpack.i.h.bf16 %v8479_v50  ;;  %v8480_v2 = vunpack.i.l.bf16 %v8479_v50  ;;  %v12890_v50 = vcombine.low %v12888_v49, %v12889_v36 }
 0x5ff   : > { %v8466_v18 = vunpack.i.h.bf16 %v8464_v30  ;;  %v8465_v39 = vunpack.i.l.bf16 %v8464_v30  ;;  %v12892_v30 = vld [vmem:[#allocation20_spill] sm:$0xff] }
 0x600   : > { %v5953_v4 = vsel %vm799_vm1, %v12890_v50, %v8415_v42  ;;  %v12893_v16 = vcombine.low %v12891_v63, %v12892_v30  ;;  %v8471_v42 = vunpack.i.h.bf16 %v12449_v28 }
 0x601   : > { %v12467_v51 = vpop.permute.xlu1 %8488  ;;  %v5964_v56 = vsel %vm807_vm5, %v5963_v60, %v8465_v39  ;;  %v6356_v26 = vsel %vm807_vm5, %v6355_v7, %v8466_v18  ;;  %v5954_v48 = vsel %vm801_vm2, %v5953_v4, %v8435_v20  ;;  %v8461_v18 = vunpack.i.h.bf16 %v12441_v55 }
 0x602   : > { %v8474_v53 = vpop.permute.xlu0 %8473  ;;  %v5965_v45 = vsel %vm809_vm6, %v5964_v56, %v8480_v2  ;;  %v6357_v25 = vsel %vm809_vm6, %v6356_v26, %v8481_v9  ;;  %v6345_v38 = vsel %vm799_vm1, %v12893_v16, %v8416_v46  ;;  %v5955_v10 = vsel %vm803_vm3, %v5954_v48, %v8450_v13 }
 0x603   : > { %v6346_v41 = vsel %vm801_vm2, %v6345_v38, %v8436_v6  ;;  %v8476_v3 = vunpack.i.h.bf16 %v8474_v53  ;;  %v8475_v0 = vunpack.i.l.bf16 %v8474_v53  ;;  %v8460_v39 = vunpack.i.l.bf16 %v12441_v55 }
 0x604   : > { %v6347_v23 = vsel %vm803_vm3, %v6346_v41, %v8451_v1  ;;  %v8470_v6 = vunpack.i.l.bf16 %v12449_v28  ;;  %v8491_v49 = vunpack.i.h.bf16 %v12467_v51  ;;  %v8490_v36 = vunpack.i.l.bf16 %v12467_v51 }
 0x605   : > { %v8499_v40 = vpop.permute.xlu1 %8498  ;;  %v5956_v44 = vsel %vm805_vm4, %v5955_v10, %v8460_v39  ;;  %v6348_v37 = vsel %vm805_vm4, %v6347_v23, %v8461_v18 }
 0x606   : > { %v8501_v62 = vunpack.i.h.bf16 %v8499_v40  ;;  %v8500_v54 = vunpack.i.l.bf16 %v8499_v40  ;;  %v5957_v60 = vsel %vm807_vm5, %v5956_v44, %v8475_v0  ;;  %v6349_v7 = vsel %vm807_vm5, %v6348_v37, %v8476_v3 }
 0x608   : > { %v5966_v29 = vsel %vm811_vm7, %v5965_v45, %v8500_v54  ;;  %v6358_v17 = vsel %vm811_vm7, %v6357_v25, %v8501_v62  ;;  %v12894_v45 = vld [vmem:[#allocation7_spill] sm:$0xff]  ;;  %v12895_v25 = vld [vmem:[#allocation16_spill] sm:$0xff] }
 0x609   : > { %v7923_v21 = vpack.c.bf16 %v6358_v17, %v5966_v29  ;;  %v6681_v29 = vcombine.low %v12895_v25, %v12894_v45  ;;  %v6545_v17 = vcombine.low %v11963_v11, %v11972_v5  ;;  %v12896_v5 = vld [vmem:[#allocation29_spill] sm:$0xff] }
 0x60a   : > { %v12479_v43 = vpop.permute.xlu1 %8508  ;;  %v8484_v12 = vpop.permute.xlu0 %8483 }
 0x60b   : > { %7924 = vmatprep.subr.bf16.mxu1 %v7923_v21  ;;  %v8486_v21 = vunpack.i.h.bf16 %v8484_v12  ;;  %v8485_v46 = vunpack.i.l.bf16 %v8484_v12  ;;  %v12897_v12 = vcombine.low %v11979_v58, %v12896_v5  ;;  %v6752_v30 = vsel %vm799_vm1, %v6681_v29, %v8470_v6 }
 0x60c   : > { %v8511_v38 = vunpack.i.h.bf16 %v12479_v43  ;;  %v8510_v48 = vunpack.i.l.bf16 %v12479_v43  ;;  %v6753_v33 = vsel %vm801_vm2, %v6752_v30, %v8490_v36 }
 0x60d   : > { %v6745_v63 = vsel %vm799_vm1, %v6545_v17, %v8485_v46  ;;  %v7137_v11 = vsel %vm799_vm1, %v6937_v52, %v8486_v21  ;;  %v7144_v28 = vsel %vm799_vm1, %v12897_v12, %v8471_v42 }
 0x60e   : > { %v12485_v32 = vpop.permute.xlu1 %8518  ;;  %v8494_v27 = vpop.permute.xlu0 %8493  ;;  %v7145_v58 = vsel %vm801_vm2, %v7144_v28, %v8491_v49 }
 0x60f   : > { %v8496_v59 = vunpack.i.h.bf16 %v8494_v27  ;;  %v8495_v15 = vunpack.i.l.bf16 %v8494_v27  ;;  %v8521_v41 = vunpack.i.h.bf16 %v12485_v32  ;;  %v8520_v22 = vunpack.i.l.bf16 %v12485_v32 }
 0x611   : > { %v5958_v56 = vsel %vm809_vm6, %v5957_v60, %v8495_v15  ;;  %v6350_v26 = vsel %vm809_vm6, %v6349_v7, %v8496_v59  ;;  %v6754_v59 = vsel %vm803_vm3, %v6753_v33, %v8510_v48  ;;  %v7146_v15 = vsel %vm803_vm3, %v7145_v58, %v8511_v38 }
 0x612   : > { %v12499_v24 = vpop.permute.xlu1 %8528 }
 0x613   : > { %v8504_v57 = vpop.permute.xlu0 %8503  ;;  %v8531_v0 = vunpack.i.h.bf16 %v12499_v24  ;;  %v8530_v43 = vunpack.i.l.bf16 %v12499_v24 }
 0x614   : > { %v8506_v20 = vunpack.i.h.bf16 %v8504_v57  ;;  %v8505_v27 = vunpack.i.l.bf16 %v8504_v57 }
 0x616   : > { %v12511_v40 = vpop.permute.xlu1 %8538  ;;  %v6746_v16 = vsel %vm801_vm2, %v6745_v63, %v8505_v27  ;;  %v7138_v51 = vsel %vm801_vm2, %v7137_v11, %v8506_v20 }
 0x617   : > { %v8514_v61 = vpop.permute.xlu0 %8513  ;;  %v6747_v57 = vsel %vm803_vm3, %v6746_v16, %v8520_v22  ;;  %v7139_v10 = vsel %vm803_vm3, %v7138_v51, %v8521_v41  ;;  %v8541_v44 = vunpack.i.h.bf16 %v12511_v40  ;;  %v8540_v37 = vunpack.i.l.bf16 %v12511_v40 }
 0x618   : > { %v8516_v9 = vunpack.i.h.bf16 %v8514_v61  ;;  %v8515_v2 = vunpack.i.l.bf16 %v8514_v61  ;;  %v6748_v61 = vsel %vm805_vm4, %v6747_v57, %v8530_v43  ;;  %v7140_v60 = vsel %vm805_vm4, %v7139_v10, %v8531_v0 }
 0x619   : > { %v6749_v46 = vsel %vm807_vm5, %v6748_v61, %v8540_v37  ;;  %v7141_v42 = vsel %vm807_vm5, %v7140_v60, %v8541_v44 }
 0x61a   : > { %v5959_v55 = vsel %vm811_vm7, %v5958_v56, %v8515_v2  ;;  %v6351_v53 = vsel %vm811_vm7, %v6350_v26, %v8516_v9  ;;  %v8549_v50 = vpop.permute.xlu1 %8548 }
 0x61b   : > { %v8524_v62 = vpop.permute.xlu0 %8523  ;;  %v7925_v54 = vpack.c.bf16 %v6351_v53, %v5959_v55  ;;  %v8551_v53 = vunpack.i.h.bf16 %v8549_v50 }
 0x61c   : > { %v8526_v52 = vunpack.i.h.bf16 %v8524_v62  ;;  %v8525_v1 = vunpack.i.l.bf16 %v8524_v62  ;;  %v8550_v62 = vunpack.i.l.bf16 %v8549_v50 }
 0x61d   : > { %7926 = vmatpush1.bf16.msra.mxu1 %v7925_v54  ;;  %v7142_v49 = vsel %vm809_vm6, %v7141_v42, %v8551_v53 }
 0x61e   : > { %v7503_v18 = vpop.permute.xlu1 %7502  ;;  %v6755_v7 = vsel %vm805_vm4, %v6754_v59, %v8525_v1  ;;  %v7147_v9 = vsel %vm805_vm4, %v7146_v15, %v8526_v52  ;;  %v6750_v27 = vsel %vm809_vm6, %v6749_v46, %v8550_v62 }
 0x61f   : > { %v8534_v4 = vpop.permute.xlu0 %8533  ;;  %v7536_v48 = vsel %vm799_vm1, %v7465_v31, %v7503_v18 }
 0x620   : > { %v8536_v23 = vunpack.i.h.bf16 %v8534_v4  ;;  %v8535_v3 = vunpack.i.l.bf16 %v8534_v4 }
 0x622   : > { %v6756_v2 = vsel %vm807_vm5, %v6755_v7, %v8535_v3  ;;  %v7148_v56 = vsel %vm807_vm5, %v7147_v9, %v8536_v23 }
 0x623   : > { %v8544_v13 = vpop.permute.xlu0 %8543 }
 0x624   : > { %v8546_v39 = vunpack.i.h.bf16 %v8544_v13  ;;  %v8545_v32 = vunpack.i.l.bf16 %v8544_v13 }
 0x626   : > { %v6757_v54 = vsel %vm809_vm6, %v6756_v2, %v8545_v32  ;;  %v7149_v40 = vsel %vm809_vm6, %v7148_v56, %v8546_v39 }
 0x627   : > { %v8554_v24 = vpop.permute.xlu0 %8553  ;;  %v7475_v45 = vpop.permute.xlu1 %7474 }
 0x628   : > { %v8556_v26 = vunpack.i.h.bf16 %v8554_v24  ;;  %v8555_v55 = vunpack.i.l.bf16 %v8554_v24  ;;  %v7529_v41 = vsel %vm799_vm1, %v7329_v47, %v7475_v45 }
 0x62a   : > { %v6758_v25 = vsel %vm811_vm7, %v6757_v54, %v8555_v55  ;;  %v7150_v29 = vsel %vm811_vm7, %v7149_v40, %v8556_v26 }
 0x62b   : > { %v8559_v17 = vpop.permute.xlu0 %8558  ;;  %v7927_v21 = vpack.c.bf16 %v7150_v29, %v6758_v25  ;;  %v7479_v36 = vpop.permute.xlu1 %7478 }
 0x62c   : > { %v8561_v6 = vunpack.i.h.bf16 %v8559_v17  ;;  %v8560_v20 = vunpack.i.l.bf16 %v8559_v17  ;;  %v7530_v58 = vsel %vm801_vm2, %v7529_v41, %v7479_v36 }
 0x62d   : > { %7928 = vmatprep.subr.bf16.mxu1 %v7927_v21 }
 0x62e   : > { %v6751_v50 = vsel %vm811_vm7, %v6750_v27, %v8560_v20  ;;  %v7143_v4 = vsel %vm811_vm7, %v7142_v49, %v8561_v6 }
 0x62f   : > { %v7507_v63 = vpop.permute.xlu0 %7506  ;;  %v7929_v11 = vpack.c.bf16 %v7143_v4, %v6751_v50  ;;  %v7483_v5 = vpop.permute.xlu1 %7482 }
 0x630   : > { %v7537_v22 = vsel %vm801_vm2, %v7536_v48, %v7507_v63  ;;  %v7531_v1 = vsel %vm803_vm3, %v7530_v58, %v7483_v5 }
 0x631   : > { %7930 = vmatpush1.bf16.msra.mxu1 %v7929_v11 }
 0x633   : > { %v7511_v12 = vpop.permute.xlu0 %7510  ;;  %v7487_v28 = vpop.permute.xlu1 %7486 }
 0x634   : > { %v7538_v52 = vsel %vm803_vm3, %v7537_v22, %v7511_v12  ;;  %v7532_v8 = vsel %vm805_vm4, %v7531_v1, %v7487_v28 }
 0x637   : > { %v7515_v30 = vpop.permute.xlu0 %7514  ;;  %v7491_v16 = vpop.permute.xlu1 %7490 }
 0x638   : > { %v7539_v13 = vsel %vm805_vm4, %v7538_v52, %v7515_v30  ;;  %v7533_v35 = vsel %vm807_vm5, %v7532_v8, %v7491_v16 }
 0x63b   : > { %v7519_v51 = vpop.permute.xlu0 %7518  ;;  %v7495_v38 = vpop.permute.xlu1 %7494 }
 0x63c   : > { %v7540_v34 = vsel %vm807_vm5, %v7539_v13, %v7519_v51  ;;  %v7534_v57 = vsel %vm809_vm6, %v7533_v35, %v7495_v38 }
 0x63f   : > { %v7523_v33 = vpop.permute.xlu0 %7522  ;;  %v7499_v31 = vpop.permute.xlu1 %7498 }
 0x640   : > { %v7541_v19 = vsel %vm809_vm6, %v7540_v34, %v7523_v33  ;;  %v7535_v23 = vsel %vm811_vm7, %v7534_v57, %v7499_v31 }
 0x643   : > { %v7527_v47 = vpop.permute.xlu0 %7526 }
 0x644   : > { %v7542_v10 = vsel %vm811_vm7, %v7541_v19, %v7527_v47 }
 0x645   : > { %7679 = vmatprep.subr.mxu1 %v7542_v10 }
 0x646   : > { %7680 = vmatpush1.msra.mxu1 %v7535_v23 }
 0x647   : > { %7892 = vmatmul.mubr.msk.f32.vlgmr.msra.gmra.mrb[0].mxu1 %vm7588_vm9, %v12381_v14 }
 0x654   : > { %v7586_v3 = vpop.permute.xlu0 %7585 }
 0x68b   : > { %v7658_v0 = vpop.f32.mrb[0].mxu0 }
 0x68c   : > { %v7659_v43 = vadd.f32 %v7658_v0, %v7586_v3  ;;  %v7660_v18 = vpop.f32.mrb[1].mxu0 }
 0x68d   : > { %v7661_v39 = vadd.f32 %v7660_v18, %v7586_v3 }
 0x68e   : > { %7734 = vst [vmem:[%s436_s11] sm:$0xff] %v7659_v43 }
 0x68f   : > { %7735 = vst [vmem:[%s436_s11 + $0x8] sm:$0xff] %v7661_v39 }
 0x71a   : > { %v7729_v32 = vpop.f32.mrb[0].mxu1 }
 0x71b   : > { %v7730_v59 = vadd.f32 %v7729_v32, %v7586_v3  ;;  %v7731_v15 = vpop.f32.mrb[1].mxu1 }
 0x71c   : > { %v7732_v44 = vadd.f32 %v7731_v15, %v7586_v3 }
 0x71d   : > { %7736 = vst [vmem:[%s436_s11 + $0x10] sm:$0xff] %v7730_v59 }
 0x71e   : > { %7737 = vst [vmem:[%s436_s11 + $0x18] sm:$0xff] %v7732_v44 }
 0x71f   : > { %8639 = shalt.err (!%p8636_p8)
}
 0x720   : > { %s8640_s6 = scalar_lea.hbm %s12592_s26, 512  ;;  %s8644_s7 = scalar_lea.hbm %s12644_s3, 1024 }
 0x721   : > { %p8641_p11 = scmp.ne.s32.totalorder %s12592_s26, %s8640_s6  ;;  %p8645_p0 = scmp.lt.u32.totalorder %s12592_s26, %s12644_s3 }
 0x722   : > { %p8646_p1 = scmp.lt.u32.totalorder %s8644_s7, %s8640_s6  ;;  %p8648_p3 = scmp.lt.u32.totalorder %s8640_s6, %s12592_s26 }
 0x723   : > { %p8642_p12 = pnand %p8641_p11, %p8779_p5 }
 0x724   : > { %p8647_p2 = por %p8646_p1, %p8645_p0 }
 0x725   : > { %p8643_p13 = pneg %p8642_p12 }
 0x726   : > { %p8649_p4 = por %p8648_p3, %p8647_p2 }
 0x728   : > { %p8650_p6 = pnand %p8649_p4, %p8643_p13 }
 0x72a   : > { %8653 = shalt.err (!%p8650_p6)
}
 0x72b   : > { %7934 = dma.vmem_to_hbm [thread:$0]  (%p8779_p5), %s12594_s19, 512, %s12592_s26, %s7739_s27  }
 0x72c PF: > { %s7767_s10 = sand.u32 1, %s8684_s12   ;;  %p7937_p7 = pnand %p7861_p10, %p8790_p9 }
 0x72d   : > { %s7768_s11 = scalar_lea.sflag [#allocation5], %s7767_s10 }
 0x72e   : > { %8679 = dma.done.wait (!%p7937_p7), %s7768_s11, 512  }
 0x72f   : > { %8681 = vsyncadd (!%p7937_p7), %s7768_s11, 4294966784  ;;  %s16_s17 = sadd.s32 1, %s8704_s17   ;;  %s12898_s12 = smov %s8688_s13 }
 0x730   : > { %p13_p8 = scmp.ge.s32.totalorder %s16_s17, 4   ;;  %s12899_s13 = smov %s8692_s14 }
 0x731   : > { %s12900_s14 = smov %s8788_s24  ;;  %s12901_s15 = smov %s8700_s16 }
 0x732   : > { %s12902_s16 = smov %s12904_s20  ;;  %15 = sbr.rel (!%p13_p8) target bundleno = 4 (0x4), region = 117 }
 0x739   :  { %7773 = vsyncpa [#allocation5], 1 }
 0x73a   :  { %7775 = vsyncpa [#allocation5 + $0x1], 1 }

</bundles_post_ra>
